<compile_context>
chip_gen: v7x
topology: tpu7x:2x2x1
jax: 0.10.0
libtpu: 0.0.40
codegen_flags: <defaults>
</compile_context>

<pallas_src>
import math
import numpy as np

import jax
import jax.numpy as jnp
from jax.experimental import pallas as pl
from jax.experimental.pallas import tpu as pltpu

jax.config.update("jax_default_matmul_precision", "highest")


# ---------------------------------------------------------------------------
# Operator folding (parameter preprocessing, done ONCE outside the kernel)
# ---------------------------------------------------------------------------

def _dft_matrices(n, modes):
    """Real matrices reproducing naive_rfft / naive_irfft with the first
    l_n = min(modes, n//2+1) modes kept (Hermitian fold + Re() drop folded in)."""
    K = n // 2 + 1
    l_n = min(modes, K)
    t = np.arange(n, dtype=np.float64)
    mm = np.arange(l_n, dtype=np.float64)
    ang_f = 2.0 * np.pi * np.outer(t, mm) / n            # (n, l_n)
    cf = np.cos(ang_f)
    sf = np.sin(ang_f)
    w = np.full((l_n,), 2.0, dtype=np.float64)
    w[0] = 1.0
    if n % 2 == 0 and l_n == K:
        w[-1] = 1.0                                       # Nyquist counted once
    ang_b = 2.0 * np.pi * np.outer(mm, t) / n             # (l_n, n)
    ar = w[:, None] * np.cos(ang_b) / n
    ai = -w[:, None] * np.sin(ang_b) / n
    return (cf.astype(np.float32), sf.astype(np.float32),
            ar.astype(np.float32), ai.astype(np.float32))


def _spectral_operator(wr, wi, n, modes):
    """(n*D, n*D) real operator equivalent to sparseKernelFT1d on a length-n
    signal, acting on slabs whose column order is (time, channel)."""
    D = wr.shape[0]
    cf, sf, ar, ai = _dft_matrices(n, modes)
    l_n = cf.shape[1]
    wr = wr[:, :, :l_n]
    wi = wi[:, :, :l_n]
    s4 = (jnp.einsum('nm,iom,mq->niqo', cf, wr, ar)
          + jnp.einsum('nm,iom,mq->niqo', sf, wi, ar)
          + jnp.einsum('nm,iom,mq->niqo', cf, wi, ai)
          - jnp.einsum('nm,iom,mq->niqo', sf, wr, ai))
    return s4.reshape(n * D, n * D).astype(jnp.float32)


def _decompose_operator(ec_d, ec_s, n, c, k):
    """(n*c*k, n*c*k) operator: x-slab -> [d-slab | s-slab] (wavelet analysis,
    even/odd de-interleave folded into the matrix)."""
    m = n // 2
    sel = np.zeros((n, m, 2), np.float32)
    j = np.arange(m)
    sel[2 * j, j, 0] = 1.0
    sel[2 * j + 1, j, 1] = 1.0
    eye_c = np.eye(c, dtype=np.float32)
    e_d = ec_d.reshape(2, k, k)                           # rows p*k+kk -> [p, kk, kk']
    e_s = ec_s.reshape(2, k, k)
    wd = jnp.einsum('njp,cC,pab->ncajCb', sel, eye_c, e_d).reshape(n * c * k, m * c * k)
    ws = jnp.einsum('njp,cC,pab->ncajCb', sel, eye_c, e_s).reshape(n * c * k, m * c * k)
    return jnp.concatenate([wd, ws], axis=1).astype(jnp.float32)


def _reconstruct_operators(rc_e, rc_o, m, c, k):
    """Etop, Ebot: (m*c*k, 2m*c*k) operators with
    evenOdd(cat(x, Ud), rc_e, rc_o) == x @ Etop + Ud @ Ebot."""
    n = 2 * m
    sel = np.zeros((m, n, 2), np.float32)
    j = np.arange(m)
    sel[j, 2 * j, 0] = 1.0
    sel[j, 2 * j + 1, 1] = 1.0
    eye_c = np.eye(c, dtype=np.float32)
    r = jnp.stack([rc_e, rc_o], axis=0)                   # (2, 2k, k)
    etop = jnp.einsum('jnp,cC,pab->jcanCb', sel, eye_c, r[:, :k, :]
                      ).reshape(m * c * k, n * c * k)
    ebot = jnp.einsum('jnp,cC,pab->jcanCb', sel, eye_c, r[:, k:, :]
                      ).reshape(m * c * k, n * c * k)
    return etop.astype(jnp.float32), ebot.astype(jnp.float32)


def prepare_mwt_operators(params, N):
    """Fold all MWT_CZ1d parameters into per-level slab operators (done once)."""
    k, c, L, alpha = params['k'], params['c'], params['L'], params['alpha']
    D = c * k
    ns = int(math.floor(math.log2(N)))
    nl = 2 ** int(math.ceil(math.log2(N)))
    nlev = ns - L

    weights = []
    for l in range(nlev):
        n_l = nl >> l
        m_l = n_l // 2
        weights.append(_decompose_operator(params['ec_d'], params['ec_s'], n_l, c, k))
        weights.append(_spectral_operator(*params['A'], m_l, alpha))
        weights.append(_spectral_operator(*params['B'], m_l, alpha))
        weights.append(_spectral_operator(*params['C'], m_l, alpha))
        etop, ebot = _reconstruct_operators(params['rc_e'], params['rc_o'], m_l, c, k)
        weights.append(etop)
        weights.append(ebot)

    m_last = nl >> nlev
    t0m = jnp.kron(jnp.eye(m_last * c, dtype=jnp.float32), params['t0_w'].T)
    t0b = jnp.tile(params['t0_b'], m_last * c).reshape(1, m_last * D)
    weights.append(t0m.astype(jnp.float32))
    weights.append(t0b.astype(jnp.float32))

    weights = tuple(jnp.asarray(w, jnp.float32) for w in weights)
    return dict(N=N, nl=nl, nlev=nlev, D=D, c=c, k=k, weights=weights)


# ---------------------------------------------------------------------------
# Fused Pallas kernel
# ---------------------------------------------------------------------------

def _make_fused_kernel(N, nl, D, nlev):
    n_per_level = [nl >> l for l in range(nlev)]

    def kernel(x_ref, *refs):
        w = refs[:-1]          # 6*nlev + 2 folded operator refs
        o_ref = refs[-1]
        x = x_ref[0]           # (1, nl*D) slab, columns = (time, channel)

        Ud, Us = [], []
        for l in range(nlev):                       # decomposition
            m = (n_per_level[l] // 2) * D
            wds = w[6 * l + 0][...]
            sa = w[6 * l + 1][...]
            sb = w[6 * l + 2][...]
            sc = w[6 * l + 3][...]
            ds = jnp.dot(x, wds, preferred_element_type=jnp.float32)
            d = ds[:, :m]
            s = ds[:, m:]
            Ud.append(jnp.dot(d, sa, preferred_element_type=jnp.float32)
                      + jnp.dot(s, sb, preferred_element_type=jnp.float32))
            Us.append(jnp.dot(d, sc, preferred_element_type=jnp.float32))
            x = s

        t0m = w[6 * nlev + 0][...]                  # coarsest-level linear
        t0b = w[6 * nlev + 1][...]
        x = jnp.dot(x, t0m, preferred_element_type=jnp.float32) + t0b

        for l in range(nlev - 1, -1, -1):           # reconstruction
            etop = w[6 * l + 4][...]
            ebot = w[6 * l + 5][...]
            x = (jnp.dot(x + Us[l], etop, preferred_element_type=jnp.float32)
                 + jnp.dot(Ud[l], ebot, preferred_element_type=jnp.float32))

        o_ref[0] = x[:, :N * D]                     # single full-slab store
    return kernel


def mwt_cz1d_forward(x, ops):
    """MWT_CZ1d.forward: x (B, N, c, k) -> (B, N, c, k)."""
    B, N, c, k = x.shape
    assert N == ops['N'] and c == ops['c'] and k == ops['k']
    D = c * k
    nl, nlev = ops['nl'], ops['nlev']
    weights = ops['weights']

    if x.dtype != jnp.float32:
        x = x.astype(jnp.float32)
    if nl > N:                                       # pad to power of two
        x = jnp.concatenate([x, x[:, :nl - N]], axis=1)
    x_slab = x.reshape(B, 1, nl * D)

    kernel = _make_fused_kernel(N, nl, D, nlev)
    in_specs = [pl.BlockSpec((1, 1, nl * D), lambda b: (b, 0, 0))]
    in_specs += [pl.BlockSpec(w.shape, lambda b: (0, 0)) for w in weights]

    out = pl.pallas_call(
        kernel,
        grid=(B,),
        out_shape=jax.ShapeDtypeStruct((B, 1, N * D), jnp.float32),
        in_specs=in_specs,
        out_specs=pl.BlockSpec((1, 1, N * D), lambda b: (b, 0, 0)),
        compiler_params=pltpu.CompilerParams(
            dimension_semantics=("parallel",)),
    )(x_slab, *weights)

    return out.reshape(B, N, c, k)


# ---------------------------------------------------------------------------
# Parameter init (deterministic, synthetic)
# ---------------------------------------------------------------------------

def init_params(key, k=3, alpha=64, c=1, L=0):
    D = c * k
    scale = 1.0 / (D * D)
    keys = jax.random.split(key, 12)

    def cplx(kr, ki):
        return (scale * jax.random.normal(kr, (D, D, alpha), jnp.float32),
                scale * jax.random.normal(ki, (D, D, alpha), jnp.float32))

    A = cplx(keys[0], keys[1])
    Bw = cplx(keys[2], keys[3])
    C = cplx(keys[4], keys[5])

    lim = 1.0 / math.sqrt(k)
    t0_w = jax.random.uniform(keys[6], (k, k), jnp.float32, -lim, lim)
    t0_b = jax.random.uniform(keys[7], (k,), jnp.float32, -lim, lim)

    # TODO(synk): get_filter(base, k) (Legendre/Chebyshev quadrature filter
    # bank) is not provided; the (2k, k) filter buffers are deterministic
    # random placeholders with the correct shapes / dataflow.
    ec_s = jax.random.normal(keys[8], (2 * k, k), jnp.float32)
    ec_d = jax.random.normal(keys[9], (2 * k, k), jnp.float32)
    rc_e = jax.random.normal(keys[10], (2 * k, k), jnp.float32)
    rc_o = jax.random.normal(keys[11], (2 * k, k), jnp.float32)

    return dict(k=k, alpha=alpha, c=c, L=L, A=A, B=Bw, C=C,
                t0_w=t0_w, t0_b=t0_b,
                ec_s=ec_s, ec_d=ec_d, rc_e=rc_e, rc_o=rc_o)


# ---------------------------------------------------------------------------
# Pure-JAX reference (mirrors the PyTorch module, complex naive rfft/irfft)
# ---------------------------------------------------------------------------

def _ref_sparse_kernel_ft(x, wr, wi, modes):
    B, N, c, k = x.shape
    D = c * k
    xp = jnp.transpose(x.reshape(B, N, D), (0, 2, 1))            # (B, D, N)
    K = N // 2 + 1
    n_idx = np.arange(N)
    k_idx = np.arange(K)
    omega_f = np.exp(-2j * np.pi * np.outer(k_idx, n_idx) / N)    # (K, N)
    X = jnp.einsum('bin,kn->bik', xp.astype(jnp.complex64),
                   jnp.asarray(omega_f, jnp.complex64))
    l_n = min(modes, K)
    w = (wr + 1j * wi).astype(jnp.complex64)
    mixed = jnp.einsum('bim,iom->bom', X[..., :l_n], w[..., :l_n])
    out_ft = jnp.zeros((B, D, K), jnp.complex64).at[..., :l_n].set(mixed)
    if N % 2 == 0:
        tail = jnp.conj(out_ft[..., 1:-1][..., ::-1])
    else:
        tail = jnp.conj(out_ft[..., 1:][..., ::-1])
    x_full = jnp.concatenate([out_ft, tail], axis=-1)             # (B, D, N)
    omega_b = np.exp(2j * np.pi * np.outer(n_idx, n_idx) / N) / N
    xr = jnp.real(jnp.einsum('bif,ft->bit', x_full,
                             jnp.asarray(omega_b, jnp.complex64)))
    return jnp.transpose(xr, (0, 2, 1)).reshape(B, N, c, k)


def _reference_forward(x, p):
    B, N, c, k = x.shape
    L, alpha = p['L'], p['alpha']
    ns = int(math.floor(math.log2(N)))
    nl = 2 ** int(math.ceil(math.log2(N)))
    if nl > N:
        x = jnp.concatenate([x, x[:, :nl - N]], axis=1)
    Ud, Us = [], []
    for _ in range(ns - L):
        xa = jnp.concatenate([x[:, ::2], x[:, 1::2]], axis=-1)
        d = jnp.matmul(xa, p['ec_d'])
        x = jnp.matmul(xa, p['ec_s'])
        Ud.append(_ref_sparse_kernel_ft(d, *p['A'], alpha)
                  + _ref_sparse_kernel_ft(x, *p['B'], alpha))
        Us.append(_ref_sparse_kernel_ft(d, *p['C'], alpha))
    x = jnp.matmul(x, p['t0_w'].T) + p['t0_b']
    for i in range(ns - 1 - L, -1, -1):
        x = x + Us[i]
        x = jnp.concatenate([x, Ud[i]], axis=-1)
        x_e = jnp.matmul(x, p['rc_e'])
        x_o = jnp.matmul(x, p['rc_o'])
        nh = x.shape[1]
        x = jnp.stack([x_e, x_o], axis=2).reshape(B, nh * 2, c, k)
    return x[:, :N]


# ---------------------------------------------------------------------------

if __name__ == "__main__":
    key = jax.random.PRNGKey(0)
    kx, kp = jax.random.split(key)
    B, N, c, k = 2, 16, 1, 3
    x = jax.random.normal(kx, (B, N, c, k), jnp.float32)
    params = init_params(kp, k=k, alpha=64, c=c, L=0)

    ops = prepare_mwt_operators(params, N)            # folded once (param prep)
    out = jax.block_until_ready(mwt_cz1d_forward(x, ops))

    assert out.shape == (B, N, c, k), out.shape
    assert bool(jnp.all(jnp.isfinite(out)))

    ref = jax.block_until_ready(_reference_forward(x, params))
    err = float(jnp.max(jnp.abs(out - ref)) / (jnp.max(jnp.abs(ref)) + 1e-6))
    assert err < 3e-2, f"kernel/reference mismatch: rel err = {err}"
    print("KERNEL_OK")
</pallas_src>

<mosaic_0001>
module attributes {stable_mosaic.version = 11 : i64} {
  func.func @kernel(%arg0: i32, %arg1: memref<1x1x48xf32, #tpu.memory_space<vmem>>, %arg2: memref<48x48xf32, #tpu.memory_space<vmem>>, %arg3: memref<24x24xf32, #tpu.memory_space<vmem>>, %arg4: memref<24x24xf32, #tpu.memory_space<vmem>>, %arg5: memref<24x24xf32, #tpu.memory_space<vmem>>, %arg6: memref<24x48xf32, #tpu.memory_space<vmem>>, %arg7: memref<24x48xf32, #tpu.memory_space<vmem>>, %arg8: memref<24x24xf32, #tpu.memory_space<vmem>>, %arg9: memref<12x12xf32, #tpu.memory_space<vmem>>, %arg10: memref<12x12xf32, #tpu.memory_space<vmem>>, %arg11: memref<12x12xf32, #tpu.memory_space<vmem>>, %arg12: memref<12x24xf32, #tpu.memory_space<vmem>>, %arg13: memref<12x24xf32, #tpu.memory_space<vmem>>, %arg14: memref<12x12xf32, #tpu.memory_space<vmem>>, %arg15: memref<6x6xf32, #tpu.memory_space<vmem>>, %arg16: memref<6x6xf32, #tpu.memory_space<vmem>>, %arg17: memref<6x6xf32, #tpu.memory_space<vmem>>, %arg18: memref<6x12xf32, #tpu.memory_space<vmem>>, %arg19: memref<6x12xf32, #tpu.memory_space<vmem>>, %arg20: memref<6x6xf32, #tpu.memory_space<vmem>>, %arg21: memref<3x3xf32, #tpu.memory_space<vmem>>, %arg22: memref<3x3xf32, #tpu.memory_space<vmem>>, %arg23: memref<3x3xf32, #tpu.memory_space<vmem>>, %arg24: memref<3x6xf32, #tpu.memory_space<vmem>>, %arg25: memref<3x6xf32, #tpu.memory_space<vmem>>, %arg26: memref<3x3xf32, #tpu.memory_space<vmem>>, %arg27: memref<1x3xf32, #tpu.memory_space<vmem>>, %arg28: memref<1x1x48xf32, #tpu.memory_space<vmem>>) attributes {dimension_semantics = [#tpu.dimension_semantics<parallel>], iteration_bounds = array<i64: 2>, scalar_prefetch = 0 : i64, scratch_operands = 0 : i64, tpu.core_type = #tpu.core_type<tc>, window_params = [{transform_indices = @transform_0, window_bounds = array<i64: 1, 1, 48>}, {pipeline_mode = #tpu.pipeline_mode<synchronous>, transform_indices = @transform_1, window_bounds = array<i64: 48, 48>}, {pipeline_mode = #tpu.pipeline_mode<synchronous>, transform_indices = @transform_2, window_bounds = array<i64: 24, 24>}, {pipeline_mode = #tpu.pipeline_mode<synchronous>, transform_indices = @transform_3, window_bounds = array<i64: 24, 24>}, {pipeline_mode = #tpu.pipeline_mode<synchronous>, transform_indices = @transform_4, window_bounds = array<i64: 24, 24>}, {pipeline_mode = #tpu.pipeline_mode<synchronous>, transform_indices = @transform_5, window_bounds = array<i64: 24, 48>}, {pipeline_mode = #tpu.pipeline_mode<synchronous>, transform_indices = @transform_6, window_bounds = array<i64: 24, 48>}, {pipeline_mode = #tpu.pipeline_mode<synchronous>, transform_indices = @transform_7, window_bounds = array<i64: 24, 24>}, {pipeline_mode = #tpu.pipeline_mode<synchronous>, transform_indices = @transform_8, window_bounds = array<i64: 12, 12>}, {pipeline_mode = #tpu.pipeline_mode<synchronous>, transform_indices = @transform_9, window_bounds = array<i64: 12, 12>}, {pipeline_mode = #tpu.pipeline_mode<synchronous>, transform_indices = @transform_10, window_bounds = array<i64: 12, 12>}, {pipeline_mode = #tpu.pipeline_mode<synchronous>, transform_indices = @transform_11, window_bounds = array<i64: 12, 24>}, {pipeline_mode = #tpu.pipeline_mode<synchronous>, transform_indices = @transform_12, window_bounds = array<i64: 12, 24>}, {pipeline_mode = #tpu.pipeline_mode<synchronous>, transform_indices = @transform_13, window_bounds = array<i64: 12, 12>}, {pipeline_mode = #tpu.pipeline_mode<synchronous>, transform_indices = @transform_14, window_bounds = array<i64: 6, 6>}, {pipeline_mode = #tpu.pipeline_mode<synchronous>, transform_indices = @transform_15, window_bounds = array<i64: 6, 6>}, {pipeline_mode = #tpu.pipeline_mode<synchronous>, transform_indices = @transform_16, window_bounds = array<i64: 6, 6>}, {pipeline_mode = #tpu.pipeline_mode<synchronous>, transform_indices = @transform_17, window_bounds = array<i64: 6, 12>}, {pipeline_mode = #tpu.pipeline_mode<synchronous>, transform_indices = @transform_18, window_bounds = array<i64: 6, 12>}, {pipeline_mode = #tpu.pipeline_mode<synchronous>, transform_indices = @transform_19, window_bounds = array<i64: 6, 6>}, {pipeline_mode = #tpu.pipeline_mode<synchronous>, transform_indices = @transform_20, window_bounds = array<i64: 3, 3>}, {pipeline_mode = #tpu.pipeline_mode<synchronous>, transform_indices = @transform_21, window_bounds = array<i64: 3, 3>}, {pipeline_mode = #tpu.pipeline_mode<synchronous>, transform_indices = @transform_22, window_bounds = array<i64: 3, 3>}, {pipeline_mode = #tpu.pipeline_mode<synchronous>, transform_indices = @transform_23, window_bounds = array<i64: 3, 6>}, {pipeline_mode = #tpu.pipeline_mode<synchronous>, transform_indices = @transform_24, window_bounds = array<i64: 3, 6>}, {pipeline_mode = #tpu.pipeline_mode<synchronous>, transform_indices = @transform_25, window_bounds = array<i64: 3, 3>}, {pipeline_mode = #tpu.pipeline_mode<synchronous>, transform_indices = @transform_26, window_bounds = array<i64: 1, 3>}, {transform_indices = @transform_27, window_bounds = array<i64: 1, 1, 48>}]} {
    %c0 = arith.constant 0 : index
    %c0_0 = arith.constant 0 : index
    %c0_1 = arith.constant 0 : index
    %0 = vector.load %arg1[%c0, %c0_0, %c0_1] : memref<1x1x48xf32, #tpu.memory_space<vmem>>, vector<1x1x48xf32>
    %1 = vector.shape_cast %0 : vector<1x1x48xf32> to vector<1x48xf32>
    %c0_2 = arith.constant 0 : index
    %c0_3 = arith.constant 0 : index
    %2 = vector.load %arg2[%c0_2, %c0_3] : memref<48x48xf32, #tpu.memory_space<vmem>>, vector<48x48xf32>
    %c0_4 = arith.constant 0 : index
    %c0_5 = arith.constant 0 : index
    %3 = vector.load %arg3[%c0_4, %c0_5] : memref<24x24xf32, #tpu.memory_space<vmem>>, vector<24x24xf32>
    %c0_6 = arith.constant 0 : index
    %c0_7 = arith.constant 0 : index
    %4 = vector.load %arg4[%c0_6, %c0_7] : memref<24x24xf32, #tpu.memory_space<vmem>>, vector<24x24xf32>
    %c0_8 = arith.constant 0 : index
    %c0_9 = arith.constant 0 : index
    %5 = vector.load %arg5[%c0_8, %c0_9] : memref<24x24xf32, #tpu.memory_space<vmem>>, vector<24x24xf32>
    %cst = arith.constant dense<0.000000e+00> : vector<1x48xf32>
    %6 = tpu.matmul %1, %2, %cst {dimension_numbers = #tpu.dot_dimension_numbers<[1], [0], [0], [1], [0, 0, 1, 1], [], []>, precision = #tpu.contract_precision<fp32>} : vector<1x48xf32>, vector<48x48xf32>, vector<1x48xf32> -> vector<1x48xf32>
    %7 = vector.extract_strided_slice %6 {offsets = [0, 0], sizes = [1, 24], strides = [1, 1]} : vector<1x48xf32> to vector<1x24xf32>
    %8 = vector.extract_strided_slice %6 {offsets = [0, 24], sizes = [1, 24], strides = [1, 1]} : vector<1x48xf32> to vector<1x24xf32>
    %cst_10 = arith.constant dense<0.000000e+00> : vector<1x24xf32>
    %9 = tpu.matmul %7, %3, %cst_10 {dimension_numbers = #tpu.dot_dimension_numbers<[1], [0], [0], [1], [0, 0, 1, 1], [], []>, precision = #tpu.contract_precision<fp32>} : vector<1x24xf32>, vector<24x24xf32>, vector<1x24xf32> -> vector<1x24xf32>
    %cst_11 = arith.constant dense<0.000000e+00> : vector<1x24xf32>
    %10 = tpu.matmul %8, %4, %cst_11 {dimension_numbers = #tpu.dot_dimension_numbers<[1], [0], [0], [1], [0, 0, 1, 1], [], []>, precision = #tpu.contract_precision<fp32>} : vector<1x24xf32>, vector<24x24xf32>, vector<1x24xf32> -> vector<1x24xf32>
    %11 = arith.addf %9, %10 : vector<1x24xf32>
    %cst_12 = arith.constant dense<0.000000e+00> : vector<1x24xf32>
    %12 = tpu.matmul %7, %5, %cst_12 {dimension_numbers = #tpu.dot_dimension_numbers<[1], [0], [0], [1], [0, 0, 1, 1], [], []>, precision = #tpu.contract_precision<fp32>} : vector<1x24xf32>, vector<24x24xf32>, vector<1x24xf32> -> vector<1x24xf32>
    %c0_13 = arith.constant 0 : index
    %c0_14 = arith.constant 0 : index
    %13 = vector.load %arg8[%c0_13, %c0_14] : memref<24x24xf32, #tpu.memory_space<vmem>>, vector<24x24xf32>
    %c0_15 = arith.constant 0 : index
    %c0_16 = arith.constant 0 : index
    %14 = vector.load %arg9[%c0_15, %c0_16] : memref<12x12xf32, #tpu.memory_space<vmem>>, vector<12x12xf32>
    %c0_17 = arith.constant 0 : index
    %c0_18 = arith.constant 0 : index
    %15 = vector.load %arg10[%c0_17, %c0_18] : memref<12x12xf32, #tpu.memory_space<vmem>>, vector<12x12xf32>
    %c0_19 = arith.constant 0 : index
    %c0_20 = arith.constant 0 : index
    %16 = vector.load %arg11[%c0_19, %c0_20] : memref<12x12xf32, #tpu.memory_space<vmem>>, vector<12x12xf32>
    %cst_21 = arith.constant dense<0.000000e+00> : vector<1x24xf32>
    %17 = tpu.matmul %8, %13, %cst_21 {dimension_numbers = #tpu.dot_dimension_numbers<[1], [0], [0], [1], [0, 0, 1, 1], [], []>, precision = #tpu.contract_precision<fp32>} : vector<1x24xf32>, vector<24x24xf32>, vector<1x24xf32> -> vector<1x24xf32>
    %18 = vector.extract_strided_slice %17 {offsets = [0, 0], sizes = [1, 12], strides = [1, 1]} : vector<1x24xf32> to vector<1x12xf32>
    %19 = vector.extract_strided_slice %17 {offsets = [0, 12], sizes = [1, 12], strides = [1, 1]} : vector<1x24xf32> to vector<1x12xf32>
    %cst_22 = arith.constant dense<0.000000e+00> : vector<1x12xf32>
    %20 = tpu.matmul %18, %14, %cst_22 {dimension_numbers = #tpu.dot_dimension_numbers<[1], [0], [0], [1], [0, 0, 1, 1], [], []>, precision = #tpu.contract_precision<fp32>} : vector<1x12xf32>, vector<12x12xf32>, vector<1x12xf32> -> vector<1x12xf32>
    %cst_23 = arith.constant dense<0.000000e+00> : vector<1x12xf32>
    %21 = tpu.matmul %19, %15, %cst_23 {dimension_numbers = #tpu.dot_dimension_numbers<[1], [0], [0], [1], [0, 0, 1, 1], [], []>, precision = #tpu.contract_precision<fp32>} : vector<1x12xf32>, vector<12x12xf32>, vector<1x12xf32> -> vector<1x12xf32>
    %22 = arith.addf %20, %21 : vector<1x12xf32>
    %cst_24 = arith.constant dense<0.000000e+00> : vector<1x12xf32>
    %23 = tpu.matmul %18, %16, %cst_24 {dimension_numbers = #tpu.dot_dimension_numbers<[1], [0], [0], [1], [0, 0, 1, 1], [], []>, precision = #tpu.contract_precision<fp32>} : vector<1x12xf32>, vector<12x12xf32>, vector<1x12xf32> -> vector<1x12xf32>
    %c0_25 = arith.constant 0 : index
    %c0_26 = arith.constant 0 : index
    %24 = vector.load %arg14[%c0_25, %c0_26] : memref<12x12xf32, #tpu.memory_space<vmem>>, vector<12x12xf32>
    %c0_27 = arith.constant 0 : index
    %c0_28 = arith.constant 0 : index
    %25 = vector.load %arg15[%c0_27, %c0_28] : memref<6x6xf32, #tpu.memory_space<vmem>>, vector<6x6xf32>
    %c0_29 = arith.constant 0 : index
    %c0_30 = arith.constant 0 : index
    %26 = vector.load %arg16[%c0_29, %c0_30] : memref<6x6xf32, #tpu.memory_space<vmem>>, vector<6x6xf32>
    %c0_31 = arith.constant 0 : index
    %c0_32 = arith.constant 0 : index
    %27 = vector.load %arg17[%c0_31, %c0_32] : memref<6x6xf32, #tpu.memory_space<vmem>>, vector<6x6xf32>
    %cst_33 = arith.constant dense<0.000000e+00> : vector<1x12xf32>
    %28 = tpu.matmul %19, %24, %cst_33 {dimension_numbers = #tpu.dot_dimension_numbers<[1], [0], [0], [1], [0, 0, 1, 1], [], []>, precision = #tpu.contract_precision<fp32>} : vector<1x12xf32>, vector<12x12xf32>, vector<1x12xf32> -> vector<1x12xf32>
    %29 = vector.extract_strided_slice %28 {offsets = [0, 0], sizes = [1, 6], strides = [1, 1]} : vector<1x12xf32> to vector<1x6xf32>
    %30 = vector.extract_strided_slice %28 {offsets = [0, 6], sizes = [1, 6], strides = [1, 1]} : vector<1x12xf32> to vector<1x6xf32>
    %cst_34 = arith.constant dense<0.000000e+00> : vector<1x6xf32>
    %31 = tpu.matmul %29, %25, %cst_34 {dimension_numbers = #tpu.dot_dimension_numbers<[1], [0], [0], [1], [0, 0, 1, 1], [], []>, precision = #tpu.contract_precision<fp32>} : vector<1x6xf32>, vector<6x6xf32>, vector<1x6xf32> -> vector<1x6xf32>
    %cst_35 = arith.constant dense<0.000000e+00> : vector<1x6xf32>
    %32 = tpu.matmul %30, %26, %cst_35 {dimension_numbers = #tpu.dot_dimension_numbers<[1], [0], [0], [1], [0, 0, 1, 1], [], []>, precision = #tpu.contract_precision<fp32>} : vector<1x6xf32>, vector<6x6xf32>, vector<1x6xf32> -> vector<1x6xf32>
    %33 = arith.addf %31, %32 : vector<1x6xf32>
    %cst_36 = arith.constant dense<0.000000e+00> : vector<1x6xf32>
    %34 = tpu.matmul %29, %27, %cst_36 {dimension_numbers = #tpu.dot_dimension_numbers<[1], [0], [0], [1], [0, 0, 1, 1], [], []>, precision = #tpu.contract_precision<fp32>} : vector<1x6xf32>, vector<6x6xf32>, vector<1x6xf32> -> vector<1x6xf32>
    %c0_37 = arith.constant 0 : index
    %c0_38 = arith.constant 0 : index
    %35 = vector.load %arg20[%c0_37, %c0_38] : memref<6x6xf32, #tpu.memory_space<vmem>>, vector<6x6xf32>
    %c0_39 = arith.constant 0 : index
    %c0_40 = arith.constant 0 : index
    %36 = vector.load %arg21[%c0_39, %c0_40] : memref<3x3xf32, #tpu.memory_space<vmem>>, vector<3x3xf32>
    %c0_41 = arith.constant 0 : index
    %c0_42 = arith.constant 0 : index
    %37 = vector.load %arg22[%c0_41, %c0_42] : memref<3x3xf32, #tpu.memory_space<vmem>>, vector<3x3xf32>
    %c0_43 = arith.constant 0 : index
    %c0_44 = arith.constant 0 : index
    %38 = vector.load %arg23[%c0_43, %c0_44] : memref<3x3xf32, #tpu.memory_space<vmem>>, vector<3x3xf32>
    %cst_45 = arith.constant dense<0.000000e+00> : vector<1x6xf32>
    %39 = tpu.matmul %30, %35, %cst_45 {dimension_numbers = #tpu.dot_dimension_numbers<[1], [0], [0], [1], [0, 0, 1, 1], [], []>, precision = #tpu.contract_precision<fp32>} : vector<1x6xf32>, vector<6x6xf32>, vector<1x6xf32> -> vector<1x6xf32>
    %40 = vector.extract_strided_slice %39 {offsets = [0, 0], sizes = [1, 3], strides = [1, 1]} : vector<1x6xf32> to vector<1x3xf32>
    %41 = vector.extract_strided_slice %39 {offsets = [0, 3], sizes = [1, 3], strides = [1, 1]} : vector<1x6xf32> to vector<1x3xf32>
    %cst_46 = arith.constant dense<0.000000e+00> : vector<1x3xf32>
    %42 = tpu.matmul %40, %36, %cst_46 {dimension_numbers = #tpu.dot_dimension_numbers<[1], [0], [0], [1], [0, 0, 1, 1], [], []>, precision = #tpu.contract_precision<fp32>} : vector<1x3xf32>, vector<3x3xf32>, vector<1x3xf32> -> vector<1x3xf32>
    %cst_47 = arith.constant dense<0.000000e+00> : vector<1x3xf32>
    %43 = tpu.matmul %41, %37, %cst_47 {dimension_numbers = #tpu.dot_dimension_numbers<[1], [0], [0], [1], [0, 0, 1, 1], [], []>, precision = #tpu.contract_precision<fp32>} : vector<1x3xf32>, vector<3x3xf32>, vector<1x3xf32> -> vector<1x3xf32>
    %44 = arith.addf %42, %43 : vector<1x3xf32>
    %cst_48 = arith.constant dense<0.000000e+00> : vector<1x3xf32>
    %45 = tpu.matmul %40, %38, %cst_48 {dimension_numbers = #tpu.dot_dimension_numbers<[1], [0], [0], [1], [0, 0, 1, 1], [], []>, precision = #tpu.contract_precision<fp32>} : vector<1x3xf32>, vector<3x3xf32>, vector<1x3xf32> -> vector<1x3xf32>
    %c0_49 = arith.constant 0 : index
    %c0_50 = arith.constant 0 : index
    %46 = vector.load %arg26[%c0_49, %c0_50] : memref<3x3xf32, #tpu.memory_space<vmem>>, vector<3x3xf32>
    %c0_51 = arith.constant 0 : index
    %c0_52 = arith.constant 0 : index
    %47 = vector.load %arg27[%c0_51, %c0_52] : memref<1x3xf32, #tpu.memory_space<vmem>>, vector<1x3xf32>
    %cst_53 = arith.constant dense<0.000000e+00> : vector<1x3xf32>
    %48 = tpu.matmul %41, %46, %cst_53 {dimension_numbers = #tpu.dot_dimension_numbers<[1], [0], [0], [1], [0, 0, 1, 1], [], []>, precision = #tpu.contract_precision<fp32>} : vector<1x3xf32>, vector<3x3xf32>, vector<1x3xf32> -> vector<1x3xf32>
    %49 = arith.addf %48, %47 : vector<1x3xf32>
    %c0_54 = arith.constant 0 : index
    %c0_55 = arith.constant 0 : index
    %50 = vector.load %arg24[%c0_54, %c0_55] : memref<3x6xf32, #tpu.memory_space<vmem>>, vector<3x6xf32>
    %c0_56 = arith.constant 0 : index
    %c0_57 = arith.constant 0 : index
    %51 = vector.load %arg25[%c0_56, %c0_57] : memref<3x6xf32, #tpu.memory_space<vmem>>, vector<3x6xf32>
    %52 = arith.addf %49, %45 : vector<1x3xf32>
    %cst_58 = arith.constant dense<0.000000e+00> : vector<1x6xf32>
    %53 = tpu.matmul %52, %50, %cst_58 {dimension_numbers = #tpu.dot_dimension_numbers<[1], [0], [0], [1], [0, 0, 1, 1], [], []>, precision = #tpu.contract_precision<fp32>} : vector<1x3xf32>, vector<3x6xf32>, vector<1x6xf32> -> vector<1x6xf32>
    %cst_59 = arith.constant dense<0.000000e+00> : vector<1x6xf32>
    %54 = tpu.matmul %44, %51, %cst_59 {dimension_numbers = #tpu.dot_dimension_numbers<[1], [0], [0], [1], [0, 0, 1, 1], [], []>, precision = #tpu.contract_precision<fp32>} : vector<1x3xf32>, vector<3x6xf32>, vector<1x6xf32> -> vector<1x6xf32>
    %55 = arith.addf %53, %54 : vector<1x6xf32>
    %c0_60 = arith.constant 0 : index
    %c0_61 = arith.constant 0 : index
    %56 = vector.load %arg18[%c0_60, %c0_61] : memref<6x12xf32, #tpu.memory_space<vmem>>, vector<6x12xf32>
    %c0_62 = arith.constant 0 : index
    %c0_63 = arith.constant 0 : index
    %57 = vector.load %arg19[%c0_62, %c0_63] : memref<6x12xf32, #tpu.memory_space<vmem>>, vector<6x12xf32>
    %58 = arith.addf %55, %34 : vector<1x6xf32>
    %cst_64 = arith.constant dense<0.000000e+00> : vector<1x12xf32>
    %59 = tpu.matmul %58, %56, %cst_64 {dimension_numbers = #tpu.dot_dimension_numbers<[1], [0], [0], [1], [0, 0, 1, 1], [], []>, precision = #tpu.contract_precision<fp32>} : vector<1x6xf32>, vector<6x12xf32>, vector<1x12xf32> -> vector<1x12xf32>
    %cst_65 = arith.constant dense<0.000000e+00> : vector<1x12xf32>
    %60 = tpu.matmul %33, %57, %cst_65 {dimension_numbers = #tpu.dot_dimension_numbers<[1], [0], [0], [1], [0, 0, 1, 1], [], []>, precision = #tpu.contract_precision<fp32>} : vector<1x6xf32>, vector<6x12xf32>, vector<1x12xf32> -> vector<1x12xf32>
    %61 = arith.addf %59, %60 : vector<1x12xf32>
    %c0_66 = arith.constant 0 : index
    %c0_67 = arith.constant 0 : index
    %62 = vector.load %arg12[%c0_66, %c0_67] : memref<12x24xf32, #tpu.memory_space<vmem>>, vector<12x24xf32>
    %c0_68 = arith.constant 0 : index
    %c0_69 = arith.constant 0 : index
    %63 = vector.load %arg13[%c0_68, %c0_69] : memref<12x24xf32, #tpu.memory_space<vmem>>, vector<12x24xf32>
    %64 = arith.addf %61, %23 : vector<1x12xf32>
    %cst_70 = arith.constant dense<0.000000e+00> : vector<1x24xf32>
    %65 = tpu.matmul %64, %62, %cst_70 {dimension_numbers = #tpu.dot_dimension_numbers<[1], [0], [0], [1], [0, 0, 1, 1], [], []>, precision = #tpu.contract_precision<fp32>} : vector<1x12xf32>, vector<12x24xf32>, vector<1x24xf32> -> vector<1x24xf32>
    %cst_71 = arith.constant dense<0.000000e+00> : vector<1x24xf32>
    %66 = tpu.matmul %22, %63, %cst_71 {dimension_numbers = #tpu.dot_dimension_numbers<[1], [0], [0], [1], [0, 0, 1, 1], [], []>, precision = #tpu.contract_precision<fp32>} : vector<1x12xf32>, vector<12x24xf32>, vector<1x24xf32> -> vector<1x24xf32>
    %67 = arith.addf %65, %66 : vector<1x24xf32>
    %c0_72 = arith.constant 0 : index
    %c0_73 = arith.constant 0 : index
    %68 = vector.load %arg6[%c0_72, %c0_73] : memref<24x48xf32, #tpu.memory_space<vmem>>, vector<24x48xf32>
    %c0_74 = arith.constant 0 : index
    %c0_75 = arith.constant 0 : index
    %69 = vector.load %arg7[%c0_74, %c0_75] : memref<24x48xf32, #tpu.memory_space<vmem>>, vector<24x48xf32>
    %70 = arith.addf %67, %12 : vector<1x24xf32>
    %cst_76 = arith.constant dense<0.000000e+00> : vector<1x48xf32>
    %71 = tpu.matmul %70, %68, %cst_76 {dimension_numbers = #tpu.dot_dimension_numbers<[1], [0], [0], [1], [0, 0, 1, 1], [], []>, precision = #tpu.contract_precision<fp32>} : vector<1x24xf32>, vector<24x48xf32>, vector<1x48xf32> -> vector<1x48xf32>
    %cst_77 = arith.constant dense<0.000000e+00> : vector<1x48xf32>
    %72 = tpu.matmul %11, %69, %cst_77 {dimension_numbers = #tpu.dot_dimension_numbers<[1], [0], [0], [1], [0, 0, 1, 1], [], []>, precision = #tpu.contract_precision<fp32>} : vector<1x24xf32>, vector<24x48xf32>, vector<1x48xf32> -> vector<1x48xf32>
    %73 = arith.addf %71, %72 : vector<1x48xf32>
    %c0_78 = arith.constant 0 : index
    %c0_79 = arith.constant 0 : index
    %c0_80 = arith.constant 0 : index
    %74 = vector.load %arg28[%c0_78, %c0_79, %c0_80] : memref<1x1x48xf32, #tpu.memory_space<vmem>>, vector<1x1x48xf32>
    %75 = vector.shape_cast %74 : vector<1x1x48xf32> to vector<1x48xf32>
    %76 = vector.shape_cast %73 : vector<1x48xf32> to vector<1x1x48xf32>
    tpu.vector_store %arg28[%c0_78, %c0_79, %c0_80], %76 {strides = array<i32>} : memref<1x1x48xf32, #tpu.memory_space<vmem>>, vector<1x1x48xf32>,
    return
  }
  func.func @transform_0(%arg0: i32) -> (i32, i32, i32) {
    %c0_i32 = arith.constant 0 : i32
    %c0_i32_0 = arith.constant 0 : i32
    %c0_i32_1 = arith.constant 0 : i32
    return %arg0, %c0_i32, %c0_i32_0 : i32, i32, i32
  }
  func.func @transform_1(%arg0: i32) -> (i32, i32) {
    %c0_i32 = arith.constant 0 : i32
    %c0_i32_0 = arith.constant 0 : i32
    %c0_i32_1 = arith.constant 0 : i32
    return %c0_i32, %c0_i32_0 : i32, i32
  }
  func.func @transform_2(%arg0: i32) -> (i32, i32) {
    %c0_i32 = arith.constant 0 : i32
    %c0_i32_0 = arith.constant 0 : i32
    %c0_i32_1 = arith.constant 0 : i32
    return %c0_i32, %c0_i32_0 : i32, i32
  }
  func.func @transform_3(%arg0: i32) -> (i32, i32) {
    %c0_i32 = arith.constant 0 : i32
    %c0_i32_0 = arith.constant 0 : i32
    %c0_i32_1 = arith.constant 0 : i32
    return %c0_i32, %c0_i32_0 : i32, i32
  }
  func.func @transform_4(%arg0: i32) -> (i32, i32) {
    %c0_i32 = arith.constant 0 : i32
    %c0_i32_0 = arith.constant 0 : i32
    %c0_i32_1 = arith.constant 0 : i32
    return %c0_i32, %c0_i32_0 : i32, i32
  }
  func.func @transform_5(%arg0: i32) -> (i32, i32) {
    %c0_i32 = arith.constant 0 : i32
    %c0_i32_0 = arith.constant 0 : i32
    %c0_i32_1 = arith.constant 0 : i32
    return %c0_i32, %c0_i32_0 : i32, i32
  }
  func.func @transform_6(%arg0: i32) -> (i32, i32) {
    %c0_i32 = arith.constant 0 : i32
    %c0_i32_0 = arith.constant 0 : i32
    %c0_i32_1 = arith.constant 0 : i32
    return %c0_i32, %c0_i32_0 : i32, i32
  }
  func.func @transform_7(%arg0: i32) -> (i32, i32) {
    %c0_i32 = arith.constant 0 : i32
    %c0_i32_0 = arith.constant 0 : i32
    %c0_i32_1 = arith.constant 0 : i32
    return %c0_i32, %c0_i32_0 : i32, i32
  }
  func.func @transform_8(%arg0: i32) -> (i32, i32) {
    %c0_i32 = arith.constant 0 : i32
    %c0_i32_0 = arith.constant 0 : i32
    %c0_i32_1 = arith.constant 0 : i32
    return %c0_i32, %c0_i32_0 : i32, i32
  }
  func.func @transform_9(%arg0: i32) -> (i32, i32) {
    %c0_i32 = arith.constant 0 : i32
    %c0_i32_0 = arith.constant 0 : i32
    %c0_i32_1 = arith.constant 0 : i32
    return %c0_i32, %c0_i32_0 : i32, i32
  }
  func.func @transform_10(%arg0: i32) -> (i32, i32) {
    %c0_i32 = arith.constant 0 : i32
    %c0_i32_0 = arith.constant 0 : i32
    %c0_i32_1 = arith.constant 0 : i32
    return %c0_i32, %c0_i32_0 : i32, i32
  }
  func.func @transform_11(%arg0: i32) -> (i32, i32) {
    %c0_i32 = arith.constant 0 : i32
    %c0_i32_0 = arith.constant 0 : i32
    %c0_i32_1 = arith.constant 0 : i32
    return %c0_i32, %c0_i32_0 : i32, i32
  }
  func.func @transform_12(%arg0: i32) -> (i32, i32) {
    %c0_i32 = arith.constant 0 : i32
    %c0_i32_0 = arith.constant 0 : i32
    %c0_i32_1 = arith.constant 0 : i32
    return %c0_i32, %c0_i32_0 : i32, i32
  }
  func.func @transform_13(%arg0: i32) -> (i32, i32) {
    %c0_i32 = arith.constant 0 : i32
    %c0_i32_0 = arith.constant 0 : i32
    %c0_i32_1 = arith.constant 0 : i32
    return %c0_i32, %c0_i32_0 : i32, i32
  }
  func.func @transform_14(%arg0: i32) -> (i32, i32) {
    %c0_i32 = arith.constant 0 : i32
    %c0_i32_0 = arith.constant 0 : i32
    %c0_i32_1 = arith.constant 0 : i32
    return %c0_i32, %c0_i32_0 : i32, i32
  }
  func.func @transform_15(%arg0: i32) -> (i32, i32) {
    %c0_i32 = arith.constant 0 : i32
    %c0_i32_0 = arith.constant 0 : i32
    %c0_i32_1 = arith.constant 0 : i32
    return %c0_i32, %c0_i32_0 : i32, i32
  }
  func.func @transform_16(%arg0: i32) -> (i32, i32) {
    %c0_i32 = arith.constant 0 : i32
    %c0_i32_0 = arith.constant 0 : i32
    %c0_i32_1 = arith.constant 0 : i32
    return %c0_i32, %c0_i32_0 : i32, i32
  }
  func.func @transform_17(%arg0: i32) -> (i32, i32) {
    %c0_i32 = arith.constant 0 : i32
    %c0_i32_0 = arith.constant 0 : i32
    %c0_i32_1 = arith.constant 0 : i32
    return %c0_i32, %c0_i32_0 : i32, i32
  }
  func.func @transform_18(%arg0: i32) -> (i32, i32) {
    %c0_i32 = arith.constant 0 : i32
    %c0_i32_0 = arith.constant 0 : i32
    %c0_i32_1 = arith.constant 0 : i32
    return %c0_i32, %c0_i32_0 : i32, i32
  }
  func.func @transform_19(%arg0: i32) -> (i32, i32) {
    %c0_i32 = arith.constant 0 : i32
    %c0_i32_0 = arith.constant 0 : i32
    %c0_i32_1 = arith.constant 0 : i32
    return %c0_i32, %c0_i32_0 : i32, i32
  }
  func.func @transform_20(%arg0: i32) -> (i32, i32) {
    %c0_i32 = arith.constant 0 : i32
    %c0_i32_0 = arith.constant 0 : i32
    %c0_i32_1 = arith.constant 0 : i32
    return %c0_i32, %c0_i32_0 : i32, i32
  }
  func.func @transform_21(%arg0: i32) -> (i32, i32) {
    %c0_i32 = arith.constant 0 : i32
    %c0_i32_0 = arith.constant 0 : i32
    %c0_i32_1 = arith.constant 0 : i32
    return %c0_i32, %c0_i32_0 : i32, i32
  }
  func.func @transform_22(%arg0: i32) -> (i32, i32) {
    %c0_i32 = arith.constant 0 : i32
    %c0_i32_0 = arith.constant 0 : i32
    %c0_i32_1 = arith.constant 0 : i32
    return %c0_i32, %c0_i32_0 : i32, i32
  }
  func.func @transform_23(%arg0: i32) -> (i32, i32) {
    %c0_i32 = arith.constant 0 : i32
    %c0_i32_0 = arith.constant 0 : i32
    %c0_i32_1 = arith.constant 0 : i32
    return %c0_i32, %c0_i32_0 : i32, i32
  }
  func.func @transform_24(%arg0: i32) -> (i32, i32) {
    %c0_i32 = arith.constant 0 : i32
    %c0_i32_0 = arith.constant 0 : i32
    %c0_i32_1 = arith.constant 0 : i32
    return %c0_i32, %c0_i32_0 : i32, i32
  }
  func.func @transform_25(%arg0: i32) -> (i32, i32) {
    %c0_i32 = arith.constant 0 : i32
    %c0_i32_0 = arith.constant 0 : i32
    %c0_i32_1 = arith.constant 0 : i32
    return %c0_i32, %c0_i32_0 : i32, i32
  }
  func.func @transform_26(%arg0: i32) -> (i32, i32) {
    %c0_i32 = arith.constant 0 : i32
    %c0_i32_0 = arith.constant 0 : i32
    %c0_i32_1 = arith.constant 0 : i32
    return %c0_i32, %c0_i32_0 : i32, i32
  }
  func.func @transform_27(%arg0: i32) -> (i32, i32, i32) {
    %c0_i32 = arith.constant 0 : i32
    %c0_i32_0 = arith.constant 0 : i32
    %c0_i32_1 = arith.constant 0 : i32
    return %arg0, %c0_i32, %c0_i32_0 : i32, i32, i32
  }
}

</mosaic_0001>

<bundles_post_ra>
// kernel: tpu_custom_call.1
= control target key start
LH: loop header
LB: loop body
LE: loop exit
PB: predicated region body
PF: predicated region fallthrough
CT: control target
= control target key end

     0   :  { %s17154_s0 = inlined_call_operand.hbm [shape: f32[2,1,48], index: 0, kind: input, shape index: {}]   ;;  %s17155_s1 = inlined_call_operand.hbm [shape: f32[48,48], index: 1, kind: input, shape index: {}]   ;;  %s17156_s2 = inlined_call_operand.hbm [shape: f32[24,24], index: 2, kind: input, shape index: {}]   ;;  %s17157_s3 = inlined_call_operand.hbm [shape: f32[24,24], index: 3, kind: input, shape index: {}]   ;;  %s17158_s4 = inlined_call_operand.hbm [shape: f32[24,24], index: 4, kind: input, shape index: {}]   ;;  %s17159_s5 = inlined_call_operand.hbm [shape: f32[24,48], index: 5, kind: input, shape index: {}]   ;;  %s17160_s6 = inlined_call_operand.hbm [shape: f32[24,48], index: 6, kind: input, shape index: {}]   ;;  %s17161_s7 = inlined_call_operand.vmem [shape: f32[24,24], index: 7, kind: input, shape index: {}]   ;;  %s17162_s8 = inlined_call_operand.hbm [shape: f32[12,12], index: 8, kind: input, shape index: {}]   ;;  %s17163_s9 = inlined_call_operand.hbm [shape: f32[12,12], index: 9, kind: input, shape index: {}]   ;;  %s17164_s10 = inlined_call_operand.hbm [shape: f32[12,12], index: 10, kind: input, shape index: {}]   ;;  %s17165_s11 = inlined_call_operand.vmem [shape: f32[12,24], index: 11, kind: input, shape index: {}]   ;;  %s17166_s12 = inlined_call_operand.hbm [shape: f32[12,24], index: 12, kind: input, shape index: {}]   ;;  %s17167_s13 = inlined_call_operand.hbm [shape: f32[12,12], index: 13, kind: input, shape index: {}]   ;;  %s17168_s14 = inlined_call_operand.vmem [shape: f32[6,6], index: 14, kind: input, shape index: {}]   ;;  %s17169_s15 = inlined_call_operand.vmem [shape: f32[6,6], index: 15, kind: input, shape index: {}]   ;;  %s17170_s16 = inlined_call_operand.hbm [shape: f32[6,6], index: 16, kind: input, shape index: {}]   ;;  %s17171_s17 = inlined_call_operand.vmem [shape: f32[6,12], index: 17, kind: input, shape index: {}]   ;;  %s17172_s18 = inlined_call_operand.hbm [shape: f32[6,12], index: 18, kind: input, shape index: {}]   ;;  %s17173_s19 = inlined_call_operand.hbm [shape: f32[6,6], index: 19, kind: input, shape index: {}]   ;;  %s17174_s20 = inlined_call_operand.vmem [shape: f32[3,3], index: 20, kind: input, shape index: {}]   ;;  %s17175_s21 = inlined_call_operand.vmem [shape: f32[3,3], index: 21, kind: input, shape index: {}]   ;;  %s17176_s22 = inlined_call_operand.vmem [shape: f32[3,3], index: 22, kind: input, shape index: {}]   ;;  %s17177_s23 = inlined_call_operand.vmem [shape: f32[3,6], index: 23, kind: input, shape index: {}]   ;;  %s17178_s24 = inlined_call_operand.vmem [shape: f32[3,6], index: 24, kind: input, shape index: {}]   ;;  %s17179_s25 = inlined_call_operand.vmem [shape: f32[3,3], index: 25, kind: input, shape index: {}]   ;;  %s17180_s26 = inlined_call_operand.vmem [shape: f32[1,3], index: 26, kind: input, shape index: {}]   ;;  %s17181_s27 = inlined_call_operand.hbm [shape: f32[2,1,48], index: 27, kind: output, shape index: {}]  }
   0x1   :  { %17205 = sst [smem:[#allocation36_spill]] %s17154_s0 }
   0x2   :  { %17206 = sst [smem:[#allocation37_spill]] %s17155_s1 }
   0x3   :  { %17207 = sst [smem:[#allocation38_spill]] %s17156_s2 }
   0x4   :  { %17208 = sst [smem:[#allocation39_spill]] %s17157_s3 }
   0x5   :  { %17209 = sst [smem:[#allocation40_spill]] %s17158_s4 }
   0x6   :  { %17210 = sst [smem:[#allocation41_spill]] %s17159_s5 }
   0x7   :  { %17211 = sst [smem:[#allocation42_spill]] %s17160_s6 }
   0x8   :  { %17212 = sst [smem:[#allocation43_spill]] %s17161_s7 }
   0x9   :  { %17213 = sst [smem:[#allocation44_spill]] %s17162_s8 }
   0xa   :  { %17214 = sst [smem:[#allocation45_spill]] %s17163_s9 }
   0xb   :  { %17215 = sst [smem:[#allocation46_spill]] %s17164_s10 }
   0xc   :  { %17216 = sst [smem:[#allocation47_spill]] %s17165_s11 }
   0xd   :  { %17217 = sst [smem:[#allocation48_spill]] %s17167_s13 }
   0xe   :  { %17218 = sst [smem:[#allocation49_spill]] %s17168_s14 }
   0xf   :  { %17219 = sst [smem:[#allocation50_spill]] %s17171_s17 }
  0x10   :  { %17220 = sst [smem:[#allocation51_spill]] %s17172_s18 }
  0x11   :  { %17221 = sst [smem:[#allocation52_spill]] %s17174_s20 }
  0x12   :  { %17222 = sst [smem:[#allocation53_spill]] %s17175_s21 }
  0x13   :  { %17223 = sst [smem:[#allocation54_spill]] %s17176_s22 }
  0x14   :  { %17224 = sst [smem:[#allocation55_spill]] %s17177_s23 }
  0x15   :  { %17225 = sst [smem:[#allocation56_spill]] %s17178_s24 }
  0x16   :  { %17226 = sst [smem:[#allocation57_spill]] %s17179_s25 }
  0x17   :  { %17227 = sst [smem:[#allocation58_spill]] %s17180_s26 }
  0x18   :  { %17228 = sst [smem:[#allocation59_spill]] %s17181_s27 }
  0x19   :  { %32 = vsyncpa [#allocation3], 0 }
  0x1a   :  { %34 = vsyncpa [#allocation3 + $0x1], 0 }
  0x1b   :  { %35 = vsyncpa [#allocation6], 0 }
  0x1c   :  { %36 = vsyncpa [#allocation9], 0 }
  0x1d   :  { %37 = vsyncpa [#allocation12], 0 }
  0x1e   :  { %38 = vsyncpa [#allocation15], 0 }
  0x1f   :  { %39 = vsyncpa [#allocation18], 0 }
  0x20   :  { %40 = vsyncpa [#allocation21], 0 }
  0x21   :  { %41 = vsyncpa [#allocation24], 0 }
  0x22   :  { %42 = vsyncpa [#allocation4], 0 }
  0x23   :  { %44 = vsyncpa [#allocation4 + $0x1], 0  ;;  %s15781_s7 = smov 0   ;;  %s15783_s4 = smov 0  }
  0x24   :  { %s15785_s8 = smov 0   ;;  %s15787_s30 = smov 0  }
  0x25 LB: > { %s15616_s9 = smov [#allocation5]   ;;  %s15802_s28 = sadd.s32 4294967295, %s15614_s30   ;;  %s15614_s30 = sphi %s15787_s30, %s17284_s30   ;;  %s15610_s8 = sphi %s15785_s8, %s17283_s8   ;;  %s15606_s4 = sphi %s15783_s4, %s17282_s4   ;;  %s15602_s7 = sphi %s15781_s7, %s17281_s7  }
  0x26   : > { %s665_s5 = sshll.u32 %s15616_s9, 4  ;;  %p12859_p0 = scmp.ge.s32.totalorder %s15614_s30, 1  ;;  %s15807_s5 = int_to_ptr.vmem [resolvable:$true] %s665_s5 }
  0x27   : > { %p17197_p1 = scmp.eq.s32.totalorder %s15802_s28, 0  ;;  %p653_p2 = scmp.lt.s32.totalorder %s15614_s30, 3 }
  0x28   : > { %s15617_s10 = smov [#allocation8]   ;;  %s15618_s6 = smov [#allocation11]  }
  0x29   : > { %p15809_p3 = pnand %p12859_p0, %p653_p2  ;;  %s691_s29 = sshll.u32 %s15617_s10, 4  ;;  %s15822_s29 = int_to_ptr.vmem [resolvable:$true] %s691_s29 }
  0x2a   : > { %s717_s11 = sshll.u32 %s15618_s6, 4  ;;  %s17231_s9 = sld [smem:[#allocation37_spill]]  ;;  %s15824_s11 = int_to_ptr.vmem [resolvable:$true] %s717_s11 }
  0x2b   : > { %s17229_s0 = scalar_select %p15809_p3, 1, 0 }
  0x2c   : > { %p14962_p5 = pneg %p15809_p3 }
  0x2e   : > { %p15818_p6 = pnand %p14962_p5, %p17197_p1 }
  0x30   : > { %s15098_s27 = scalar_lea.hbm %s17231_s9, 768  ;;  %p15834_p8 = pneg %p15818_p6 }
  0x31   : > { %p15099_p7 = scmp.ne.s32.totalorder %s17231_s9, %s15098_s27  ;;  %p15105_p11 = scmp.lt.u32.totalorder %s15098_s27, %s17231_s9 }
  0x33   : > { %p15101_p9 = pnand %p15834_p8, %p15099_p7 }
  0x35   : > { %p15102_p10 = pneg %p15101_p9 }
  0x37   : > { %p15107_p12 = pnand %p15105_p11, %p15102_p10 }
  0x39   : > { %15110 = shalt.err (!%p15107_p12)
}
  0x3a   : > { %s15111_s17 = scalar_lea.vmem %s15807_s5, 768  ;;  %p15119_p5 = scmp.lt.s32.totalorder %s15807_s5, %s15807_s5 }
  0x3b   : > { %p15112_p13 = scmp.ne.s32.totalorder %s15807_s5, %s15111_s17  ;;  %p15120_p4 = scmp.lt.s32.totalorder %s15111_s17, %s15111_s17 }
  0x3d   : > { %p15114_p0 = pnand %p15112_p13, %p15834_p8  ;;  %p15121_p7 = por %p15120_p4, %p15119_p5 }
  0x3f   : > { %p15115_p2 = pneg %p15114_p0 }
  0x41   : > { %p15122_p9 = pnand %p15121_p7, %p15115_p2 }
  0x43   : > { %15125 = shalt.err (!%p15122_p9)
}
  0x44   : > { %s17200_s23 = smov 128   ;;  %s15620_s26 = smov 8  }
  0x45   : > { %14965 = dma.hbm_to_vmem [thread:$0]  (!%p15818_p6), %s17231_s9, 768, %s15807_s5, [#allocation6], %s17200_s23, %s17200_s23, %s15620_s26  }
  0x46   : > { %s17233_s24 = sld [smem:[#allocation39_spill]] }
  0x4c   : > { %s15126_s17 = scalar_lea.hbm %s17233_s24, 384 }
  0x4d   : > { %p15127_p4 = scmp.ne.s32.totalorder %s17233_s24, %s15126_s17  ;;  %p15133_p12 = scmp.lt.u32.totalorder %s15126_s17, %s17233_s24 }
  0x4f   : > { %p15129_p10 = pnand %p15127_p4, %p15834_p8 }
  0x51   : > { %p15130_p11 = pneg %p15129_p10 }
  0x53   : > { %p15135_p13 = pnand %p15133_p12, %p15130_p11 }
  0x55   : > { %15138 = shalt.err (!%p15135_p13)
}
  0x56   : > { %s15139_s5 = scalar_lea.vmem %s15822_s29, 384  ;;  %p15147_p7 = scmp.lt.s32.totalorder %s15822_s29, %s15822_s29 }
  0x57   : > { %p15140_p0 = scmp.ne.s32.totalorder %s15822_s29, %s15139_s5  ;;  %p15148_p9 = scmp.lt.s32.totalorder %s15139_s5, %s15139_s5 }
  0x59   : > { %p15142_p2 = pnand %p15140_p0, %p15834_p8  ;;  %p15149_p4 = por %p15148_p9, %p15147_p7 }
  0x5b   : > { %p15143_p5 = pneg %p15142_p2 }
  0x5d   : > { %p15150_p10 = pnand %p15149_p4, %p15143_p5 }
  0x5f   : > { %15153 = shalt.err (!%p15150_p10)
}
  0x60   : > { %14971 = dma.hbm_to_vmem [thread:$0]  (!%p15818_p6), %s17233_s24, 384, %s15822_s29, [#allocation9], %s17200_s23, %s17200_s23, %s15620_s26  }
  0x61   : > { %s17234_s27 = sld [smem:[#allocation41_spill]] }
  0x67   : > { %s15154_s2 = scalar_lea.hbm %s17234_s27, 384 }
  0x68   : > { %p15155_p11 = scmp.ne.s32.totalorder %s17234_s27, %s15154_s2  ;;  %p15161_p0 = scmp.lt.u32.totalorder %s15154_s2, %s17234_s27 }
  0x6a   : > { %p15157_p12 = pnand %p15155_p11, %p15834_p8 }
  0x6c   : > { %p15158_p13 = pneg %p15157_p12 }
  0x6e   : > { %p15163_p2 = pnand %p15161_p0, %p15158_p13 }
  0x70   : > { %15166 = shalt.err (!%p15163_p2)
}
  0x71   : > { %s15167_s29 = scalar_lea.vmem %s15824_s11, 384  ;;  %p15175_p4 = scmp.lt.s32.totalorder %s15824_s11, %s15824_s11 }
  0x72   : > { %p15168_p5 = scmp.ne.s32.totalorder %s15824_s11, %s15167_s29  ;;  %p15176_p10 = scmp.lt.s32.totalorder %s15167_s29, %s15167_s29 }
  0x74   : > { %p15170_p7 = pnand %p15168_p5, %p15834_p8  ;;  %p15177_p11 = por %p15176_p10, %p15175_p4 }
  0x76   : > { %p15171_p9 = pneg %p15170_p7 }
  0x78   : > { %p15178_p12 = pnand %p15177_p11, %p15171_p9 }
  0x7a   : > { %15181 = shalt.err (!%p15178_p12)
}
  0x7b   : > { %14977 = dma.hbm_to_vmem [thread:$0]  (!%p15818_p6), %s17234_s27, 384, %s15824_s11, [#allocation12], %s17200_s23, %s17200_s23, %s15620_s26  }
  0x7c   : > { %s15621_s22 = smov [#allocation14]   ;;  %s15622_s2 = smov [#allocation17]  }
  0x7d   : > { %s746_s25 = sshll.u32 %s15621_s22, 4  ;;  %s772_s3 = sshll.u32 %s15622_s2, 4  ;;  %s747_s25 = int_to_ptr.vmem [resolvable:$true] %s746_s25  ;;  %s773_s3 = int_to_ptr.vmem [resolvable:$true] %s772_s3 }
  0x7e   : > { %s17235_s5 = sld [smem:[#allocation44_spill]] }
  0x84   : > { %s15182_s29 = scalar_lea.hbm %s17235_s5, 256 }
  0x85   : > { %p15183_p13 = scmp.ne.s32.totalorder %s17235_s5, %s15182_s29  ;;  %p15189_p5 = scmp.lt.u32.totalorder %s15182_s29, %s17235_s5 }
  0x87   : > { %p15185_p0 = pnand %p15183_p13, %p15834_p8 }
  0x89   : > { %p15186_p2 = pneg %p15185_p0 }
  0x8b   : > { %p15191_p7 = pnand %p15189_p5, %p15186_p2 }
  0x8d   : > { %15194 = shalt.err (!%p15191_p7)
}
  0x8e   : > { %s15195_s11 = scalar_lea.vmem %s747_s25, 256  ;;  %p15203_p11 = scmp.lt.s32.totalorder %s747_s25, %s747_s25 }
  0x8f   : > { %p15196_p9 = scmp.ne.s32.totalorder %s747_s25, %s15195_s11  ;;  %p15204_p12 = scmp.lt.s32.totalorder %s15195_s11, %s15195_s11 }
  0x91   : > { %p15198_p4 = pnand %p15196_p9, %p15834_p8  ;;  %p15205_p1 = por %p15204_p12, %p15203_p11 }
  0x93   : > { %p15199_p10 = pneg %p15198_p4 }
  0x95   : > { %p15206_p3 = pnand %p15205_p1, %p15199_p10 }
  0x97   : > { %15209 = shalt.err (!%p15206_p3)
}
  0x98   : > { %14983 = dma.hbm_to_vmem [thread:$0]  (!%p15818_p6), %s17235_s5, 256, %s747_s25, [#allocation15], %s17200_s23, %s17200_s23, %s15620_s26  }
  0x99   : > { %s17236_s22 = sld [smem:[#allocation46_spill]] }
  0x9f   : > { %s15210_s2 = scalar_lea.hbm %s17236_s22, 256 }
  0xa0   : > { %p15211_p1 = scmp.ne.s32.totalorder %s17236_s22, %s15210_s2  ;;  %p15217_p0 = scmp.lt.u32.totalorder %s15210_s2, %s17236_s22 }
  0xa2   : > { %p15213_p3 = pnand %p15211_p1, %p15834_p8 }
  0xa4   : > { %p15214_p13 = pneg %p15213_p3 }
  0xa6   : > { %p15219_p2 = pnand %p15217_p0, %p15214_p13 }
  0xa8   : > { %15222 = shalt.err (!%p15219_p2)
}
  0xa9   : > { %s15223_s11 = scalar_lea.vmem %s773_s3, 256  ;;  %p15231_p4 = scmp.lt.s32.totalorder %s773_s3, %s773_s3 }
  0xaa   : > { %p15224_p5 = scmp.ne.s32.totalorder %s773_s3, %s15223_s11  ;;  %p15232_p10 = scmp.lt.s32.totalorder %s15223_s11, %s15223_s11 }
  0xac   : > { %p15226_p7 = pnand %p15224_p5, %p15834_p8  ;;  %p15233_p11 = por %p15232_p10, %p15231_p4 }
  0xae   : > { %p15227_p9 = pneg %p15226_p7 }
  0xb0   : > { %p15234_p12 = pnand %p15233_p11, %p15227_p9 }
  0xb2   : > { %15237 = shalt.err (!%p15234_p12)
}
  0xb3   : > { %14989 = dma.hbm_to_vmem [thread:$0]  (!%p15818_p6), %s17236_s22, 256, %s773_s3, [#allocation18], %s17200_s23, %s17200_s23, %s15620_s26  }
  0xb4   : > { %s15623_s24 = smov [#allocation20]   ;;  %s15624_s21 = smov [#allocation23]  }
  0xb5   : > { %s801_s9 = sshll.u32 %s15623_s24, 4  ;;  %s835_s2 = sshll.u32 %s15624_s21, 4  ;;  %s802_s9 = int_to_ptr.vmem [resolvable:$true] %s801_s9  ;;  %s836_s2 = int_to_ptr.vmem [resolvable:$true] %s835_s2 }
  0xb6   : > { %s17237_s13 = sld [smem:[#allocation48_spill]] }
  0xbc   : > { %s15238_s29 = scalar_lea.hbm %s17237_s13, 256 }
  0xbd   : > { %p15239_p1 = scmp.ne.s32.totalorder %s17237_s13, %s15238_s29  ;;  %p15245_p0 = scmp.lt.u32.totalorder %s15238_s29, %s17237_s13 }
  0xbf   : > { %p15241_p3 = pnand %p15239_p1, %p15834_p8 }
  0xc1   : > { %p15242_p13 = pneg %p15241_p3 }
  0xc3   : > { %p15247_p2 = pnand %p15245_p0, %p15242_p13 }
  0xc5   : > { %15250 = shalt.err (!%p15247_p2)
}
  0xc6   : > { %s15251_s3 = scalar_lea.vmem %s802_s9, 256  ;;  %p15259_p4 = scmp.lt.s32.totalorder %s802_s9, %s802_s9 }
  0xc7   : > { %p15252_p5 = scmp.ne.s32.totalorder %s802_s9, %s15251_s3  ;;  %p15260_p10 = scmp.lt.s32.totalorder %s15251_s3, %s15251_s3 }
  0xc9   : > { %p15254_p7 = pnand %p15252_p5, %p15834_p8  ;;  %p15261_p11 = por %p15260_p10, %p15259_p4 }
  0xcb   : > { %p15255_p9 = pneg %p15254_p7 }
  0xcd   : > { %p15262_p12 = pnand %p15261_p11, %p15255_p9 }
  0xcf   : > { %15265 = shalt.err (!%p15262_p12)
}
  0xd0   : > { %14995 = dma.hbm_to_vmem [thread:$0]  (!%p15818_p6), %s17237_s13, 256, %s802_s9, [#allocation21], %s17200_s23, %s17200_s23, %s15620_s26  }
  0xd1   : > { %s17238_s18 = sld [smem:[#allocation51_spill]] }
  0xd7   : > { %s15266_s6 = scalar_lea.hbm %s17238_s18, 128 }
  0xd8   : > { %p15267_p1 = scmp.ne.s32.totalorder %s17238_s18, %s15266_s6  ;;  %p15273_p0 = scmp.lt.u32.totalorder %s15266_s6, %s17238_s18 }
  0xda   : > { %p15269_p3 = pnand %p15267_p1, %p15834_p8 }
  0xdc   : > { %p15270_p13 = pneg %p15269_p3 }
  0xde   : > { %p15275_p2 = pnand %p15273_p0, %p15270_p13 }
  0xe0   : > { %15278 = shalt.err (!%p15275_p2)
}
  0xe1   : > { %s15279_s25 = scalar_lea.vmem %s836_s2, 128  ;;  %p15287_p4 = scmp.lt.s32.totalorder %s836_s2, %s836_s2 }
  0xe2   : > { %p15280_p5 = scmp.ne.s32.totalorder %s836_s2, %s15279_s25  ;;  %p15288_p10 = scmp.lt.s32.totalorder %s15279_s25, %s15279_s25 }
  0xe4   : > { %p15282_p7 = pnand %p15280_p5, %p15834_p8  ;;  %p15289_p11 = por %p15288_p10, %p15287_p4 }
  0xe6   : > { %p15283_p9 = pneg %p15282_p7 }
  0xe8   : > { %p15290_p12 = pnand %p15289_p11, %p15283_p9 }
  0xea   : > { %15293 = shalt.err (!%p15290_p12)
}
  0xeb   : > { %15001 = dma.hbm_to_vmem [thread:$0]  (!%p15818_p6), %s17238_s18, 128, %s836_s2, [#allocation24]  }
  0xec   : > { %s15625_s5 = smov [#allocation7]   ;;  %s15626_s24 = smov [#allocation10]  }
  0xed   : > { %s678_s14 = sshll.u32 %s15625_s5, 4  ;;  %s704_s21 = sshll.u32 %s15626_s24, 4  ;;  %s679_s14 = int_to_ptr.vmem [resolvable:$true] %s678_s14  ;;  %s705_s21 = int_to_ptr.vmem [resolvable:$true] %s704_s21 }
  0xee   : > { %s17239_s29 = sld [smem:[#allocation38_spill]] }
  0xf4   : > { %s15294_s20 = scalar_lea.hbm %s17239_s29, 384 }
  0xf5   : > { %p15295_p1 = scmp.ne.s32.totalorder %s17239_s29, %s15294_s20  ;;  %p15301_p0 = scmp.lt.u32.totalorder %s15294_s20, %s17239_s29 }
  0xf7   : > { %p15297_p3 = pnand %p15295_p1, %p15834_p8 }
  0xf9   : > { %p15298_p13 = pneg %p15297_p3 }
  0xfb   : > { %p15303_p2 = pnand %p15301_p0, %p15298_p13 }
  0xfd   : > { %15306 = shalt.err (!%p15303_p2)
}
  0xfe   : > { %s15307_s2 = scalar_lea.vmem %s679_s14, 384  ;;  %p15315_p4 = scmp.lt.s32.totalorder %s679_s14, %s679_s14 }
  0xff   : > { %p15308_p5 = scmp.ne.s32.totalorder %s679_s14, %s15307_s2  ;;  %p15316_p10 = scmp.lt.s32.totalorder %s15307_s2, %s15307_s2 }
 0x101   : > { %p15310_p7 = pnand %p15308_p5, %p15834_p8  ;;  %p15317_p11 = por %p15316_p10, %p15315_p4 }
 0x103   : > { %p15311_p9 = pneg %p15310_p7 }
 0x105   : > { %p15318_p12 = pnand %p15317_p11, %p15311_p9 }
 0x107   : > { %15321 = shalt.err (!%p15318_p12)
}
 0x108   : > { %s17240_s3 = smov 128   ;;  %s17241_s17 = sld [smem:[#allocation40_spill]] }
 0x109   : > { %14968 = dma.hbm_to_vmem [thread:$0]  (!%p15818_p6), %s17239_s29, 384, %s679_s14, [#allocation6], %s17240_s3, %s17240_s3, %s15620_s26  }
 0x10e   : > { %s15322_s20 = scalar_lea.hbm %s17241_s17, 384 }
 0x10f   : > { %p15323_p1 = scmp.ne.s32.totalorder %s17241_s17, %s15322_s20  ;;  %p15329_p0 = scmp.lt.u32.totalorder %s15322_s20, %s17241_s17 }
 0x111   : > { %p15325_p3 = pnand %p15323_p1, %p15834_p8 }
 0x113   : > { %p15326_p13 = pneg %p15325_p3 }
 0x115   : > { %p15331_p2 = pnand %p15329_p0, %p15326_p13 }
 0x117   : > { %15334 = shalt.err (!%p15331_p2)
}
 0x118   : > { %s15335_s23 = scalar_lea.vmem %s705_s21, 384  ;;  %p15343_p4 = scmp.lt.s32.totalorder %s705_s21, %s705_s21 }
 0x119   : > { %p15336_p5 = scmp.ne.s32.totalorder %s705_s21, %s15335_s23  ;;  %p15344_p10 = scmp.lt.s32.totalorder %s15335_s23, %s15335_s23 }
 0x11b   : > { %p15338_p7 = pnand %p15336_p5, %p15834_p8  ;;  %p15345_p11 = por %p15344_p10, %p15343_p4 }
 0x11d   : > { %p15339_p9 = pneg %p15338_p7 }
 0x11f   : > { %p15346_p12 = pnand %p15345_p11, %p15339_p9 }
 0x121   : > { %15349 = shalt.err (!%p15346_p12)
}
 0x122   : > { %14974 = dma.hbm_to_vmem [thread:$0]  (!%p15818_p6), %s17241_s17, 384, %s705_s21, [#allocation9], %s17240_s3, %s17240_s3, %s15620_s26  }
 0x123   : > { %s15627_s24 = smov [#allocation13]   ;;  %s15628_s20 = smov [#allocation16]  }
 0x124   : > { %s730_s6 = sshll.u32 %s15627_s24, 4  ;;  %s759_s11 = sshll.u32 %s15628_s20, 4  ;;  %s731_s6 = int_to_ptr.vmem [resolvable:$true] %s730_s6  ;;  %s760_s11 = int_to_ptr.vmem [resolvable:$true] %s759_s11 }
 0x125   : > { %s17242_s2 = sld [smem:[#allocation42_spill]] }
 0x12b   : > { %s15350_s23 = scalar_lea.hbm %s17242_s2, 384 }
 0x12c   : > { %p15351_p1 = scmp.ne.s32.totalorder %s17242_s2, %s15350_s23  ;;  %p15357_p0 = scmp.lt.u32.totalorder %s15350_s23, %s17242_s2 }
 0x12e   : > { %p15353_p3 = pnand %p15351_p1, %p15834_p8 }
 0x130   : > { %p15354_p13 = pneg %p15353_p3 }
 0x132   : > { %p15359_p2 = pnand %p15357_p0, %p15354_p13 }
 0x134   : > { %15362 = shalt.err (!%p15359_p2)
}
 0x135   : > { %s15363_s21 = scalar_lea.vmem %s731_s6, 384  ;;  %p15371_p4 = scmp.lt.s32.totalorder %s731_s6, %s731_s6 }
 0x136   : > { %p15364_p5 = scmp.ne.s32.totalorder %s731_s6, %s15363_s21  ;;  %p15372_p10 = scmp.lt.s32.totalorder %s15363_s21, %s15363_s21 }
 0x138   : > { %p15366_p7 = pnand %p15364_p5, %p15834_p8  ;;  %p15373_p11 = por %p15372_p10, %p15371_p4 }
 0x13a   : > { %p15367_p9 = pneg %p15366_p7 }
 0x13c   : > { %p15374_p12 = pnand %p15373_p11, %p15367_p9 }
 0x13e   : > { %15377 = shalt.err (!%p15374_p12)
}
 0x13f   : > { %14980 = dma.hbm_to_vmem [thread:$0]  (!%p15818_p6), %s17242_s2, 384, %s731_s6, [#allocation12], %s17240_s3, %s17240_s3, %s15620_s26  }
 0x140   : > { %s17243_s24 = sld [smem:[#allocation45_spill]] }
 0x146   : > { %s15378_s20 = scalar_lea.hbm %s17243_s24, 256 }
 0x147   : > { %p15379_p1 = scmp.ne.s32.totalorder %s17243_s24, %s15378_s20  ;;  %p15385_p0 = scmp.lt.u32.totalorder %s15378_s20, %s17243_s24 }
 0x149   : > { %p15381_p3 = pnand %p15379_p1, %p15834_p8 }
 0x14b   : > { %p15382_p13 = pneg %p15381_p3 }
 0x14d   : > { %p15387_p2 = pnand %p15385_p0, %p15382_p13 }
 0x14f   : > { %15390 = shalt.err (!%p15387_p2)
}
 0x150   : > { %s15391_s21 = scalar_lea.vmem %s760_s11, 256  ;;  %p15399_p4 = scmp.lt.s32.totalorder %s760_s11, %s760_s11 }
 0x151   : > { %p15392_p5 = scmp.ne.s32.totalorder %s760_s11, %s15391_s21  ;;  %p15400_p10 = scmp.lt.s32.totalorder %s15391_s21, %s15391_s21 }
 0x153   : > { %p15394_p7 = pnand %p15392_p5, %p15834_p8  ;;  %p15401_p11 = por %p15400_p10, %p15399_p4 }
 0x155   : > { %p15395_p9 = pneg %p15394_p7 }
 0x157   : > { %p15402_p12 = pnand %p15401_p11, %p15395_p9 }
 0x159   : > { %15405 = shalt.err (!%p15402_p12)
}
 0x15a   : > { %14986 = dma.hbm_to_vmem [thread:$0]  (!%p15818_p6), %s17243_s24, 256, %s760_s11, [#allocation15], %s17240_s3, %s17240_s3, %s15620_s26  }
 0x15b   : > { %s15629_s18 = smov [#allocation19]   ;;  %s15630_s5 = smov [#allocation22]  }
 0x15c   : > { %s788_s22 = sshll.u32 %s15629_s18, 4  ;;  %s821_s20 = sshll.u32 %s15630_s5, 4  ;;  %s789_s22 = int_to_ptr.vmem [resolvable:$true] %s788_s22  ;;  %s822_s20 = int_to_ptr.vmem [resolvable:$true] %s821_s20 }
 0x15d   : > { %s15406_s23 = scalar_lea.hbm %s17166_s12, 256 }
 0x15e   : > { %p15407_p1 = scmp.ne.s32.totalorder %s17166_s12, %s15406_s23  ;;  %p15413_p0 = scmp.lt.u32.totalorder %s15406_s23, %s17166_s12 }
 0x160   : > { %p15409_p3 = pnand %p15407_p1, %p15834_p8 }
 0x162   : > { %p15410_p13 = pneg %p15409_p3 }
 0x164   : > { %p15415_p2 = pnand %p15413_p0, %p15410_p13 }
 0x166   : > { %15418 = shalt.err (!%p15415_p2)
}
 0x167   : > { %s15419_s11 = scalar_lea.vmem %s789_s22, 256  ;;  %p15427_p4 = scmp.lt.s32.totalorder %s789_s22, %s789_s22 }
 0x168   : > { %p15420_p5 = scmp.ne.s32.totalorder %s789_s22, %s15419_s11  ;;  %p15428_p10 = scmp.lt.s32.totalorder %s15419_s11, %s15419_s11 }
 0x16a   : > { %p15422_p7 = pnand %p15420_p5, %p15834_p8  ;;  %p15429_p11 = por %p15428_p10, %p15427_p4 }
 0x16c   : > { %p15423_p9 = pneg %p15422_p7 }
 0x16e   : > { %p15430_p12 = pnand %p15429_p11, %p15423_p9 }
 0x170   : > { %15433 = shalt.err (!%p15430_p12)
}
 0x171   : > { %14992 = dma.hbm_to_vmem [thread:$0]  (!%p15818_p6), %s17166_s12, 256, %s789_s22, [#allocation18], %s17240_s3, %s17240_s3, %s15620_s26  }
 0x172   : > { %s15434_s25 = scalar_lea.hbm %s17170_s16, 128 }
 0x173   : > { %p15435_p1 = scmp.ne.s32.totalorder %s17170_s16, %s15434_s25  ;;  %p15441_p0 = scmp.lt.u32.totalorder %s15434_s25, %s17170_s16 }
 0x175   : > { %p15437_p3 = pnand %p15435_p1, %p15834_p8 }
 0x177   : > { %p15438_p13 = pneg %p15437_p3 }
 0x179   : > { %p15443_p2 = pnand %p15441_p0, %p15438_p13 }
 0x17b   : > { %15446 = shalt.err (!%p15443_p2)
}
 0x17c   : > { %s15447_s6 = scalar_lea.vmem %s822_s20, 128  ;;  %p15455_p4 = scmp.lt.s32.totalorder %s822_s20, %s822_s20 }
 0x17d   : > { %p15448_p5 = scmp.ne.s32.totalorder %s822_s20, %s15447_s6  ;;  %p15456_p10 = scmp.lt.s32.totalorder %s15447_s6, %s15447_s6 }
 0x17f   : > { %p15450_p7 = pnand %p15448_p5, %p15834_p8  ;;  %p15457_p11 = por %p15456_p10, %p15455_p4 }
 0x181   : > { %p15451_p9 = pneg %p15450_p7 }
 0x183   : > { %p15458_p12 = pnand %p15457_p11, %p15451_p9 }
 0x185   : > { %15461 = shalt.err (!%p15458_p12)
}
 0x186   : > { %14998 = dma.hbm_to_vmem [thread:$0]  (!%p15818_p6), %s17170_s16, 128, %s822_s20, [#allocation21]  }
 0x187   : > { %s15631_s22 = smov [#allocation25]   ;;  %s15462_s18 = scalar_lea.hbm %s17173_s19, 128 }
 0x188   : > { %s846_s11 = sshll.u32 %s15631_s22, 4  ;;  %p15463_p1 = scmp.ne.s32.totalorder %s17173_s19, %s15462_s18  ;;  %s847_s11 = int_to_ptr.vmem [resolvable:$true] %s846_s11 }
 0x189   : > { %p15469_p0 = scmp.lt.u32.totalorder %s15462_s18, %s17173_s19 }
 0x18a   : > { %p15465_p3 = pnand %p15463_p1, %p15834_p8 }
 0x18c   : > { %p15466_p13 = pneg %p15465_p3 }
 0x18e   : > { %p15471_p2 = pnand %p15469_p0, %p15466_p13 }
 0x190   : > { %15474 = shalt.err (!%p15471_p2)
}
 0x191   : > { %s15475_s20 = scalar_lea.vmem %s847_s11, 128  ;;  %p15483_p4 = scmp.lt.s32.totalorder %s847_s11, %s847_s11 }
 0x192   : > { %p15476_p5 = scmp.ne.s32.totalorder %s847_s11, %s15475_s20  ;;  %p15484_p10 = scmp.lt.s32.totalorder %s15475_s20, %s15475_s20 }
 0x194   : > { %p15478_p7 = pnand %p15476_p5, %p15834_p8  ;;  %p15485_p11 = por %p15484_p10, %p15483_p4 }
 0x196   : > { %p15479_p9 = pneg %p15478_p7 }
 0x198   : > { %p15486_p12 = pnand %p15485_p11, %p15479_p9 }
 0x19a   : > { %15489 = shalt.err (!%p15486_p12)
}
 0x19b   : > { %15004 = dma.hbm_to_vmem [thread:$0]  (!%p15818_p6), %s17173_s19, 128, %s847_s11, [#allocation24]  }
 0x19c   : > { %s12858_s10 = sadd.s32 4294967294, %s15614_s30   ;;  %s16134_s1 = sadd.s32 1, %s15614_s30  }
 0x19d   : > { %s54_s6 = ssub.s32 %s15614_s30, %s16134_s1  ;;  %s57_s26 = sadd.s32 1, %s15610_s8 }
 0x19e   : > { %p55_p8 = scmp.eq.s32.totalorder %s54_s6, 0  ;;  %p64_p1 = scmp.ne.s32.totalorder %s15610_s8, %s15606_s4 }
 0x19f   : > { %p65_p3 = scmp.eq.s32.totalorder %s15614_s30, 0  ;;  %p70_p13 = scmp.ne.s32.totalorder %s15606_s4, %s15602_s7 }
 0x1a0   : > { %s16145_s3 = scalar_select %p55_p8, %s15610_s8, %s57_s26  }
 0x1a1   : > { %p16147_p0 = por %p65_p3, %p64_p1  ;;  %p17245_p2 = scmp.eq.s32.totalorder %s15802_s28, 0 }
 0x1a2   : > { %p640_p5 = scmp.eq.s32.totalorder %s15802_s28, 1  ;;  %p646_p7 = scmp.eq.s32.totalorder %s12858_s10, 1 }
 0x1a3   : > { %p16153_p6 = por %p17245_p2, %p70_p13  ;;  %p15027_p9 = scmp.lt.s32.totalorder %s15614_s30, 2 }
 0x1a4   : > { %s878_s2 = sand.u32 1, %s15610_s8   ;;  %p16160_p4 = por %p640_p5, %p64_p1 }
 0x1a5   : > { %p16164_p10 = por %p646_p7, %p70_p13  ;;  %s12875_s5 = sshll.u32 %s15614_s30, 4 }
 0x1a6   : > { %s17247_s13 = scalar_select %p16160_p4, 1, 0 }
 0x1a7   : > { %s17248_s18 = scalar_select %p16164_p10, 1, 0 }
 0x1a8   : > { %s881_s25 = scalar_lea.vmem [#allocation2], %s878_s2  ;;  %s17249_s14 = sld [smem:[#allocation36_spill]] }
 0x1a9   : > { %s888_s9 = sshll.u32 %s881_s25, 4  ;;  %p16178_p11 = pnand %p15027_p9, %p16147_p0  ;;  %s16174_s9 = int_to_ptr.vmem [resolvable:$true] %s888_s9 }
 0x1aa   : > { %s879_s6 = scalar_lea.sflag [#allocation3], %s878_s2 }
 0x1ab   : > { %p15492_p8 = pneg %p16178_p11 }
 0x1ae   : > { %s16172_s21 = scalar_lea.hbm %s17249_s14, %s12875_s5  ;;  %s15495_s23 = scalar_lea.hbm %s17249_s14, 32 }
 0x1af   : > { %s15490_s26 = scalar_lea.hbm %s16172_s21, 16  ;;  %p15496_p13 = scmp.lt.u32.totalorder %s16172_s21, %s17249_s14 }
 0x1b0   : > { %p15491_p12 = scmp.ne.s32.totalorder %s16172_s21, %s15490_s26  ;;  %p15497_p0 = scmp.lt.u32.totalorder %s15495_s23, %s15490_s26 }
 0x1b1   : > { %p15499_p5 = scmp.lt.u32.totalorder %s15490_s26, %s16172_s21 }
 0x1b2   : > { %p15493_p1 = pnand %p15492_p8, %p15491_p12  ;;  %p15498_p2 = por %p15497_p0, %p15496_p13 }
 0x1b4   : > { %p15494_p3 = pneg %p15493_p1  ;;  %p15500_p7 = por %p15499_p5, %p15498_p2 }
 0x1b6   : > { %p15501_p9 = pnand %p15500_p7, %p15494_p3 }
 0x1b8   : > { %15504 = shalt.err (!%p15501_p9)
}
 0x1b9   : > { %s15505_s2 = scalar_lea.vmem %s16174_s9, 16  ;;  %s15632_s5 = smov [#allocation2]  }
 0x1ba   : > { %p15506_p12 = scmp.ne.s32.totalorder %s16174_s9, %s15505_s2  ;;  %s15510_s25 = sshll.u32 %s15632_s5, 4  ;;  %s15511_s25 = int_to_ptr.vmem [resolvable:$false] %s15510_s25 }
 0x1bb   : > { %s15512_s22 = scalar_lea.vmem %s15511_s25, 32  ;;  %p15513_p4 = scmp.lt.s32.totalorder %s16174_s9, %s15511_s25 }
 0x1bc   : > { %p15508_p1 = pnand %p15506_p12, %p15492_p8  ;;  %p15514_p13 = scmp.lt.s32.totalorder %s15512_s22, %s15505_s2 }
 0x1be   : > { %p15509_p10 = pneg %p15508_p1  ;;  %p15515_p0 = por %p15514_p13, %p15513_p4 }
 0x1c0   : > { %p15516_p2 = pnand %p15515_p0, %p15509_p10 }
 0x1c2   : > { %15519 = shalt.err (!%p15516_p2)
}
 0x1c3   : > { %15008 = dma.hbm_to_vmem [thread:$0]  (!%p16178_p11), %s16172_s21, 16, %s16174_s9, %s879_s6  }
 0x1c4   : > { %p17251_p3 = scmp.ne.s32.totalorder %s17229_s0, 0 }
 0x1c5   : > { %s16210_s26 = sand.u32 (!%p17251_p3), 1, %s15606_s4  }
 0x1c6   : > { %897 = sbr.rel (%p17251_p3) target bundleno = 3539 (0xdd3), region = 128  ;;  %s900_s23 = scalar_lea.sflag (!%p17251_p3), [#allocation3], %s16210_s26 }
 0x1c7   : > { %s902_s20 = scalar_lea.vmem (!%p17251_p3), [#allocation2], %s16210_s26 }
 0x1cd   : > { %15565 = dma.done.wait (%p16153_p6), %s900_s23, 16  }
 0x1ce   : > { %15567 = vsyncadd (%p16153_p6), %s900_s23, 4294967280  ;;  %p17252_p4 = scmp.eq.s32.totalorder %s15802_s28, 0 }
 0x1d0   : > { %15569 = dma.done.wait (%p17252_p4), [#allocation6], 1152   ;;  %p17253_p10 = pmov %p17252_p4 }
 0x1d1   : > { %p17254_p11 = pmov %p17252_p4 }
 0x1d2   : > { %15571 = vsyncadd (%p17253_p10), [#allocation6], 4294966144 }
 0x1d3   : > { %15573 = dma.done.wait (%p17254_p11), [#allocation9], 768   ;;  %p17255_p8 = pmov %p17252_p4 }
 0x1d4   : > { %p17256_p5 = pmov %p17252_p4 }
 0x1d5   : > { %15575 = vsyncadd (%p17255_p8), [#allocation9], 4294966528 }
 0x1d6   : > { %15577 = dma.done.wait (%p17256_p5), [#allocation12], 768   ;;  %p17257_p7 = pmov %p17252_p4 }
 0x1d7   : > { %p17258_p6 = pmov %p17252_p4 }
 0x1d8   : > { %15579 = vsyncadd (%p17257_p7), [#allocation12], 4294966528 }
 0x1d9   : > { %15581 = dma.done.wait (%p17258_p6), [#allocation15], 512   ;;  %p17259_p9 = pmov %p17252_p4 }
 0x1da   : > { %p17260_p12 = pmov %p17252_p4 }
 0x1db   : > { %15583 = vsyncadd (%p17259_p9), [#allocation15], 4294966784 }
 0x1dc   : > { %15585 = dma.done.wait (%p17260_p12), [#allocation18], 512   ;;  %p17261_p1 = pmov %p17252_p4 }
 0x1de   : > { %15587 = vsyncadd (%p17261_p1), [#allocation18], 4294966784  ;;  %p17262_p13 = pmov %p17261_p1 }
 0x1df   : > { %p17263_p0 = pmov %p17261_p1 }
 0x1e0   : > { %15589 = dma.done.wait (%p17262_p13), [#allocation21], 384  }
 0x1e1   : > { %15591 = vsyncadd (%p17263_p0), [#allocation21], 4294966912  ;;  %p17264_p2 = pmov %p17263_p0 }
 0x1e2   : > { %p17265_p3 = pmov %p17263_p0 }
 0x1e3   : > { %15593 = dma.done.wait (%p17264_p2), [#allocation24], 256  }
 0x1e4   : > { %15595 = vsyncadd (%p17265_p3), [#allocation24], 4294967040  ;;  %v15633_v0 = vmov 0.0|0.0   ;;  %vm15634_vm0 = vmmov 0   ;;  %v15635_v1 = vmov 0.0   ;;  %v1028_v2 = vld [vmem:[#allocation5] sm:$0xff] }
 0x1e5   : > { %14367 = vmatprep.subr.bf16.mxu0 %v15633_v0  ;;  %13359 = vmatprep.mubr.msk.f32.mxu0 %vm15634_vm0, %v15635_v1  ;;  %v1029_v3 = vld [vmem:[#allocation5 + $0x8] sm:$0xff]  ;;  %v1030_v4 = vld [vmem:[#allocation5 + $0x10] sm:$0xff]  ;;  %v1048_v5 = vand.u32 4294901760, %v1028_v2  ;;  %v1031_v7 = vld [vmem:[#allocation5 + $0x18] sm:$0xff]  ;;  %vm1043_vm1 = vcmask 392192   ;;  %vm1561_vm2 = vcmask 195584  }
 0x1e6   : > { %14358 = vmatprep.subr.bf16.mxu1 %v15633_v0  ;;  %13344 = vmatprep.mubr.msk.f32.mxu1 %vm15634_vm0, %v15635_v1  ;;  %v1051_v6 = vand.u32 4294901760, %v1029_v3  ;;  %v1054_v8 = vand.u32 4294901760, %v1030_v4  ;;  %v1032_v9 = vld [vmem:[#allocation5 + $0x20] sm:$0xff]  ;;  %v1033_v10 = vld [vmem:[#allocation5 + $0x28] sm:$0xff]  ;;  %v1057_v11 = vand.u32 4294901760, %v1031_v7  ;;  %s15636_s0 = smov 104  }
 0x1e7   : > { %v1060_v12 = vand.u32 4294901760, %v1032_v9  ;;  %v1063_v13 = vand.u32 4294901760, %v1033_v10  ;;  %v1027_v14 = vld [vmem:[%s902_s20] sm:$0x1]  ;;  %v16254_v15 = vsub.f32 %v1028_v2, %v1048_v5  ;;  %v1040_v57 = vld [vmem:[#allocation10] sm:$0xff]  ;;  %v1042_v2 = vld [vmem:[#allocation10 + $0x10] sm:$0xff] }
 0x1e8   : > { %v16256_v16 = vsub.f32 %v1029_v3, %v1051_v6  ;;  %v16258_v17 = vsub.f32 %v1030_v4, %v1054_v8  ;;  %v16260_v18 = vsub.f32 %v1031_v7, %v1057_v11  ;;  %v1045_v24 = vsel %vm1043_vm1, %v1027_v14, 0  ;;  %v1041_v58 = vld [vmem:[#allocation10 + $0x8] sm:$0xff]  ;;  %s17266_s21 = sld [smem:[#allocation43_spill]]  ;;  %s15637_s25 = smov 116  }
 0x1e9   : > { %v16262_v19 = vsub.f32 %v1032_v9, %v1060_v12  ;;  %v16264_v20 = vsub.f32 %v1033_v10, %v1063_v13  ;;  %v1131_v21 = vand.u32 4294901760, %v16254_v15  ;;  %v16284_v34 = vand.u32 4294901760, %v1045_v24  ;;  %s15638_s20 = smov 122   ;;  %s17267_s9 = sld [smem:[#allocation49_spill]] }
 0x1ea   : > { %v1138_v22 = vand.u32 4294901760, %v16256_v16  ;;  %v1145_v23 = vand.u32 4294901760, %v16258_v17  ;;  %v1152_v25 = vand.u32 4294901760, %v16260_v18  ;;  %v14359_v38 = vpack.c.bf16 %v1051_v6, %v1048_v5  ;;  %s17268_s2 = sld [smem:[#allocation54_spill]]  ;;  %s17269_s22 = sld [smem:[#allocation53_spill]] }
 0x1eb   : > { %v1159_v26 = vand.u32 4294901760, %v16262_v19  ;;  %v1166_v27 = vand.u32 4294901760, %v16264_v20  ;;  %v1132_v28 = vsub.f32 %v16254_v15, %v1131_v21  ;;  %v1119_v40 = vsub.f32 %v1045_v24, %v16284_v34  ;;  %s15639_s23 = smov 125   ;;  %s17270_s11 = sld [smem:[#allocation57_spill]] }
 0x1ec   : > { %v1139_v29 = vsub.f32 %v16256_v16, %v1138_v22  ;;  %v1146_v30 = vsub.f32 %v16258_v17, %v1145_v23  ;;  %v1153_v31 = vsub.f32 %v16260_v18, %v1152_v25  ;;  %14360 = vmatpush3.bf16.msra.mxu1 %v14359_v38  ;;  %v14362_v46 = vpack.c.bf16 %v1057_v11, %v1054_v8  ;;  %s17271_s6 = sld [smem:[#allocation52_spill]]  ;;  %p17278_p10 = scmp.ne.s32.totalorder %s17247_s13, 0 }
 0x1ed   : > { %v1160_v32 = vsub.f32 %v16262_v19, %v1159_v26  ;;  %v1167_v33 = vsub.f32 %v16264_v20, %v1166_v27  ;;  %v1133_v35 = vand.u32 4294901760, %v1132_v28  ;;  %v1120_v42 = vand.u32 4294901760, %v1119_v40  ;;  %14361 = vmatprep.subr.bf16.mxu1 %v15633_v0 }
 0x1ee   : > { %v1140_v36 = vand.u32 4294901760, %v1139_v29  ;;  %v1147_v37 = vand.u32 4294901760, %v1146_v30  ;;  %v1154_v39 = vand.u32 4294901760, %v1153_v31  ;;  %v14365_v49 = vpack.c.bf16 %v1063_v13, %v1060_v12 }
 0x1ef   : > { %v1161_v44 = vand.u32 4294901760, %v1160_v32  ;;  %v1168_v45 = vand.u32 4294901760, %v1167_v33  ;;  %v1121_v47 = vsub.f32 %v1119_v40, %v1120_v42  ;;  %v14377_v51 = vpack.c.bf16 %v16256_v16, %v16254_v15  ;;  %v1037_v15 = vld [vmem:[#allocation8] sm:$0xff]  ;;  %v1038_v16 = vld [vmem:[#allocation8 + $0x8] sm:$0xff] }
 0x1f0   : > { %v14368_v41 = vpack.c.bf16 %v1140_v36, %v1133_v35  ;;  %v14371_v43 = vpack.c.bf16 %v1154_v39, %v1147_v37  ;;  %14363 = vmatpush3.bf16.msra.mxu1 %v14362_v46  ;;  %v14380_v52 = vpack.c.bf16 %v16260_v18, %v16258_v17  ;;  %v14383_v53 = vpack.c.bf16 %v16264_v20, %v16262_v19 }
 0x1f1   : > { %14364 = vmatprep.subr.bf16.mxu1 %v15633_v0  ;;  %v14374_v48 = vpack.c.bf16 %v1168_v45, %v1161_v44  ;;  %v1122_v50 = vand.u32 4294901760, %v1121_v47  ;;  %v14395_v54 = vpack.c.bf16 %v1138_v22, %v1131_v21  ;;  %v14398_v55 = vpack.c.bf16 %v1152_v25, %v1145_v23  ;;  %v16351_v22 = vld [vmem:[#allocation8 + $0x10] sm:$0xff] }
 0x1f2   : > { %14369 = vmatpush3.bf16.msra.mxu0 %v14368_v41  ;;  %v14401_v56 = vpack.c.bf16 %v1166_v27, %v1159_v26  ;;  %v2511_v59 = vand.u32 4294901760, %v1040_v57  ;;  %v2514_v60 = vand.u32 4294901760, %v1041_v58  ;;  %v16337_v3 = vand.u32 4294901760, %v1042_v2 }
 0x1f3   : > { %14370 = vmatprep.subr.bf16.mxu0 %v15633_v0  ;;  %v1565_v17 = vand.u32 4294901760, %v1037_v15  ;;  %v1568_v18 = vand.u32 4294901760, %v1038_v16  ;;  %v16355_v23 = vand.u32 4294901760, %v16351_v22  ;;  %vm3469_vm3 = vcmask 1043456  }
 0x1f4   : > { %14366 = vmatpush3.bf16.msra.mxu1 %v14365_v49  ;;  %v16332_v61 = vpack.c.bf16 %v2514_v60, %v2511_v59  ;;  %v16334_v62 = vsub.f32 %v1040_v57, %v2511_v59  ;;  %v2597_v63 = vsub.f32 %v1041_v58, %v2514_v60  ;;  %v2604_v35 = vsub.f32 %v1042_v2, %v16337_v3  ;;  %v1034_v57 = vld [vmem:[#allocation7] sm:$0xff]  ;;  %v1035_v58 = vld [vmem:[#allocation7 + $0x8] sm:$0xff] }
 0x1f5   : > { %14412 = vmatprep.subr.bf16.mxu1 %v15633_v0  ;;  %v16345_v19 = vpack.c.bf16 %v1568_v18, %v1565_v17  ;;  %v16347_v20 = vsub.f32 %v1037_v15, %v1565_v17  ;;  %v16349_v21 = vsub.f32 %v1038_v16, %v1568_v18  ;;  %v2039_v59 = vand.u32 4294901760, %v1034_v57  ;;  %v2982_v16 = vld [vmem:[%s17266_s21] sm:$0xff]  ;;  %v2983_v17 = vld [vmem:[%s17266_s21 + $0x8] sm:$0xff] }
 0x1f6   : > { %14372 = vmatpush3.bf16.msra.mxu0 %v14371_v43  ;;  %v2591_v4 = vand.u32 4294901760, %v16334_v62  ;;  %v2598_v5 = vand.u32 4294901760, %v2597_v63  ;;  %v14455_v11 = vpack.c.bf16 %v2597_v63, %v16334_v62  ;;  %v2042_v60 = vand.u32 4294901760, %v1035_v58 }
 0x1f7   : > { %14373 = vmatprep.subr.bf16.mxu0 %v15633_v0  ;;  %13345 = vmatmul.mubr.f32.vlgmr.msra.gmra.mrb[0].mxu1 %v1122_v50  ;;  %v1645_v24 = vand.u32 4294901760, %v16347_v20  ;;  %v1652_v25 = vand.u32 4294901760, %v16349_v21  ;;  %vm3466_vm4 = vcmask 97280   ;;  %vm5331_vm5 = vcmask 1045504  }
 0x1f8   : > { %13428 = vmatprep.mubr.msk.f32.mxu1 %vm15634_vm0, %v15635_v1  ;;  %v2592_v6 = vsub.f32 %v16334_v62, %v2591_v4  ;;  %v2599_v7 = vsub.f32 %v2597_v63, %v2598_v5  ;;  %v14461_v12 = vpack.c.bf16 %v2598_v5, %v2591_v4  ;;  %14414 = vmatpush3.bf16.msra.mxu1 %v16345_v19  ;;  %v1036_v63 = vld [vmem:[#allocation7 + $0x10] sm:$0xff]  ;;  %vm5328_vm6 = vcmask 48128  }
 0x1f9   : > { %13426 = vmatprep.subr.mxu1 %v15635_v1  ;;  %v1646_v26 = vsub.f32 %v16347_v20, %v1645_v24  ;;  %v1653_v27 = vsub.f32 %v16349_v21, %v1652_v25  ;;  %v14425_v45 = vpack.c.bf16 %v1652_v25, %v1645_v24  ;;  %v2125_v62 = vsub.f32 %v1035_v58, %v2042_v60  ;;  %v2988_v58 = vld [vmem:[#allocation16 + $0x8] sm:$0xf] }
 0x1fa   : > { %14375 = vmatpush3.bf16.msra.mxu0 %v14374_v48  ;;  %v2593_v8 = vand.u32 4294901760, %v2592_v6  ;;  %v2600_v9 = vand.u32 4294901760, %v2599_v7  ;;  %v1658_v48 = vsub.f32 %v16351_v22, %v16355_v23  ;;  %v16453_v2 = vand.u32 4294901760, %v1036_v63 }
 0x1fb   : > { %14376 = vmatprep.subr.bf16.mxu0 %v15633_v0  ;;  %v1647_v29 = vand.u32 4294901760, %v1646_v26  ;;  %v1654_v30 = vand.u32 4294901760, %v1653_v27  ;;  %v2126_v4 = vand.u32 4294901760, %v2125_v62  ;;  %v14431_v5 = vpack.c.bf16 %v2042_v60, %v2039_v59  ;;  %v2987_v60 = vld [vmem:[#allocation16] sm:$0xff] }
 0x1fc   : > { %v14452_v10 = vpack.c.bf16 %v2600_v9, %v2593_v8  ;;  %13427 = vmatpush3.msra.mxu1 %v16355_v23  ;;  %v2132_v6 = vsub.f32 %v1036_v63, %v16453_v2  ;;  %vm7140_vm7 = vcmask 1042432   ;;  %vm7137_vm8 = vcmask 23552  }
 0x1fd   : > { %13360 = vmatmul.mubr.f32.vlgmr.msra.gmra.mrb[0].mxu0 %v16284_v34  ;;  %14415 = vmatprep.subr.bf16.mxu1 %v15633_v0  ;;  %v14416_v33 = vpack.c.bf16 %v1654_v30, %v1647_v29  ;;  %v2127_v8 = vsub.f32 %v2125_v62, %v2126_v4  ;;  %vm12647_vm9 = vcmask 385024  }
 0x1fe   : > { %14378 = vmatpush3.bf16.msra.mxu0 %v14377_v51  ;;  %13374 = vmatprep.mubr.msk.f32.mxu0 %vm15634_vm0, %v15635_v1  ;;  %v1659_v51 = vand.u32 4294901760, %v1658_v48 }
 0x1ff   : > { %14379 = vmatprep.subr.bf16.mxu0 %v15633_v0 }
 0x202   : > { %14381 = vmatpush3.bf16.msra.mxu0 %v14380_v52 }
 0x203   : > { %14382 = vmatprep.subr.bf16.mxu0 %v15633_v0 }
 0x206   : > { %14384 = vmatpush3.bf16.msra.mxu0 %v14383_v53 }
 0x207   : > { %14385 = vmatprep.subr.bf16.mxu0 %v15633_v0 }
 0x209   : > { %13375 = vmatmul.mubr.f32.vlgmr.msra.gmra.mrb[0].mxu0 %v1119_v40  ;;  %v14419_v40 = vpack.c.bf16 %v16349_v21, %v16347_v20  ;;  %v2995_v20 = vand.u32 4294901760, %v2983_v17 }
 0x20a   : > { %14387 = vmatpush3.bf16.msra.mxu0 %v14359_v38  ;;  %13389 = vmatprep.mubr.msk.f32.mxu0 %vm15634_vm0, %v15635_v1 }
 0x20b   : > { %14388 = vmatprep.subr.bf16.mxu0 %v15633_v0  ;;  %v3078_v22 = vsub.f32 %v2983_v17, %v2995_v20 }
 0x20d   : > { %v3079_v26 = vand.u32 4294901760, %v3078_v22 }
 0x20e   : > { %14390 = vmatpush3.bf16.msra.mxu0 %v14362_v46 }
 0x20f   : > { %14391 = vmatprep.subr.bf16.mxu0 %v15633_v0  ;;  %v3080_v29 = vsub.f32 %v3078_v22, %v3079_v26 }
 0x212   : > { %14393 = vmatpush3.bf16.msra.mxu0 %v14365_v49 }
 0x213   : > { %14394 = vmatprep.subr.bf16.mxu0 %v15633_v0 }
 0x215   : > { %13390 = vmatmul.mubr.f32.vlgmr.msra.gmra.mrb[0].mxu0 %v1120_v42 }
 0x216   : > { %14396 = vmatpush3.bf16.msra.mxu0 %v14395_v54  ;;  %13404 = vmatprep.mubr.msk.f32.mxu0 %vm15634_vm0, %v15635_v1  ;;  %v1660_v54 = vsub.f32 %v1658_v48, %v1659_v51 }
 0x217   : > { %14397 = vmatprep.subr.bf16.mxu0 %v15633_v0 }
 0x21a   : > { %14399 = vmatpush3.bf16.msra.mxu0 %v14398_v55 }
 0x21b   : > { %14400 = vmatprep.subr.bf16.mxu0 %v15633_v0 }
 0x21e   : > { %14402 = vmatpush3.bf16.msra.mxu0 %v14401_v56  ;;  %v1661_v56 = vand.u32 4294901760, %v1660_v54 }
 0x21f   : > { %14403 = vmatprep.subr.bf16.mxu0 %v15633_v0 }
 0x221   : > { %13405 = vmatmul.mubr.f32.vlgmr.msra.gmra.mrb[0].mxu0 %v16284_v34 }
 0x222   : > { %14405 = vmatpush3.bf16.msra.mxu0 %v14359_v38  ;;  %13419 = vmatprep.mubr.msk.f32.mxu0 %vm15634_vm0, %v15635_v1  ;;  %v2605_v38 = vand.u32 4294901760, %v2604_v35 }
 0x223   : > { %14406 = vmatprep.subr.bf16.mxu0 %v15633_v0 }
 0x224   : > { %v2606_v42 = vsub.f32 %v2604_v35, %v2605_v38 }
 0x226   : > { %14408 = vmatpush3.bf16.msra.mxu0 %v14362_v46  ;;  %v2607_v44 = vand.u32 4294901760, %v2606_v42 }
 0x227   : > { %14409 = vmatprep.subr.bf16.mxu0 %v15633_v0 }
 0x22a   : > { %14411 = vmatpush3.bf16.msra.mxu0 %v14365_v49 }
 0x22b   : > { %14448 = vmatprep.subr.bf16.mxu0 %v15633_v0 }
 0x22d   : > { %13420 = vmatmul.mubr.f32.vlgmr.msra.gmra.mrb[0].mxu0 %v16284_v34 }
 0x22e   : > { %13536 = vmatprep.mubr.msk.f32.mxu0 %vm15634_vm0, %v15635_v1  ;;  %14450 = vmatpush3.bf16.msra.mxu0 %v16332_v61 }
 0x22f   : > { %13534 = vmatprep.subr.mxu0 %v15635_v1 }
 0x232   : > { %13535 = vmatpush3.msra.mxu0 %v16337_v3 }
 0x233   : > { %14451 = vmatprep.subr.bf16.mxu0 %v15633_v0 }
 0x2ca   : > { %v1124_v13 = vpop.f32.mrb[0].mxu1 }
 0x2cb   : > { %v13346_v14 = vpop.f32.mrb[1].mxu1 }
 0x300   : > { %v1554_v28 = vpop.f32.mrb[0].mxu0 }
 0x301   : > { %v14628_v31 = vadd.f32 %v1554_v28, %v1124_v13  ;;  %v13421_v32 = vpop.f32.mrb[1].mxu0 }
 0x302   : > { %v3081_v32 = vand.u32 4294901760, %v3080_v29 }
 0x303   : > { %v2036_v34 = vsel %vm1561_vm2, %v14628_v31, 0  ;;  %1559 = vrot.lane.b32.xlu0 %v14628_v31, %s15636_s0  ;;  %s12891_s0 = sshll.u32 %s15802_s28, 4  ;;  %s15640_s28 = smov [#allocation26]  }
 0x304   : > { %v16366_v36 = vand.u32 4294901760, %v2036_v34 }
 0x306   : > { %v16369_v37 = vsub.f32 %v2036_v34, %v16366_v36 }
 0x308   : > { %v16372_v39 = vand.u32 4294901760, %v16369_v37 }
 0x30a   : > { %v2109_v41 = vsub.f32 %v16369_v37, %v16372_v39 }
 0x30c   : > { %v16378_v43 = vand.u32 4294901760, %v2109_v41 }
 0x30e   : > { %13537 = vmatmul.mubr.f32.vlgmr.msra.gmra.mrb[2].mxu0 %v16378_v43 }
 0x30f   : > { %14453 = vmatpush3.bf16.msra.mxu0 %v14452_v10  ;;  %13545 = vmatprep.mubr.msk.f32.mxu0 %vm15634_vm0, %v15635_v1  ;;  %v2128_v10 = vand.u32 4294901760, %v2127_v8 }
 0x310   : > { %13543 = vmatprep.subr.mxu0 %v15635_v1 }
 0x313   : > { %13544 = vmatpush3.msra.mxu0 %v2607_v44 }
 0x314   : > { %14454 = vmatprep.subr.bf16.mxu0 %v15633_v0 }
 0x316   : > { %13546 = vmatmul.mubr.f32.vlgmr.msra.gmra.mrb[2].mxu0 %v16366_v36 }
 0x317   : > { %14456 = vmatpush3.bf16.msra.mxu0 %v14455_v11  ;;  %13554 = vmatprep.mubr.msk.f32.mxu0 %vm15634_vm0, %v15635_v1  ;;  %v2133_v11 = vand.u32 4294901760, %v2132_v6 }
 0x318   : > { %13552 = vmatprep.subr.mxu0 %v15635_v1 }
 0x319   : > { %v2134_v13 = vsub.f32 %v2132_v6, %v2133_v11 }
 0x31b   : > { %13553 = vmatpush3.msra.mxu0 %v2604_v35  ;;  %v2135_v14 = vand.u32 4294901760, %v2134_v13 }
 0x31c   : > { %14457 = vmatprep.subr.bf16.mxu0 %v15633_v0 }
 0x31e   : > { %13555 = vmatmul.mubr.f32.vlgmr.msra.gmra.mrb[2].mxu0 %v16369_v37 }
 0x31f   : > { %14459 = vmatpush3.bf16.msra.mxu0 %v16332_v61  ;;  %13563 = vmatprep.mubr.msk.f32.mxu0 %vm15634_vm0, %v15635_v1 }
 0x320   : > { %13561 = vmatprep.subr.mxu0 %v15635_v1 }
 0x323   : > { %13562 = vmatpush3.msra.mxu0 %v16337_v3 }
 0x324   : > { %14460 = vmatprep.subr.bf16.mxu0 %v15633_v0 }
 0x326   : > { %13564 = vmatmul.mubr.f32.vlgmr.msra.gmra.mrb[2].mxu0 %v16372_v39 }
 0x327   : > { %14462 = vmatpush3.bf16.msra.mxu0 %v14461_v12  ;;  %13572 = vmatprep.mubr.msk.f32.mxu0 %vm15634_vm0, %v15635_v1 }
 0x328   : > { %13570 = vmatprep.subr.mxu0 %v15635_v1 }
 0x32b   : > { %13571 = vmatpush3.msra.mxu0 %v2605_v38 }
 0x32c   : > { %14463 = vmatprep.subr.bf16.mxu0 %v15633_v0 }
 0x32e   : > { %13573 = vmatmul.mubr.f32.vlgmr.msra.gmra.mrb[2].mxu0 %v16366_v36 }
 0x32f   : > { %14465 = vmatpush3.bf16.msra.mxu0 %v16332_v61  ;;  %13581 = vmatprep.mubr.msk.f32.mxu0 %vm15634_vm0, %v15635_v1  ;;  %v2118_v61 = vsub.f32 %v1034_v57, %v2039_v59  ;;  %v4859_v59 = vld [vmem:[#allocation20 + $0x8] sm:$0xf] }
 0x330   : > { %13579 = vmatprep.subr.mxu0 %v15635_v1  ;;  %v4864_v63 = vsel %vm3469_vm3, %v4859_v59, 0 }
 0x331   : > { %v14437_v15 = vpack.c.bf16 %v2125_v62, %v2118_v61  ;;  %v16552_v62 = vld [vmem:[#allocation20] sm:$0xff] }
 0x333   : > { %13580 = vmatpush3.msra.mxu0 %v16337_v3  ;;  %v2119_v3 = vand.u32 4294901760, %v2118_v61 }
 0x334   : > { %14484 = vmatprep.subr.bf16.mxu0 %v15633_v0 }
 0x335   : > { %v2120_v7 = vsub.f32 %v2118_v61, %v2119_v3  ;;  %v14443_v18 = vpack.c.bf16 %v2126_v4, %v2119_v3  ;;  %v3471_v61 = vsel %vm3469_vm3, %v2988_v58, 0  ;;  %v4867_v4 = vand.u32 4294901760, %v16552_v62 }
 0x336   : > { %13582 = vmatmul.mubr.f32.vlgmr.msra.gmra.mrb[2].mxu0 %v16366_v36  ;;  %v3477_v3 = vand.u32 4294901760, %v3471_v61 }
 0x337   : > { %13642 = vmatprep.mubr.msk.f32.mxu0 %vm15634_vm0, %v15635_v1  ;;  %v2121_v9 = vand.u32 4294901760, %v2120_v7 }
 0x338   : > { %v16560_v8 = vsub.f32 %v3471_v61, %v3477_v3 }
 0x339   : > { %v14434_v12 = vpack.c.bf16 %v2128_v10, %v2121_v9  ;;  %v16563_v9 = vsub.f32 %v16552_v62, %v4867_v4 }
 0x33b   : > { %v4946_v13 = vand.u32 4294901760, %v16563_v9 }
 0x33d   : > { %v4947_v17 = vsub.f32 %v16563_v9, %v4946_v13 }
 0x375   : > { %v1560_v46 = vpop.permute.xlu0 %1559 }
 0x376   : > { %v1562_v47 = vsel %vm1561_vm2, %v1560_v46, 0 }
 0x377   : > { %v16415_v49 = vand.u32 4294901760, %v1562_v47 }
 0x379   : > { %v16418_v50 = vsub.f32 %v1562_v47, %v16415_v49 }
 0x37b   : > { %v16421_v52 = vand.u32 4294901760, %v16418_v50 }
 0x37d   : > { %v1635_v53 = vsub.f32 %v16418_v50, %v16421_v52 }
 0x37f   : > { %v16425_v55 = vand.u32 4294901760, %v1635_v53 }
 0x381   : > { %13429 = vmatmul.mubr.f32.vlgmr.msra.gmra.mrb[2].mxu1 %v16425_v55 }
 0x382   : > { %14417 = vmatpush3.bf16.msra.mxu1 %v14416_v33  ;;  %13437 = vmatprep.mubr.msk.f32.mxu1 %vm15634_vm0, %v15635_v1 }
 0x383   : > { %13435 = vmatprep.subr.mxu1 %v15635_v1 }
 0x386   : > { %13436 = vmatpush3.msra.mxu1 %v1661_v56 }
 0x387   : > { %14418 = vmatprep.subr.bf16.mxu1 %v15633_v0 }
 0x389   : > { %13438 = vmatmul.mubr.f32.vlgmr.msra.gmra.mrb[2].mxu1 %v16415_v49 }
 0x38a   : > { %14420 = vmatpush3.bf16.msra.mxu1 %v14419_v40  ;;  %13446 = vmatprep.mubr.msk.f32.mxu1 %vm15634_vm0, %v15635_v1  ;;  %v2989_v40 = vld [vmem:[#allocation17] sm:$0xff] }
 0x38b   : > { %13444 = vmatprep.subr.mxu1 %v15635_v1  ;;  %v4400_v42 = vand.u32 4294901760, %v2989_v40 }
 0x38e   : > { %13445 = vmatpush3.msra.mxu1 %v1658_v48 }
 0x38f   : > { %14421 = vmatprep.subr.bf16.mxu1 %v15633_v0 }
 0x391   : > { %13447 = vmatmul.mubr.f32.vlgmr.msra.gmra.mrb[2].mxu1 %v16418_v50 }
 0x392   : > { %14423 = vmatpush3.bf16.msra.mxu1 %v16345_v19  ;;  %13455 = vmatprep.mubr.msk.f32.mxu1 %vm15634_vm0, %v15635_v1 }
 0x393   : > { %13453 = vmatprep.subr.mxu1 %v15635_v1 }
 0x396   : > { %13454 = vmatpush3.msra.mxu1 %v16355_v23 }
 0x397   : > { %14424 = vmatprep.subr.bf16.mxu1 %v15633_v0 }
 0x399   : > { %13456 = vmatmul.mubr.f32.vlgmr.msra.gmra.mrb[2].mxu1 %v16421_v52 }
 0x39a   : > { %14426 = vmatpush3.bf16.msra.mxu1 %v14425_v45  ;;  %13464 = vmatprep.mubr.msk.f32.mxu1 %vm15634_vm0, %v15635_v1  ;;  %v16537_v45 = vsub.f32 %v2989_v40, %v4400_v42 }
 0x39b   : > { %13462 = vmatprep.subr.mxu1 %v15635_v1 }
 0x39c   : > { %v4479_v47 = vand.u32 4294901760, %v16537_v45 }
 0x39e   : > { %13463 = vmatpush3.msra.mxu1 %v1659_v51 }
 0x39f   : > { %14427 = vmatprep.subr.bf16.mxu1 %v15633_v0 }
 0x3a1   : > { %13465 = vmatmul.mubr.f32.vlgmr.msra.gmra.mrb[2].mxu1 %v16415_v49 }
 0x3a2   : > { %14429 = vmatpush3.bf16.msra.mxu1 %v16345_v19  ;;  %13473 = vmatprep.mubr.msk.f32.mxu1 %vm15634_vm0, %v15635_v1  ;;  %v2992_v19 = vand.u32 4294901760, %v2982_v16 }
 0x3a3   : > { %13471 = vmatprep.subr.mxu1 %v15635_v1 }
 0x3a4   : > { %v3071_v21 = vsub.f32 %v2982_v16, %v2992_v19  ;;  %v14467_v30 = vpack.c.bf16 %v2995_v20, %v2992_v19 }
 0x3a6   : > { %13472 = vmatpush3.msra.mxu1 %v16355_v23  ;;  %v2984_v23 = vld [vmem:[%s17266_s21 + $0x10] sm:$0xff]  ;;  %v3072_v25 = vand.u32 4294901760, %v3071_v21 }
 0x3a7   : > { %14430 = vmatprep.subr.bf16.mxu1 %v15633_v0  ;;  %v2998_v24 = vand.u32 4294901760, %v2984_v23 }
 0x3a8   : > { %v3073_v28 = vsub.f32 %v3071_v21, %v3072_v25  ;;  %v14479_v38 = vpack.c.bf16 %v3079_v26, %v3072_v25 }
 0x3a9   : > { %13474 = vmatmul.mubr.f32.vlgmr.msra.gmra.mrb[2].mxu1 %v16415_v49  ;;  %v3085_v27 = vsub.f32 %v2984_v23, %v2998_v24 }
 0x3aa   : > { %14432 = vmatpush3.bf16.msra.mxu1 %v14431_v5  ;;  %13482 = vmatprep.mubr.msk.f32.mxu1 %vm15634_vm0, %v15635_v1  ;;  %v3074_v31 = vand.u32 4294901760, %v3073_v28 }
 0x3ab   : > { %13480 = vmatprep.subr.mxu1 %v15635_v1  ;;  %v3086_v33 = vand.u32 4294901760, %v3085_v27 }
 0x3ac   : > { %v14470_v34 = vpack.c.bf16 %v3081_v32, %v3074_v31 }
 0x3ad   : > { %v3087_v35 = vsub.f32 %v3085_v27, %v3086_v33 }
 0x3ae   : > { %13481 = vmatpush3.msra.mxu1 %v16453_v2 }
 0x3af   : > { %14433 = vmatprep.subr.bf16.mxu1 %v15633_v0 }
 0x3b1   : > { %13483 = vmatmul.mubr.f32.vlgmr.msra.gmra.mrb[2].mxu1 %v16378_v43 }
 0x3b2   : > { %14435 = vmatpush3.bf16.msra.mxu1 %v14434_v12  ;;  %13491 = vmatprep.mubr.msk.f32.mxu1 %vm15634_vm0, %v15635_v1  ;;  %v3560_v12 = vand.u32 4294901760, %v16560_v8 }
 0x3b3   : > { %13489 = vmatprep.subr.mxu1 %v15635_v1 }
 0x3b4   : > { %v3561_v16 = vsub.f32 %v16560_v8, %v3560_v12 }
 0x3b6   : > { %13490 = vmatpush3.msra.mxu1 %v2135_v14 }
 0x3b7   : > { %14436 = vmatprep.subr.bf16.mxu1 %v15633_v0 }
 0x3b9   : > { %13492 = vmatmul.mubr.f32.vlgmr.msra.gmra.mrb[2].mxu1 %v16366_v36 }
 0x3ba   : > { %14438 = vmatpush3.bf16.msra.mxu1 %v14437_v15  ;;  %13500 = vmatprep.mubr.msk.f32.mxu1 %vm15634_vm0, %v15635_v1 }
 0x3bb   : > { %13498 = vmatprep.subr.mxu1 %v15635_v1 }
 0x3be   : > { %13499 = vmatpush3.msra.mxu1 %v2132_v6 }
 0x3bf   : > { %14439 = vmatprep.subr.bf16.mxu1 %v15633_v0 }
 0x3c1   : > { %13501 = vmatmul.mubr.f32.vlgmr.msra.gmra.mrb[2].mxu1 %v16369_v37  ;;  %v3088_v37 = vand.u32 4294901760, %v3087_v35 }
 0x3c2   : > { %14441 = vmatpush3.bf16.msra.mxu1 %v14431_v5  ;;  %13509 = vmatprep.mubr.msk.f32.mxu1 %vm15634_vm0, %v15635_v1 }
 0x3c3   : > { %13507 = vmatprep.subr.mxu1 %v15635_v1 }
 0x3c6   : > { %13508 = vmatpush3.msra.mxu1 %v16453_v2 }
 0x3c7   : > { %14442 = vmatprep.subr.bf16.mxu1 %v15633_v0 }
 0x3c9   : > { %13510 = vmatmul.mubr.f32.vlgmr.msra.gmra.mrb[2].mxu1 %v16372_v39  ;;  %v2990_v39 = vld [vmem:[#allocation17 + $0x8] sm:$0xf] }
 0x3ca   : > { %14444 = vmatpush3.bf16.msra.mxu1 %v14443_v18  ;;  %13518 = vmatprep.mubr.msk.f32.mxu1 %vm15634_vm0, %v15635_v1  ;;  %v4397_v41 = vsel %vm3469_vm3, %v2990_v39, 0 }
 0x3cb   : > { %13516 = vmatprep.subr.mxu1 %v15635_v1  ;;  %v4403_v43 = vand.u32 4294901760, %v4397_v41 }
 0x3cd   : > { %v16535_v44 = vpack.c.bf16 %v4403_v43, %v4400_v42  ;;  %v16539_v46 = vsub.f32 %v4397_v41, %v4403_v43 }
 0x3ce   : > { %13517 = vmatpush3.msra.mxu1 %v2133_v11 }
 0x3cf   : > { %14445 = vmatprep.subr.bf16.mxu1 %v15633_v0  ;;  %v4486_v48 = vand.u32 4294901760, %v16539_v46  ;;  %v14527_v54 = vpack.c.bf16 %v16539_v46, %v16537_v45 }
 0x3d1   : > { %13519 = vmatmul.mubr.f32.vlgmr.msra.gmra.mrb[2].mxu1 %v16366_v36 }
 0x3d2   : > { %14447 = vmatpush3.bf16.msra.mxu1 %v14431_v5  ;;  %13527 = vmatprep.mubr.msk.f32.mxu1 %vm15634_vm0, %v15635_v1  ;;  %v4870_v5 = vand.u32 4294901760, %v4864_v63 }
 0x3d3   : > { %13525 = vmatprep.subr.mxu1 %v15635_v1 }
 0x3d4   : > { %v16565_v10 = vsub.f32 %v4864_v63, %v4870_v5  ;;  %v4862_v63 = vld [vmem:[#allocation22] sm:$0x3f] }
 0x3d6   : > { %13526 = vmatpush3.msra.mxu1 %v16453_v2  ;;  %v3474_v2 = vand.u32 4294901760, %v2987_v60  ;;  %v4953_v14 = vand.u32 4294901760, %v16565_v10  ;;  %v14545_v31 = vpack.c.bf16 %v16565_v10, %v16563_v9 }
 0x3d7   : > { %14466 = vmatprep.subr.bf16.mxu1 %v15633_v0 }
 0x3d8   : > { %v16556_v6 = vpack.c.bf16 %v3477_v3, %v3474_v2  ;;  %v16558_v7 = vsub.f32 %v2987_v60, %v3474_v2  ;;  %v4954_v18 = vsub.f32 %v16565_v10, %v4953_v14  ;;  %v14551_v35 = vpack.c.bf16 %v4953_v14, %v4946_v13 }
 0x3d9   : > { %13528 = vmatmul.mubr.f32.vlgmr.msra.gmra.mrb[2].mxu1 %v16366_v36  ;;  %v14473_v36 = vpack.c.bf16 %v3078_v22, %v3071_v21  ;;  %v3562_v21 = vand.u32 4294901760, %v3561_v16  ;;  %v6233_v2 = vsel %vm5331_vm5, %v4862_v63, 0 }
 0x3da   : > { %14468 = vmatpush3.bf16.msra.mxu1 %v14467_v30  ;;  %13590 = vmatprep.mubr.msk.f32.mxu1 %vm15634_vm0, %v15635_v1  ;;  %v3553_v11 = vand.u32 4294901760, %v16558_v7  ;;  %v4955_v25 = vand.u32 4294901760, %v4954_v18  ;;  %v6236_v3 = vand.u32 4294901760, %v6233_v2 }
 0x3db   : > { %13588 = vmatprep.subr.mxu1 %v15635_v1  ;;  %14486 = vmatpush3.bf16.msra.mxu0 %v16556_v6 }
 0x3dc   : > { %14487 = vmatprep.subr.bf16.mxu0 %v15633_v0  ;;  %v3554_v15 = vsub.f32 %v16558_v7, %v3553_v11 }
 0x3de   : > { %13589 = vmatpush3.msra.mxu1 %v2998_v24  ;;  %v3555_v20 = vand.u32 4294901760, %v3554_v15 }
 0x3df   : > { %13591 = vmatmul.mubr.f32.vlgmr.msra.gmra.mrb[4].mxu1 %v16425_v55  ;;  %14469 = vmatprep.subr.bf16.mxu1 %v15633_v0  ;;  %v14533_v55 = vpack.c.bf16 %v4486_v48, %v4479_v47 }
 0x3e0   : > { %14471 = vmatpush3.bf16.msra.mxu1 %v14470_v34  ;;  %13599 = vmatprep.mubr.msk.f32.mxu1 %vm15634_vm0, %v15635_v1 }
 0x3e1   : > { %13597 = vmatprep.subr.mxu1 %v15635_v1 }
 0x3e4   : > { %13598 = vmatpush3.msra.mxu1 %v3088_v37  ;;  %v14497_v37 = vpack.c.bf16 %v3560_v12, %v3553_v11 }
 0x3e5   : > { %14472 = vmatprep.subr.bf16.mxu1 %v15633_v0 }
 0x3e7   : > { %13600 = vmatmul.mubr.f32.vlgmr.msra.gmra.mrb[4].mxu1 %v16415_v49 }
 0x3e8   : > { %14474 = vmatpush3.bf16.msra.mxu1 %v14473_v36  ;;  %13608 = vmatprep.mubr.msk.f32.mxu1 %vm15634_vm0, %v15635_v1  ;;  %v14539_v36 = vpack.c.bf16 %v4870_v5, %v4867_v4  ;;  %v4861_v4 = vld [vmem:[%s17169_s15] sm:$0x3f] }
 0x3e9   : > { %13606 = vmatprep.subr.mxu1 %v15635_v1  ;;  %v5333_v5 = vsel %vm5331_vm5, %v4861_v4, 0 }
 0x3ec   : > { %13607 = vmatpush3.msra.mxu1 %v3085_v27  ;;  %v14488_v27 = vpack.c.bf16 %v3562_v21, %v3555_v20 }
 0x3ed   : > { %14475 = vmatprep.subr.bf16.mxu1 %v15633_v0 }
 0x3ef   : > { %13609 = vmatmul.mubr.f32.vlgmr.msra.gmra.mrb[4].mxu1 %v16418_v50  ;;  %v4487_v50 = vsub.f32 %v16539_v46, %v4486_v48  ;;  %v2985_v46 = vld [vmem:[#allocation14] sm:$0xff] }
 0x3f0   : > { %14477 = vmatpush3.bf16.msra.mxu1 %v14467_v30  ;;  %13617 = vmatprep.mubr.msk.f32.mxu1 %vm15634_vm0, %v15635_v1  ;;  %v3938_v48 = vand.u32 4294901760, %v2985_v46 }
 0x3f1   : > { %13615 = vmatprep.subr.mxu1 %v15635_v1 }
 0x3f4   : > { %13616 = vmatpush3.msra.mxu1 %v2998_v24 }
 0x3f5   : > { %14478 = vmatprep.subr.bf16.mxu1 %v15633_v0 }
 0x3f7   : > { %13618 = vmatmul.mubr.f32.vlgmr.msra.gmra.mrb[4].mxu1 %v16421_v52  ;;  %v4488_v52 = vand.u32 4294901760, %v4487_v50  ;;  %v4016_v50 = vsub.f32 %v2985_v46, %v3938_v48  ;;  %v6684_v46 = vld [vmem:[%s17268_s2] sm:$0x7]  ;;  %s17275_s2 = sld [smem:[#allocation50_spill]] }
 0x3f8   : > { %14480 = vmatpush3.bf16.msra.mxu1 %v14479_v38  ;;  %13626 = vmatprep.mubr.msk.f32.mxu1 %vm15634_vm0, %v15635_v1 }
 0x3f9   : > { %13624 = vmatprep.subr.mxu1 %v15635_v1 }
 0x3fc   : > { %13625 = vmatpush3.msra.mxu1 %v3086_v33  ;;  %v14491_v33 = vpack.c.bf16 %v16560_v8, %v16558_v7  ;;  %v6313_v7 = vsub.f32 %v6233_v2, %v6236_v3 }
 0x3fd   : > { %14481 = vmatprep.subr.bf16.mxu1 %v15633_v0 }
 0x3fe   : > { %v6314_v11 = vand.u32 4294901760, %v6313_v7 }
 0x3ff   : > { %13627 = vmatmul.mubr.f32.vlgmr.msra.gmra.mrb[4].mxu1 %v16415_v49 }
 0x400   : > { %14483 = vmatpush3.bf16.msra.mxu1 %v14467_v30  ;;  %13635 = vmatprep.mubr.msk.f32.mxu1 %vm15634_vm0, %v15635_v1  ;;  %v6315_v14 = vsub.f32 %v6313_v7, %v6314_v11 }
 0x401   : > { %13633 = vmatprep.subr.mxu1 %v15635_v1 }
 0x404   : > { %13634 = vmatpush3.msra.mxu1 %v2998_v24  ;;  %v4948_v24 = vand.u32 4294901760, %v4947_v17  ;;  %v6316_v17 = vand.u32 4294901760, %v6315_v14 }
 0x405   : > { %14520 = vmatprep.subr.bf16.mxu1 %v15633_v0 }
 0x406   : > { %v14542_v28 = vpack.c.bf16 %v4955_v25, %v4948_v24 }
 0x407   : > { %13636 = vmatmul.mubr.f32.vlgmr.msra.gmra.mrb[4].mxu1 %v16415_v49  ;;  %v4480_v49 = vsub.f32 %v16537_v45, %v4479_v47  ;;  %v2986_v45 = vld [vmem:[#allocation14 + $0x8] sm:$0xf] }
 0x408   : > { %13726 = vmatprep.mubr.msk.f32.mxu1 %vm15634_vm0, %v15635_v1  ;;  %14522 = vmatpush3.bf16.msra.mxu1 %v16535_v44  ;;  %v3935_v47 = vsel %vm3469_vm3, %v2986_v45, 0 }
 0x409   : > { %14523 = vmatprep.subr.bf16.mxu1 %v15633_v0  ;;  %v4481_v51 = vand.u32 4294901760, %v4480_v49  ;;  %v3941_v49 = vand.u32 4294901760, %v3935_v47 }
 0x40b   : > { %v14524_v53 = vpack.c.bf16 %v4488_v52, %v4481_v51  ;;  %v4023_v51 = vsub.f32 %v3935_v47, %v3941_v49  ;;  %v4017_v52 = vand.u32 4294901760, %v4016_v50  ;;  %v8042_v47 = vsel %vm7140_vm7, %v6684_v46, 0 }
 0x40d   : > { %v14509_v61 = vpack.c.bf16 %v4023_v51, %v4016_v50 }
 0x4ac   : > { %v16549_v56 = vpop.f32.mrb[2].mxu1 }
 0x4ad   : > { %v13529_v57 = vpop.f32.mrb[3].mxu1 }
 0x4da   : > { %v3459_v19 = vpop.f32.mrb[4].mxu1 }
 0x4db   : > { %v3932_v22 = vsel %vm3466_vm4, %v3459_v19, 0  ;;  %3464 = vrot.lane.b32.xlu0 %v3459_v19, %s15637_s25  ;;  %v13637_v23 = vpop.f32.mrb[5].mxu1  ;;  %v6681_v19 = vld [vmem:[#allocation25] sm:$0x3f]  ;;  %s17272_s25 = sld [smem:[#allocation56_spill]] }
 0x4dc   : > { %v16578_v26 = vand.u32 4294901760, %v3932_v22  ;;  %v6686_v20 = vsel %vm5331_vm5, %v6681_v19, 0 }
 0x4dd   : > { %v6689_v23 = vand.u32 4294901760, %v6686_v20 }
 0x4de   : > { %v16581_v29 = vsub.f32 %v3932_v22, %v16578_v26 }
 0x4df   : > { %v6766_v24 = vsub.f32 %v6686_v20, %v6689_v23 }
 0x4e0   : > { %v16584_v30 = vand.u32 4294901760, %v16581_v29 }
 0x4e2   : > { %v4007_v32 = vsub.f32 %v16581_v29, %v16584_v30 }
 0x4e4   : > { %v16592_v34 = vand.u32 4294901760, %v4007_v32 }
 0x4e6   : > { %13727 = vmatmul.mubr.f32.vlgmr.msra.gmra.mrb[6].mxu1 %v16592_v34 }
 0x4e7   : > { %14525 = vmatpush3.bf16.msra.mxu1 %v14524_v53  ;;  %13733 = vmatprep.mubr.msk.f32.mxu1 %vm15634_vm0, %v15635_v1  ;;  %v4024_v53 = vand.u32 4294901760, %v4023_v51 }
 0x4e8   : > { %14526 = vmatprep.subr.bf16.mxu1 %v15633_v0 }
 0x4e9   : > { %v4025_v57 = vsub.f32 %v4023_v51, %v4024_v53  ;;  %v14515_v62 = vpack.c.bf16 %v4024_v53, %v4017_v52 }
 0x4eb   : > { %v4026_v59 = vand.u32 4294901760, %v4025_v57 }
 0x4ee   : > { %13734 = vmatmul.mubr.f32.vlgmr.msra.gmra.mrb[6].mxu1 %v16578_v26 }
 0x4ef   : > { %14528 = vmatpush3.bf16.msra.mxu1 %v14527_v54  ;;  %13740 = vmatprep.mubr.msk.f32.mxu1 %vm15634_vm0, %v15635_v1  ;;  %v14503_v54 = vpack.c.bf16 %v3941_v49, %v3938_v48  ;;  %v8045_v48 = vand.u32 4294901760, %v8042_v47  ;;  %v6683_v49 = vld [vmem:[%s17269_s22] sm:$0x7]  ;;  %s17276_s22 = sld [smem:[#allocation47_spill]] }
 0x4f0   : > { %14529 = vmatprep.subr.bf16.mxu1 %v15633_v0 }
 0x4f6   : > { %13741 = vmatmul.mubr.f32.vlgmr.msra.gmra.mrb[6].mxu1 %v16581_v29 }
 0x4f7   : > { %14531 = vmatpush3.bf16.msra.mxu1 %v16535_v44  ;;  %13747 = vmatprep.mubr.msk.f32.mxu1 %vm15634_vm0, %v15635_v1 }
 0x4f8   : > { %14532 = vmatprep.subr.bf16.mxu1 %v15633_v0 }
 0x4fe   : > { %13748 = vmatmul.mubr.f32.vlgmr.msra.gmra.mrb[6].mxu1 %v16584_v30 }
 0x4ff   : > { %14534 = vmatpush3.bf16.msra.mxu1 %v14533_v55  ;;  %13754 = vmatprep.mubr.msk.f32.mxu1 %vm15634_vm0, %v15635_v1  ;;  %v4018_v55 = vsub.f32 %v4016_v50, %v4017_v52  ;;  %v7142_v50 = vsel %vm7140_vm7, %v6683_v49, 0  ;;  %v8122_v52 = vsub.f32 %v8042_v47, %v8045_v48 }
 0x500   : > { %14535 = vmatprep.subr.bf16.mxu1 %v15633_v0  ;;  %v16807_v51 = vand.u32 4294901760, %v7142_v50 }
 0x501   : > { %v4019_v58 = vand.u32 4294901760, %v4018_v55  ;;  %v8123_v57 = vand.u32 4294901760, %v8122_v52 }
 0x503   : > { %v14506_v60 = vpack.c.bf16 %v4026_v59, %v4019_v58 }
 0x506   : > { %13755 = vmatmul.mubr.f32.vlgmr.msra.gmra.mrb[6].mxu1 %v16578_v26 }
 0x507   : > { %14537 = vmatpush3.bf16.msra.mxu1 %v16535_v44  ;;  %13761 = vmatprep.mubr.msk.f32.mxu1 %vm15634_vm0, %v15635_v1 }
 0x508   : > { %14538 = vmatprep.subr.bf16.mxu1 %v15633_v0 }
 0x50e   : > { %13762 = vmatmul.mubr.f32.vlgmr.msra.gmra.mrb[6].mxu1 %v16578_v26 }
 0x50f   : > { %14540 = vmatpush3.bf16.msra.mxu1 %v14539_v36  ;;  %13768 = vmatprep.mubr.msk.f32.mxu1 %vm15634_vm0, %v15635_v1 }
 0x510   : > { %14541 = vmatprep.subr.bf16.mxu1 %v15633_v0 }
 0x54d   : > { %v3465_v38 = vpop.permute.xlu0 %3464 }
 0x54e   : > { %v3467_v39 = vsel %vm3466_vm4, %v3465_v38, 0 }
 0x54f   : > { %v3540_v40 = vand.u32 4294901760, %v3467_v39 }
 0x551   : > { %v3541_v41 = vsub.f32 %v3467_v39, %v3540_v40  ;;  %v4860_v39 = vld [vmem:[%s17267_s9] sm:$0x3f]  ;;  %s17274_s9 = sld [smem:[#allocation55_spill]] }
 0x553   : > { %v3542_v42 = vand.u32 4294901760, %v3541_v41 }
 0x555   : > { %v3543_v43 = vsub.f32 %v3541_v41, %v3542_v42 }
 0x557   : > { %v3544_v44 = vand.u32 4294901760, %v3543_v43 }
 0x559   : > { %13643 = vmatmul.mubr.f32.vlgmr.msra.gmra.mrb[4].mxu0 %v3544_v44  ;;  %13769 = vmatmul.mubr.f32.vlgmr.msra.gmra.mrb[8].mxu1 %v3544_v44 }
 0x55a   : > { %14543 = vmatpush3.bf16.msra.mxu1 %v14542_v28  ;;  %14489 = vmatpush3.bf16.msra.mxu0 %v14488_v27  ;;  %v6767_v28 = vand.u32 4294901760, %v6766_v24 }
 0x55b   : > { %13649 = vmatprep.mubr.msk.f32.mxu0 %vm15634_vm0, %v15635_v1  ;;  %13775 = vmatprep.mubr.msk.f32.mxu1 %vm15634_vm0, %v15635_v1 }
 0x55c   : > { %14544 = vmatprep.subr.bf16.mxu1 %v15633_v0  ;;  %14490 = vmatprep.subr.bf16.mxu0 %v15633_v0  ;;  %v6768_v32 = vsub.f32 %v6766_v24, %v6767_v28 }
 0x561   : > { %13650 = vmatmul.mubr.f32.vlgmr.msra.gmra.mrb[4].mxu0 %v3540_v40  ;;  %13776 = vmatmul.mubr.f32.vlgmr.msra.gmra.mrb[8].mxu1 %v3540_v40 }
 0x562   : > { %14546 = vmatpush3.bf16.msra.mxu1 %v14545_v31  ;;  %14492 = vmatpush3.bf16.msra.mxu0 %v14491_v33 }
 0x563   : > { %13656 = vmatprep.mubr.msk.f32.mxu0 %vm15634_vm0, %v15635_v1  ;;  %13782 = vmatprep.mubr.msk.f32.mxu1 %vm15634_vm0, %v15635_v1 }
 0x564   : > { %14547 = vmatprep.subr.bf16.mxu1 %v15633_v0  ;;  %14493 = vmatprep.subr.bf16.mxu0 %v15633_v0 }
 0x569   : > { %13657 = vmatmul.mubr.f32.vlgmr.msra.gmra.mrb[4].mxu0 %v3541_v41  ;;  %13783 = vmatmul.mubr.f32.vlgmr.msra.gmra.mrb[8].mxu1 %v3541_v41 }
 0x56a   : > { %14549 = vmatpush3.bf16.msra.mxu1 %v14539_v36  ;;  %14495 = vmatpush3.bf16.msra.mxu0 %v16556_v6 }
 0x56b   : > { %13663 = vmatprep.mubr.msk.f32.mxu0 %vm15634_vm0, %v15635_v1  ;;  %13789 = vmatprep.mubr.msk.f32.mxu1 %vm15634_vm0, %v15635_v1 }
 0x56c   : > { %14550 = vmatprep.subr.bf16.mxu1 %v15633_v0  ;;  %14496 = vmatprep.subr.bf16.mxu0 %v15633_v0 }
 0x571   : > { %13664 = vmatmul.mubr.f32.vlgmr.msra.gmra.mrb[4].mxu0 %v3542_v42  ;;  %13790 = vmatmul.mubr.f32.vlgmr.msra.gmra.mrb[8].mxu1 %v3542_v42 }
 0x572   : > { %14552 = vmatpush3.bf16.msra.mxu1 %v14551_v35  ;;  %14498 = vmatpush3.bf16.msra.mxu0 %v14497_v37  ;;  %v6769_v37 = vand.u32 4294901760, %v6768_v32  ;;  %v10757_v32 = vld [vmem:[#allocation19] sm:$0xff] }
 0x573   : > { %13670 = vmatprep.mubr.msk.f32.mxu0 %vm15634_vm0, %v15635_v1  ;;  %13796 = vmatprep.mubr.msk.f32.mxu1 %vm15634_vm0, %v15635_v1 }
 0x574   : > { %14553 = vmatprep.subr.bf16.mxu1 %v15633_v0  ;;  %14499 = vmatprep.subr.bf16.mxu0 %v15633_v0 }
 0x579   : > { %13671 = vmatmul.mubr.f32.vlgmr.msra.gmra.mrb[4].mxu0 %v3540_v40  ;;  %13797 = vmatmul.mubr.f32.vlgmr.msra.gmra.mrb[8].mxu1 %v3540_v40 }
 0x57a   : > { %14555 = vmatpush3.bf16.msra.mxu1 %v14539_v36  ;;  %14501 = vmatpush3.bf16.msra.mxu0 %v16556_v6  ;;  %v16688_v6 = vand.u32 4294901760, %v5333_v5 }
 0x57b   : > { %13677 = vmatprep.mubr.msk.f32.mxu0 %vm15634_vm0, %v15635_v1  ;;  %13803 = vmatprep.mubr.msk.f32.mxu1 %vm15634_vm0, %v15635_v1 }
 0x57c   : > { %14502 = vmatprep.subr.bf16.mxu0 %v15633_v0  ;;  %13866 = vmatprep.subr.mxu1 %v15635_v1  ;;  %v5413_v25 = vsub.f32 %v5333_v5, %v16688_v6 }
 0x581   : > { %13678 = vmatmul.mubr.f32.vlgmr.msra.gmra.mrb[4].mxu0 %v3540_v40  ;;  %13804 = vmatmul.mubr.f32.vlgmr.msra.gmra.mrb[8].mxu1 %v3540_v40  ;;  %v5784_v40 = vsel %vm5331_vm5, %v4860_v39, 0 }
 0x582   : > { %14504 = vmatpush3.bf16.msra.mxu0 %v14503_v54  ;;  %13684 = vmatprep.mubr.msk.f32.mxu0 %vm15634_vm0, %v15635_v1  ;;  %v5787_v41 = vand.u32 4294901760, %v5784_v40 }
 0x583   : > { %14505 = vmatprep.subr.bf16.mxu0 %v15633_v0  ;;  %13868 = vmatprep.mubr.msk.f32.mxu1 %vm15634_vm0, %v15635_v1 }
 0x584   : > { %13867 = vmatpush3.msra.mxu1 %v6236_v3  ;;  %v5864_v42 = vsub.f32 %v5784_v40, %v5787_v41 }
 0x585   : > { %13871 = vmatprep.subr.mxu1 %v15635_v1 }
 0x586   : > { %v5865_v43 = vand.u32 4294901760, %v5864_v42 }
 0x588   : > { %v5866_v44 = vsub.f32 %v5864_v42, %v5865_v43 }
 0x589   : > { %13685 = vmatmul.mubr.f32.vlgmr.msra.gmra.mrb[4].mxu0 %v16592_v34 }
 0x58a   : > { %14507 = vmatpush3.bf16.msra.mxu0 %v14506_v60  ;;  %13691 = vmatprep.mubr.msk.f32.mxu0 %vm15634_vm0, %v15635_v1  ;;  %v5867_v45 = vand.u32 4294901760, %v5866_v44  ;;  %v8124_v60 = vsub.f32 %v8122_v52, %v8123_v57 }
 0x58b   : > { %14508 = vmatprep.subr.bf16.mxu0 %v15633_v0 }
 0x58c   : > { %v8125_v63 = vand.u32 4294901760, %v8124_v60 }
 0x591   : > { %13692 = vmatmul.mubr.f32.vlgmr.msra.gmra.mrb[4].mxu0 %v16578_v26 }
 0x592   : > { %14510 = vmatpush3.bf16.msra.mxu0 %v14509_v61  ;;  %13698 = vmatprep.mubr.msk.f32.mxu0 %vm15634_vm0, %v15635_v1 }
 0x593   : > { %14511 = vmatprep.subr.bf16.mxu0 %v15633_v0 }
 0x599   : > { %13699 = vmatmul.mubr.f32.vlgmr.msra.gmra.mrb[4].mxu0 %v16581_v29  ;;  %v5414_v29 = vand.u32 4294901760, %v5413_v25 }
 0x59a   : > { %14513 = vmatpush3.bf16.msra.mxu0 %v14503_v54  ;;  %13705 = vmatprep.mubr.msk.f32.mxu0 %vm15634_vm0, %v15635_v1 }
 0x59b   : > { %14514 = vmatprep.subr.bf16.mxu0 %v15633_v0  ;;  %v5415_v33 = vsub.f32 %v5413_v25, %v5414_v29 }
 0x59d   : > { %v5416_v36 = vand.u32 4294901760, %v5415_v33 }
 0x5a1   : > { %13706 = vmatmul.mubr.f32.vlgmr.msra.gmra.mrb[4].mxu0 %v16584_v30 }
 0x5a2   : > { %14516 = vmatpush3.bf16.msra.mxu0 %v14515_v62  ;;  %13712 = vmatprep.mubr.msk.f32.mxu0 %vm15634_vm0, %v15635_v1 }
 0x5a3   : > { %14517 = vmatprep.subr.bf16.mxu0 %v15633_v0 }
 0x5a9   : > { %13713 = vmatmul.mubr.f32.vlgmr.msra.gmra.mrb[4].mxu0 %v16578_v26 }
 0x5aa   : > { %14519 = vmatpush3.bf16.msra.mxu0 %v14503_v54  ;;  %13719 = vmatprep.mubr.msk.f32.mxu0 %vm15634_vm0, %v15635_v1 }
 0x5ab   : > { %13806 = vmatprep.subr.mxu0 %v15635_v1 }
 0x5b1   : > { %13720 = vmatmul.mubr.f32.vlgmr.msra.gmra.mrb[4].mxu0 %v16578_v26 }
 0x5b2   : > { %13808 = vmatprep.mubr.msk.f32.mxu0 %vm15634_vm0, %v15635_v1  ;;  %13807 = vmatpush3.msra.mxu0 %v16688_v6 }
 0x5b3   : > { %13811 = vmatprep.subr.mxu0 %v15635_v1 }
 0x654   : > { %v5321_v8 = vpop.f32.mrb[8].mxu1 }
 0x655   : > { %v5781_v9 = vsel %vm5328_vm6, %v5321_v8, 0  ;;  %5326 = vrot.lane.b32.xlu1 %v5321_v8, %s15638_s20  ;;  %v13805_v10 = vpop.f32.mrb[9].mxu1  ;;  %v7222_v8 = vsub.f32 %v7142_v50, %v16807_v51  ;;  %s17273_s20 = sld [smem:[#allocation58_spill]] }
 0x656   : > { %v16693_v12 = vand.u32 4294901760, %v5781_v9 }
 0x658   : > { %v16696_v13 = vsub.f32 %v5781_v9, %v16693_v12 }
 0x65a   : > { %v16699_v15 = vand.u32 4294901760, %v16696_v13 }
 0x65c   : > { %v5855_v16 = vsub.f32 %v16696_v13, %v16699_v15 }
 0x65e   : > { %v16703_v18 = vand.u32 4294901760, %v5855_v16 }
 0x660   : > { %13869 = vmatmul.mubr.f32.vlgmr.msra.gmra.mrb[10].mxu1 %v16703_v18 }
 0x661   : > { %13872 = vmatpush3.msra.mxu1 %v6316_v17  ;;  %13873 = vmatprep.mubr.msk.f32.mxu1 %vm15634_vm0, %v15635_v1 }
 0x662   : > { %13876 = vmatprep.subr.mxu1 %v15635_v1 }
 0x668   : > { %13874 = vmatmul.mubr.f32.vlgmr.msra.gmra.mrb[10].mxu1 %v16693_v12 }
 0x669   : > { %13877 = vmatpush3.msra.mxu1 %v6313_v7  ;;  %13878 = vmatprep.mubr.msk.f32.mxu1 %vm15634_vm0, %v15635_v1 }
 0x66a   : > { %13881 = vmatprep.subr.mxu1 %v15635_v1 }
 0x670   : > { %13879 = vmatmul.mubr.f32.vlgmr.msra.gmra.mrb[10].mxu1 %v16696_v13 }
 0x671   : > { %13882 = vmatpush3.msra.mxu1 %v6236_v3  ;;  %13883 = vmatprep.mubr.msk.f32.mxu1 %vm15634_vm0, %v15635_v1 }
 0x672   : > { %13886 = vmatprep.subr.mxu1 %v15635_v1 }
 0x678   : > { %13884 = vmatmul.mubr.f32.vlgmr.msra.gmra.mrb[10].mxu1 %v16699_v15 }
 0x679   : > { %13887 = vmatpush3.msra.mxu1 %v6314_v11  ;;  %13888 = vmatprep.mubr.msk.f32.mxu1 %vm15634_vm0, %v15635_v1 }
 0x67a   : > { %13891 = vmatprep.subr.mxu1 %v15635_v1 }
 0x680   : > { %13889 = vmatmul.mubr.f32.vlgmr.msra.gmra.mrb[10].mxu1 %v16693_v12 }
 0x681   : > { %13892 = vmatpush3.msra.mxu1 %v6236_v3  ;;  %13893 = vmatprep.mubr.msk.f32.mxu1 %vm15634_vm0, %v15635_v1  ;;  %v8490_v3 = vld [vmem:[%s17270_s11] sm:$0x7]  ;;  %s1026_s11 = scalar_lea.vmem [#allocation26], %s16210_s26 }
 0x682   : > { %13896 = vmatprep.subr.mxu1 %v15635_v1  ;;  %v8493_v4 = vsel %vm7140_vm7, %v8490_v3, 0 }
 0x683   : > { %v8496_v7 = vand.u32 4294901760, %v8493_v4 }
 0x684   : > { %v16726_v21 = vpop.f32.mrb[4].mxu0 }
 0x685   : > { %v13721_v22 = vpop.f32.mrb[5].mxu0  ;;  %v8573_v9 = vsub.f32 %v8493_v4, %v8496_v7 }
 0x687   : > { %v8574_v14 = vand.u32 4294901760, %v8573_v9 }
 0x688   : > { %13894 = vmatmul.mubr.f32.vlgmr.msra.gmra.mrb[10].mxu1 %v16693_v12 }
 0x689   : > { %13897 = vmatpush3.msra.mxu1 %v6689_v23  ;;  %13898 = vmatprep.mubr.msk.f32.mxu1 %vm15634_vm0, %v15635_v1 }
 0x68a   : > { %13901 = vmatprep.subr.mxu1 %v15635_v1 }
 0x6c7   : > { %v5327_v26 = vpop.permute.xlu1 %5326 }
 0x6c8   : > { %v5329_v27 = vsel %vm5328_vm6, %v5327_v26, 0 }
 0x6c9   : > { %v5401_v30 = vand.u32 4294901760, %v5329_v27 }
 0x6cb   : > { %v5402_v31 = vsub.f32 %v5329_v27, %v5401_v30 }
 0x6cd   : > { %v5403_v34 = vand.u32 4294901760, %v5402_v31 }
 0x6cf   : > { %v5404_v35 = vsub.f32 %v5402_v31, %v5403_v34 }
 0x6d1   : > { %v5405_v38 = vand.u32 4294901760, %v5404_v35 }
 0x6d3   : > { %13809 = vmatmul.mubr.f32.vlgmr.msra.gmra.mrb[6].mxu0 %v5405_v38  ;;  %13899 = vmatmul.mubr.f32.vlgmr.msra.gmra.mrb[12].mxu1 %v5405_v38 }
 0x6d4   : > { %13902 = vmatpush3.msra.mxu1 %v6769_v37  ;;  %13812 = vmatpush3.msra.mxu0 %v5416_v36  ;;  %v10761_v37 = vsel %vm3466_vm4, %v16726_v21, 0 }
 0x6d5   : > { %13813 = vmatprep.mubr.msk.f32.mxu0 %vm15634_vm0, %v15635_v1  ;;  %13903 = vmatprep.mubr.msk.f32.mxu1 %vm15634_vm0, %v15635_v1  ;;  %v10833_v39 = vand.u32 4294901760, %v10761_v37 }
 0x6d6   : > { %13906 = vmatprep.subr.mxu1 %v15635_v1  ;;  %13816 = vmatprep.subr.mxu0 %v15635_v1 }
 0x6db   : > { %13814 = vmatmul.mubr.f32.vlgmr.msra.gmra.mrb[6].mxu0 %v5401_v30  ;;  %13904 = vmatmul.mubr.f32.vlgmr.msra.gmra.mrb[12].mxu1 %v5401_v30 }
 0x6dc   : > { %13907 = vmatpush3.msra.mxu1 %v6766_v24  ;;  %13817 = vmatpush3.msra.mxu0 %v5413_v25  ;;  %v6682_v24 = vld [vmem:[%s17271_s6] sm:$0x7] }
 0x6dd   : > { %13818 = vmatprep.mubr.msk.f32.mxu0 %vm15634_vm0, %v15635_v1  ;;  %13908 = vmatprep.mubr.msk.f32.mxu1 %vm15634_vm0, %v15635_v1  ;;  %v7593_v25 = vsel %vm7140_vm7, %v6682_v24, 0 }
 0x6de   : > { %13911 = vmatprep.subr.mxu1 %v15635_v1  ;;  %13821 = vmatprep.subr.mxu0 %v15635_v1  ;;  %v7596_v26 = vand.u32 4294901760, %v7593_v25 }
 0x6e0   : > { %v7673_v27 = vsub.f32 %v7593_v25, %v7596_v26 }
 0x6e3   : > { %13819 = vmatmul.mubr.f32.vlgmr.msra.gmra.mrb[6].mxu0 %v5402_v31  ;;  %13909 = vmatmul.mubr.f32.vlgmr.msra.gmra.mrb[12].mxu1 %v5402_v31  ;;  %v10758_v31 = vld [vmem:[#allocation19 + $0x8] sm:$0xf] }
 0x6e4   : > { %13912 = vmatpush3.msra.mxu1 %v6689_v23  ;;  %13822 = vmatpush3.msra.mxu0 %v16688_v6  ;;  %v10764_v33 = vsel %vm3469_vm3, %v10758_v31, 0 }
 0x6e5   : > { %13823 = vmatprep.mubr.msk.f32.mxu0 %vm15634_vm0, %v15635_v1  ;;  %13913 = vmatprep.mubr.msk.f32.mxu1 %vm15634_vm0, %v15635_v1  ;;  %v10770_v35 = vand.u32 4294901760, %v10764_v33 }
 0x6e6   : > { %13916 = vmatprep.subr.mxu1 %v15635_v1  ;;  %13826 = vmatprep.subr.mxu0 %v15635_v1 }
 0x6e7   : > { %v10852_v38 = vsub.f32 %v10764_v33, %v10770_v35 }
 0x6eb   : > { %13824 = vmatmul.mubr.f32.vlgmr.msra.gmra.mrb[6].mxu0 %v5403_v34  ;;  %13914 = vmatmul.mubr.f32.vlgmr.msra.gmra.mrb[12].mxu1 %v5403_v34  ;;  %v10767_v34 = vand.u32 4294901760, %v10757_v32 }
 0x6ec   : > { %13917 = vmatpush3.msra.mxu1 %v6767_v28  ;;  %13827 = vmatpush3.msra.mxu0 %v5414_v29  ;;  %v7674_v28 = vand.u32 4294901760, %v7673_v27 }
 0x6ed   : > { %13828 = vmatprep.mubr.msk.f32.mxu0 %vm15634_vm0, %v15635_v1  ;;  %13918 = vmatprep.mubr.msk.f32.mxu1 %vm15634_vm0, %v15635_v1  ;;  %v10845_v36 = vsub.f32 %v10757_v32, %v10767_v34 }
 0x6ee   : > { %13921 = vmatprep.subr.mxu1 %v15635_v1  ;;  %13831 = vmatprep.subr.mxu0 %v15635_v1  ;;  %v7675_v29 = vsub.f32 %v7673_v27, %v7674_v28 }
 0x6ef   : > { %v10846_v40 = vand.u32 4294901760, %v10845_v36 }
 0x6f1   : > { %v10847_v21 = vsub.f32 %v10845_v36, %v10846_v40 }
 0x6f3   : > { %13829 = vmatmul.mubr.f32.vlgmr.msra.gmra.mrb[6].mxu0 %v5401_v30  ;;  %13919 = vmatmul.mubr.f32.vlgmr.msra.gmra.mrb[12].mxu1 %v5401_v30  ;;  %v10848_v46 = vand.u32 4294901760, %v10847_v21 }
 0x6f4   : > { %13922 = vmatpush3.msra.mxu1 %v6689_v23  ;;  %13832 = vmatpush3.msra.mxu0 %v16688_v6 }
 0x6f5   : > { %13833 = vmatprep.mubr.msk.f32.mxu0 %vm15634_vm0, %v15635_v1  ;;  %13923 = vmatprep.mubr.msk.f32.mxu1 %vm15634_vm0, %v15635_v1 }
 0x6f6   : > { %13836 = vmatprep.subr.mxu0 %v15635_v1  ;;  %13986 = vmatprep.subr.mxu1 %v15635_v1 }
 0x6fb   : > { %13834 = vmatmul.mubr.f32.vlgmr.msra.gmra.mrb[6].mxu0 %v5401_v30  ;;  %13924 = vmatmul.mubr.f32.vlgmr.msra.gmra.mrb[12].mxu1 %v5401_v30  ;;  %v7676_v30 = vand.u32 4294901760, %v7675_v29 }
 0x6fc   : > { %13837 = vmatpush3.msra.mxu0 %v5787_v41  ;;  %13838 = vmatprep.mubr.msk.f32.mxu0 %vm15634_vm0, %v15635_v1 }
 0x6fd   : > { %13841 = vmatprep.subr.mxu0 %v15635_v1  ;;  %13988 = vmatprep.mubr.msk.f32.mxu1 %vm15634_vm0, %v15635_v1 }
 0x6fe   : > { %13987 = vmatpush3.msra.mxu1 %v8045_v48 }
 0x6ff   : > { %13991 = vmatprep.subr.mxu1 %v15635_v1 }
 0x703   : > { %13839 = vmatmul.mubr.f32.vlgmr.msra.gmra.mrb[6].mxu0 %v16703_v18  ;;  %v8575_v18 = vsub.f32 %v8573_v9, %v8574_v14 }
 0x704   : > { %13842 = vmatpush3.msra.mxu0 %v5867_v45  ;;  %13843 = vmatprep.mubr.msk.f32.mxu0 %vm15634_vm0, %v15635_v1  ;;  %v14557_v45 = vpack.c.bf16 %v10770_v35, %v10767_v34 }
 0x705   : > { %13846 = vmatprep.subr.mxu0 %v15635_v1  ;;  %v8576_v23 = vand.u32 4294901760, %v8575_v18 }
 0x70b   : > { %13844 = vmatmul.mubr.f32.vlgmr.msra.gmra.mrb[6].mxu0 %v16693_v12 }
 0x70c   : > { %13847 = vmatpush3.msra.mxu0 %v5864_v42  ;;  %13848 = vmatprep.mubr.msk.f32.mxu0 %vm15634_vm0, %v15635_v1  ;;  %v10834_v42 = vsub.f32 %v10761_v37, %v10833_v39 }
 0x70d   : > { %13851 = vmatprep.subr.mxu0 %v15635_v1 }
 0x70e   : > { %v10835_v44 = vand.u32 4294901760, %v10834_v42 }
 0x713   : > { %13849 = vmatmul.mubr.f32.vlgmr.msra.gmra.mrb[6].mxu0 %v16696_v13 }
 0x714   : > { %13852 = vmatpush3.msra.mxu0 %v5787_v41  ;;  %13853 = vmatprep.mubr.msk.f32.mxu0 %vm15634_vm0, %v15635_v1 }
 0x715   : > { %13856 = vmatprep.subr.mxu0 %v15635_v1 }
 0x71b   : > { %13854 = vmatmul.mubr.f32.vlgmr.msra.gmra.mrb[6].mxu0 %v16699_v15 }
 0x71c   : > { %13857 = vmatpush3.msra.mxu0 %v5865_v43  ;;  %13858 = vmatprep.mubr.msk.f32.mxu0 %vm15634_vm0, %v15635_v1 }
 0x71d   : > { %13861 = vmatprep.subr.mxu0 %v15635_v1 }
 0x723   : > { %13859 = vmatmul.mubr.f32.vlgmr.msra.gmra.mrb[6].mxu0 %v16693_v12 }
 0x724   : > { %13862 = vmatpush3.msra.mxu0 %v5787_v41  ;;  %13863 = vmatprep.mubr.msk.f32.mxu0 %vm15634_vm0, %v15635_v1  ;;  %v10853_v41 = vand.u32 4294901760, %v10852_v38 }
 0x725   : > { %13926 = vmatprep.subr.mxu0 %v15635_v1 }
 0x726   : > { %v10854_v43 = vsub.f32 %v10852_v38, %v10853_v41 }
 0x728   : > { %v10855_v47 = vand.u32 4294901760, %v10854_v43 }
 0x72a   : > { %v14560_v49 = vpack.c.bf16 %v10855_v47, %v10848_v46 }
 0x72b   : > { %13864 = vmatmul.mubr.f32.vlgmr.msra.gmra.mrb[6].mxu0 %v16693_v12  ;;  %v7223_v12 = vand.u32 4294901760, %v7222_v8 }
 0x72c   : > { %13928 = vmatprep.mubr.msk.f32.mxu0 %vm15634_vm0, %v15635_v1  ;;  %13927 = vmatpush3.msra.mxu0 %v16807_v51 }
 0x72d   : > { %13931 = vmatprep.subr.mxu0 %v15635_v1  ;;  %v7224_v16 = vsub.f32 %v7222_v8, %v7223_v12 }
 0x72f   : > { %v7225_v20 = vand.u32 4294901760, %v7224_v16 }
 0x7ce   : > { %v7130_v53 = vpop.f32.mrb[12].mxu1 }
 0x7cf   : > { %v7590_v54 = vsel %vm7137_vm8, %v7130_v53, 0  ;;  %7135 = vrot.lane.b32.xlu1 %v7130_v53, %s15639_s23  ;;  %v13925_v55 = vpop.f32.mrb[13].mxu1  ;;  %v8942_v53 = vld [vmem:[%s17272_s25] sm:$0x7]  ;;  %s12650_s25 = scalar_lea.sflag [#allocation4], %s16210_s26 }
 0x7d0   : > { %v16812_v58 = vand.u32 4294901760, %v7590_v54 }
 0x7d2   : > { %v16815_v59 = vsub.f32 %v7590_v54, %v16812_v58  ;;  %v8948_v54 = vsel %vm7140_vm7, %v8942_v53, 0  ;;  %v10755_v53 = vld [vmem:[%s17276_s22] sm:$0xff] }
 0x7d3   : > { %v8951_v55 = vand.u32 4294901760, %v8948_v54 }
 0x7d4   : > { %v16818_v61 = vand.u32 4294901760, %v16815_v59 }
 0x7d6   : > { %v7664_v62 = vsub.f32 %v16815_v59, %v16818_v61 }
 0x7d8   : > { %v16822_v2 = vand.u32 4294901760, %v7664_v62 }
 0x7da   : > { %13989 = vmatmul.mubr.f32.vlgmr.msra.gmra.mrb[14].mxu1 %v16822_v2 }
 0x7db   : > { %13992 = vmatpush3.msra.mxu1 %v8125_v63  ;;  %13993 = vmatprep.mubr.msk.f32.mxu1 %vm15634_vm0, %v15635_v1 }
 0x7dc   : > { %13996 = vmatprep.subr.mxu1 %v15635_v1 }
 0x7e2   : > { %13994 = vmatmul.mubr.f32.vlgmr.msra.gmra.mrb[14].mxu1 %v16812_v58 }
 0x7e3   : > { %13997 = vmatpush3.msra.mxu1 %v8122_v52  ;;  %13998 = vmatprep.mubr.msk.f32.mxu1 %vm15634_vm0, %v15635_v1  ;;  %v14569_v52 = vpack.c.bf16 %v10853_v41, %v10846_v40 }
 0x7e4   : > { %14001 = vmatprep.subr.mxu1 %v15635_v1 }
 0x7ea   : > { %13999 = vmatmul.mubr.f32.vlgmr.msra.gmra.mrb[14].mxu1 %v16815_v59 }
 0x7eb   : > { %14002 = vmatpush3.msra.mxu1 %v8045_v48  ;;  %14003 = vmatprep.mubr.msk.f32.mxu1 %vm15634_vm0, %v15635_v1 }
 0x7ec   : > { %14006 = vmatprep.subr.mxu1 %v15635_v1 }
 0x7f2   : > { %14004 = vmatmul.mubr.f32.vlgmr.msra.gmra.mrb[14].mxu1 %v16818_v61 }
 0x7f3   : > { %14007 = vmatpush3.msra.mxu1 %v8123_v57  ;;  %14008 = vmatprep.mubr.msk.f32.mxu1 %vm15634_vm0, %v15635_v1 }
 0x7f4   : > { %14011 = vmatprep.subr.mxu1 %v15635_v1 }
 0x7fa   : > { %14009 = vmatmul.mubr.f32.vlgmr.msra.gmra.mrb[14].mxu1 %v16812_v58 }
 0x7fb   : > { %14012 = vmatpush3.msra.mxu1 %v8045_v48  ;;  %14013 = vmatprep.mubr.msk.f32.mxu1 %vm15634_vm0, %v15635_v1  ;;  %v10836_v48 = vsub.f32 %v10834_v42, %v10835_v44 }
 0x7fc   : > { %14016 = vmatprep.subr.mxu1 %v15635_v1 }
 0x7fd   : > { %v10837_v50 = vand.u32 4294901760, %v10836_v48 }
 0x7fe   : > { %v16848_v5 = vpop.f32.mrb[6].mxu0 }
 0x7ff   : > { %v13865_v6 = vpop.f32.mrb[7].mxu0 }
 0x802   : > { %14014 = vmatmul.mubr.f32.vlgmr.msra.gmra.mrb[14].mxu1 %v16812_v58 }
 0x803   : > { %14017 = vmatpush3.msra.mxu1 %v8496_v7  ;;  %14018 = vmatprep.mubr.msk.f32.mxu1 %vm15634_vm0, %v15635_v1 }
 0x804   : > { %14021 = vmatprep.subr.mxu1 %v15635_v1 }
 0x841   : > { %v7136_v10 = vpop.permute.xlu1 %7135 }
 0x842   : > { %v7138_v11 = vsel %vm7137_vm8, %v7136_v10, 0  ;;  %v8491_v10 = vld [vmem:[%s17273_s20] sm:$0x1]  ;;  %s15524_s20 = sshll.u32 %s15640_s28, 4  ;;  %s15525_s20 = int_to_ptr.vmem [resolvable:$false] %s15524_s20 }
 0x843   : > { %v7210_v13 = vand.u32 4294901760, %v7138_v11  ;;  %s15526_s10 = scalar_lea.vmem %s15525_s20, 32 }
 0x845   : > { %v7211_v15 = vsub.f32 %v7138_v11, %v7210_v13 }
 0x847   : > { %v7212_v17 = vand.u32 4294901760, %v7211_v15 }
 0x849   : > { %v7213_v19 = vsub.f32 %v7211_v15, %v7212_v17 }
 0x84b   : > { %v7214_v22 = vand.u32 4294901760, %v7213_v19 }
 0x84d   : > { %13929 = vmatmul.mubr.f32.vlgmr.msra.gmra.mrb[8].mxu0 %v7214_v22  ;;  %14019 = vmatmul.mubr.f32.vlgmr.msra.gmra.mrb[14].mxu1 %v7214_v22 }
 0x84e   : > { %13932 = vmatpush3.msra.mxu0 %v7225_v20  ;;  %13933 = vmatprep.mubr.msk.f32.mxu0 %vm15634_vm0, %v15635_v1 }
 0x84f   : > { %14022 = vmatpush3.msra.mxu1 %v8576_v23  ;;  %14023 = vmatprep.mubr.msk.f32.mxu1 %vm15634_vm0, %v15635_v1 }
 0x850   : > { %13936 = vmatprep.subr.mxu0 %v15635_v1  ;;  %14026 = vmatprep.subr.mxu1 %v15635_v1 }
 0x855   : > { %13934 = vmatmul.mubr.f32.vlgmr.msra.gmra.mrb[8].mxu0 %v7210_v13  ;;  %14024 = vmatmul.mubr.f32.vlgmr.msra.gmra.mrb[14].mxu1 %v7210_v13 }
 0x856   : > { %13937 = vmatpush3.msra.mxu0 %v7222_v8  ;;  %13938 = vmatprep.mubr.msk.f32.mxu0 %vm15634_vm0, %v15635_v1 }
 0x857   : > { %14027 = vmatpush3.msra.mxu1 %v8573_v9  ;;  %14028 = vmatprep.mubr.msk.f32.mxu1 %vm15634_vm0, %v15635_v1 }
 0x858   : > { %13941 = vmatprep.subr.mxu0 %v15635_v1  ;;  %14031 = vmatprep.subr.mxu1 %v15635_v1 }
 0x85d   : > { %13939 = vmatmul.mubr.f32.vlgmr.msra.gmra.mrb[8].mxu0 %v7211_v15  ;;  %14029 = vmatmul.mubr.f32.vlgmr.msra.gmra.mrb[14].mxu1 %v7211_v15 }
 0x85e   : > { %13942 = vmatpush3.msra.mxu0 %v16807_v51  ;;  %13943 = vmatprep.mubr.msk.f32.mxu0 %vm15634_vm0, %v15635_v1 }
 0x85f   : > { %14032 = vmatpush3.msra.mxu1 %v8496_v7  ;;  %14033 = vmatprep.mubr.msk.f32.mxu1 %vm15634_vm0, %v15635_v1 }
 0x860   : > { %13946 = vmatprep.subr.mxu0 %v15635_v1  ;;  %14036 = vmatprep.subr.mxu1 %v15635_v1 }
 0x865   : > { %13944 = vmatmul.mubr.f32.vlgmr.msra.gmra.mrb[8].mxu0 %v7212_v17  ;;  %14034 = vmatmul.mubr.f32.vlgmr.msra.gmra.mrb[14].mxu1 %v7212_v17 }
 0x866   : > { %13947 = vmatpush3.msra.mxu0 %v7223_v12  ;;  %13948 = vmatprep.mubr.msk.f32.mxu0 %vm15634_vm0, %v15635_v1  ;;  %v8941_v12 = vld [vmem:[%s17274_s9] sm:$0x7]  ;;  %s12662_s9 = sshll.u32 %s1026_s11, 4  ;;  %s17112_s9 = int_to_ptr.vmem [resolvable:$true] %s12662_s9 }
 0x867   : > { %14037 = vmatpush3.msra.mxu1 %v8574_v14  ;;  %14038 = vmatprep.mubr.msk.f32.mxu1 %vm15634_vm0, %v15635_v1  ;;  %s15520_s23 = scalar_lea.vmem %s17112_s9, 16  ;;  %p15527_p5 = scmp.lt.s32.totalorder %s17112_s9, %s15525_s20 }
 0x868   : > { %13951 = vmatprep.subr.mxu0 %v15635_v1  ;;  %14041 = vmatprep.subr.mxu1 %v15635_v1  ;;  %p15521_p4 = scmp.ne.s32.totalorder %s17112_s9, %s15520_s23  ;;  %p15528_p7 = scmp.lt.s32.totalorder %s15526_s10, %s15520_s23 }
 0x86a   : > { %p15522_p11 = pnand %p15521_p4, %p17278_p10  ;;  %p15529_p6 = por %p15528_p7, %p15527_p5 }
 0x86c   : > { %p15523_p8 = pneg %p15522_p11 }
 0x86d   : > { %13949 = vmatmul.mubr.f32.vlgmr.msra.gmra.mrb[8].mxu0 %v7210_v13  ;;  %14039 = vmatmul.mubr.f32.vlgmr.msra.gmra.mrb[14].mxu1 %v7210_v13 }
 0x86e   : > { %13952 = vmatpush3.msra.mxu0 %v16807_v51  ;;  %13953 = vmatprep.mubr.msk.f32.mxu0 %vm15634_vm0, %v15635_v1  ;;  %v14563_v51 = vpack.c.bf16 %v10852_v38, %v10845_v36  ;;  %v9848_v38 = vld [vmem:[%s17275_s2] sm:$0x3f]  ;;  %s17277_s2 = sld [smem:[#allocation59_spill]]  ;;  %p15530_p9 = pnand %p15529_p6, %p15523_p8 }
 0x86f   : > { %14042 = vmatpush3.msra.mxu1 %v8496_v7  ;;  %14043 = vmatprep.mubr.msk.f32.mxu1 %vm15634_vm0, %v15635_v1 }
 0x870   : > { %13956 = vmatprep.subr.mxu0 %v15635_v1  ;;  %14046 = vmatprep.subr.mxu1 %v15635_v1 }
 0x874   : > { %s17110_s5 = scalar_lea.hbm %s17277_s2, %s12891_s0 }
 0x875   : > { %13954 = vmatmul.mubr.f32.vlgmr.msra.gmra.mrb[8].mxu0 %v7210_v13  ;;  %14044 = vmatmul.mubr.f32.vlgmr.msra.gmra.mrb[14].mxu1 %v7210_v13  ;;  %v9400_v13 = vsel %vm7140_vm7, %v8941_v12, 0 }
 0x876   : > { %13957 = vmatpush3.msra.mxu0 %v7596_v26  ;;  %13958 = vmatprep.mubr.msk.f32.mxu0 %vm15634_vm0, %v15635_v1  ;;  %v9403_v15 = vand.u32 4294901760, %v9400_v13 }
 0x877   : > { %13961 = vmatprep.subr.mxu0 %v15635_v1  ;;  %14048 = vmatprep.mubr.msk.f32.mxu1 %vm15634_vm0, %v15635_v1 }
 0x878   : > { %14047 = vmatpush3.msra.mxu1 %v8951_v55  ;;  %v9480_v17 = vsub.f32 %v9400_v13, %v9403_v15 }
 0x879   : > { %14051 = vmatprep.subr.mxu1 %v15635_v1 }
 0x87a   : > { %v9481_v19 = vand.u32 4294901760, %v9480_v17 }
 0x87c   : > { %v9482_v22 = vsub.f32 %v9480_v17, %v9481_v19 }
 0x87d   : > { %13959 = vmatmul.mubr.f32.vlgmr.msra.gmra.mrb[8].mxu0 %v16822_v2 }
 0x87e   : > { %13962 = vmatpush3.msra.mxu0 %v7676_v30  ;;  %13963 = vmatprep.mubr.msk.f32.mxu0 %vm15634_vm0, %v15635_v1  ;;  %v9483_v24 = vand.u32 4294901760, %v9482_v22  ;;  %v11698_v22 = vsel %vm1561_vm2, %v16549_v56, 0 }
 0x87f   : > { %13966 = vmatprep.subr.mxu0 %v15635_v1 }
 0x885   : > { %13964 = vmatmul.mubr.f32.vlgmr.msra.gmra.mrb[8].mxu0 %v16812_v58 }
 0x886   : > { %13967 = vmatpush3.msra.mxu0 %v7673_v27  ;;  %13968 = vmatprep.mubr.msk.f32.mxu0 %vm15634_vm0, %v15635_v1 }
 0x887   : > { %13971 = vmatprep.subr.mxu0 %v15635_v1 }
 0x88d   : > { %13969 = vmatmul.mubr.f32.vlgmr.msra.gmra.mrb[8].mxu0 %v16815_v59  ;;  %v9028_v59 = vsub.f32 %v8948_v54, %v8951_v55 }
 0x88e   : > { %13972 = vmatpush3.msra.mxu0 %v7596_v26  ;;  %13973 = vmatprep.mubr.msk.f32.mxu0 %vm15634_vm0, %v15635_v1 }
 0x88f   : > { %13976 = vmatprep.subr.mxu0 %v15635_v1  ;;  %v9029_v63 = vand.u32 4294901760, %v9028_v59 }
 0x891   : > { %v9030_v4 = vsub.f32 %v9028_v59, %v9029_v63 }
 0x893   : > { %v9031_v8 = vand.u32 4294901760, %v9030_v4 }
 0x895   : > { %13974 = vmatmul.mubr.f32.vlgmr.msra.gmra.mrb[8].mxu0 %v16818_v61 }
 0x896   : > { %13977 = vmatpush3.msra.mxu0 %v7674_v28  ;;  %13978 = vmatprep.mubr.msk.f32.mxu0 %vm15634_vm0, %v15635_v1  ;;  %v9852_v28 = vsel %vm5328_vm6, %v16848_v5, 0 }
 0x897   : > { %13981 = vmatprep.subr.mxu0 %v15635_v1  ;;  %v9923_v30 = vand.u32 4294901760, %v9852_v28 }
 0x899   : > { %v9924_v32 = vsub.f32 %v9852_v28, %v9923_v30 }
 0x89b   : > { %v9925_v34 = vand.u32 4294901760, %v9924_v32 }
 0x89d   : > { %13979 = vmatmul.mubr.f32.vlgmr.msra.gmra.mrb[8].mxu0 %v16812_v58  ;;  %v9926_v35 = vsub.f32 %v9924_v32, %v9925_v34 }
 0x89e   : > { %13982 = vmatpush3.msra.mxu0 %v7596_v26  ;;  %13983 = vmatprep.mubr.msk.f32.mxu0 %vm15634_vm0, %v15635_v1  ;;  %v9849_v26 = vld [vmem:[#allocation23] sm:$0x3f] }
 0x89f   : > { %14556 = vmatprep.subr.bf16.mxu0 %v15633_v0  ;;  %v9855_v27 = vsel %vm5331_vm5, %v9849_v26, 0  ;;  %v9927_v36 = vand.u32 4294901760, %v9926_v35  ;;  %v11695_v26 = vld [vmem:[#allocation13 + $0x10] sm:$0xff] }
 0x8a0   : > { %v9858_v29 = vand.u32 4294901760, %v9855_v27 }
 0x8a2   : > { %v9935_v31 = vsub.f32 %v9855_v27, %v9858_v29  ;;  %v11707_v27 = vand.u32 4294901760, %v11695_v26 }
 0x8a4   : > { %v9936_v33 = vand.u32 4294901760, %v9935_v31  ;;  %v11794_v56 = vsub.f32 %v11695_v26, %v11707_v27 }
 0x8a5   : > { %13984 = vmatmul.mubr.f32.vlgmr.msra.gmra.mrb[8].mxu0 %v16812_v58 }
 0x8a6   : > { %14558 = vmatpush3.bf16.msra.mxu0 %v14557_v45  ;;  %14170 = vmatprep.mubr.msk.f32.mxu0 %vm15634_vm0, %v15635_v1  ;;  %v9937_v5 = vsub.f32 %v9935_v31, %v9936_v33 }
 0x8a7   : > { %14559 = vmatprep.subr.bf16.mxu0 %v15633_v0 }
 0x8a8   : > { %v9938_v37 = vand.u32 4294901760, %v9937_v5 }
 0x8a9   : > { %14171 = vmatmul.mubr.f32.vlgmr.msra.gmra.mrb[2].mxu0 %v10837_v50 }
 0x8aa   : > { %14561 = vmatpush3.bf16.msra.mxu0 %v14560_v49  ;;  %14177 = vmatprep.mubr.msk.f32.mxu0 %vm15634_vm0, %v15635_v1 }
 0x8ab   : > { %14562 = vmatprep.subr.bf16.mxu0 %v15633_v0 }
 0x8b1   : > { %14178 = vmatmul.mubr.f32.vlgmr.msra.gmra.mrb[2].mxu0 %v10833_v39 }
 0x8b2   : > { %14564 = vmatpush3.bf16.msra.mxu0 %v14563_v51  ;;  %14184 = vmatprep.mubr.msk.f32.mxu0 %vm15634_vm0, %v15635_v1 }
 0x8b3   : > { %14565 = vmatprep.subr.bf16.mxu0 %v15633_v0 }
 0x8b9   : > { %14185 = vmatmul.mubr.f32.vlgmr.msra.gmra.mrb[2].mxu0 %v10834_v42 }
 0x8ba   : > { %14567 = vmatpush3.bf16.msra.mxu0 %v14557_v45  ;;  %14191 = vmatprep.mubr.msk.f32.mxu0 %vm15634_vm0, %v15635_v1 }
 0x8bb   : > { %14568 = vmatprep.subr.bf16.mxu0 %v15633_v0 }
 0x8c1   : > { %14192 = vmatmul.mubr.f32.vlgmr.msra.gmra.mrb[2].mxu0 %v10835_v44 }
 0x8c2   : > { %14570 = vmatpush3.bf16.msra.mxu0 %v14569_v52  ;;  %14198 = vmatprep.mubr.msk.f32.mxu0 %vm15634_vm0, %v15635_v1  ;;  %v10756_v52 = vld [vmem:[%s17276_s22 + $0x8] sm:$0xf] }
 0x8c3   : > { %14571 = vmatprep.subr.bf16.mxu0 %v15633_v0  ;;  %v11229_v54 = vsel %vm3469_vm3, %v10756_v52, 0  ;;  %v11692_v52 = vld [vmem:[#allocation11 + $0x10] sm:$0xff] }
 0x8c9   : > { %14199 = vmatmul.mubr.f32.vlgmr.msra.gmra.mrb[2].mxu0 %v10833_v39 }
 0x8ca   : > { %14573 = vmatpush3.bf16.msra.mxu0 %v14557_v45  ;;  %14205 = vmatprep.mubr.msk.f32.mxu0 %vm15634_vm0, %v15635_v1 }
 0x8cb   : > { %14574 = vmatprep.subr.bf16.mxu0 %v15633_v0 }
 0x8d1   : > { %14206 = vmatmul.mubr.f32.vlgmr.msra.gmra.mrb[2].mxu0 %v10833_v39  ;;  %v10307_v39 = vsel %vm5331_vm5, %v9848_v38, 0 }
 0x8d2   : > { %14212 = vmatprep.mubr.msk.f32.mxu0 %vm15634_vm0, %v15635_v1  ;;  %v10310_v40 = vand.u32 4294901760, %v10307_v39 }
 0x8d4   : > { %v10387_v41 = vsub.f32 %v10307_v39, %v10310_v40 }
 0x8d6   : > { %v10388_v44 = vand.u32 4294901760, %v10387_v41 }
 0x8d8   : > { %v10389_v47 = vsub.f32 %v10387_v41, %v10388_v44 }
 0x8da   : > { %v10390_v50 = vand.u32 4294901760, %v10389_v47 }
 0x948   : > { %v8937_v57 = vpop.f32.mrb[14].mxu1 }
 0x949   : > { %v14045_v58 = vpop.f32.mrb[15].mxu1  ;;  %v14629_v11 = vadd.f32 %v8937_v57, %v8491_v10  ;;  %v11235_v57 = vand.u32 4294901760, %v11229_v54 }
 0x94b   : > { %v9397_v14 = vsel %vm7137_vm8, %v14629_v11, 0 }
 0x94c   : > { %v9468_v16 = vand.u32 4294901760, %v9397_v14 }
 0x94e   : > { %v9469_v18 = vsub.f32 %v9397_v14, %v9468_v16 }
 0x950   : > { %v9470_v20 = vand.u32 4294901760, %v9469_v18 }
 0x952   : > { %v9471_v23 = vsub.f32 %v9469_v18, %v9470_v20 }
 0x954   : > { %v9472_v25 = vand.u32 4294901760, %v9471_v23 }
 0x978   : > { %v8037_v60 = vpop.f32.mrb[8].mxu0 }
 0x979   : > { %v8945_v61 = vsel %vm7137_vm8, %v8037_v60, 0  ;;  %v13985_v62 = vpop.f32.mrb[9].mxu0  ;;  %v11317_v60 = vsub.f32 %v11229_v54, %v11235_v57 }
 0x97a   : > { %v9016_v2 = vand.u32 4294901760, %v8945_v61 }
 0x97b   : > { %v11318_v62 = vand.u32 4294901760, %v11317_v60 }
 0x97c   : > { %v9017_v3 = vsub.f32 %v8945_v61, %v9016_v2 }
 0x97e   : > { %v9018_v6 = vand.u32 4294901760, %v9017_v3 }
 0x980   : > { %v9019_v7 = vsub.f32 %v9017_v3, %v9018_v6 }
 0x982   : > { %v9020_v9 = vand.u32 4294901760, %v9019_v7 }
 0x984   : > { %14049 = vmatmul.mubr.f32.vlgmr.msra.gmra.mrb[10].mxu1 %v9020_v9 }
 0x985   : > { %14052 = vmatpush3.msra.mxu1 %v9031_v8  ;;  %14053 = vmatprep.mubr.msk.f32.mxu1 %vm15634_vm0, %v15635_v1 }
 0x986   : > { %14056 = vmatprep.subr.mxu1 %v15635_v1 }
 0x98c   : > { %14054 = vmatmul.mubr.f32.vlgmr.msra.gmra.mrb[10].mxu1 %v9016_v2 }
 0x98d   : > { %14057 = vmatpush3.msra.mxu1 %v9028_v59  ;;  %14058 = vmatprep.mubr.msk.f32.mxu1 %vm15634_vm0, %v15635_v1 }
 0x98e   : > { %14061 = vmatprep.subr.mxu1 %v15635_v1 }
 0x994   : > { %14059 = vmatmul.mubr.f32.vlgmr.msra.gmra.mrb[10].mxu1 %v9017_v3 }
 0x995   : > { %14062 = vmatpush3.msra.mxu1 %v8951_v55  ;;  %14063 = vmatprep.mubr.msk.f32.mxu1 %vm15634_vm0, %v15635_v1 }
 0x996   : > { %14066 = vmatprep.subr.mxu1 %v15635_v1 }
 0x99c   : > { %14064 = vmatmul.mubr.f32.vlgmr.msra.gmra.mrb[10].mxu1 %v9018_v6 }
 0x99d   : > { %14067 = vmatpush3.msra.mxu1 %v9029_v63  ;;  %14068 = vmatprep.mubr.msk.f32.mxu1 %vm15634_vm0, %v15635_v1 }
 0x99e   : > { %14071 = vmatprep.subr.mxu1 %v15635_v1 }
 0x9a4   : > { %14069 = vmatmul.mubr.f32.vlgmr.msra.gmra.mrb[10].mxu1 %v9016_v2 }
 0x9a5   : > { %14072 = vmatpush3.msra.mxu1 %v8951_v55  ;;  %14073 = vmatprep.mubr.msk.f32.mxu1 %vm15634_vm0, %v15635_v1  ;;  %v11232_v55 = vand.u32 4294901760, %v10755_v53 }
 0x9a6   : > { %14076 = vmatprep.subr.mxu1 %v15635_v1 }
 0x9a7   : > { %v14575_v58 = vpack.c.bf16 %v11235_v57, %v11232_v55  ;;  %v11310_v59 = vsub.f32 %v10755_v53, %v11232_v55  ;;  %v12182_v53 = vand.u32 4294901760, %v11692_v52 }
 0x9a9   : > { %14576 = vmatpush3.bf16.msra.mxu0 %v14575_v58  ;;  %v11311_v61 = vand.u32 4294901760, %v11310_v59  ;;  %v14581_v7 = vpack.c.bf16 %v11317_v60, %v11310_v59 }
 0x9aa   : > { %14577 = vmatprep.subr.bf16.mxu0 %v15633_v0 }
 0x9ab   : > { %v11312_v63 = vsub.f32 %v11310_v59, %v11311_v61  ;;  %v14587_v8 = vpack.c.bf16 %v11318_v62, %v11311_v61 }
 0x9ac   : > { %14074 = vmatmul.mubr.f32.vlgmr.msra.gmra.mrb[10].mxu1 %v9016_v2  ;;  %v11319_v2 = vsub.f32 %v11317_v60, %v11318_v62 }
 0x9ad   : > { %14077 = vmatpush3.msra.mxu1 %v9403_v15  ;;  %14078 = vmatprep.mubr.msk.f32.mxu1 %vm15634_vm0, %v15635_v1  ;;  %v11313_v3 = vand.u32 4294901760, %v11312_v63 }
 0x9ae   : > { %14081 = vmatprep.subr.mxu1 %v15635_v1  ;;  %v11320_v4 = vand.u32 4294901760, %v11319_v2 }
 0x9b0   : > { %v14578_v6 = vpack.c.bf16 %v11320_v4, %v11313_v3  ;;  %v12269_v3 = vsub.f32 %v11692_v52, %v12182_v53 }
 0x9b4   : > { %14079 = vmatmul.mubr.f32.vlgmr.msra.gmra.mrb[10].mxu1 %v9472_v25  ;;  %v11768_v25 = vand.u32 4294901760, %v11698_v22 }
 0x9b5   : > { %14082 = vmatpush3.msra.mxu1 %v9483_v24  ;;  %14083 = vmatprep.mubr.msk.f32.mxu1 %vm15634_vm0, %v15635_v1 }
 0x9b6   : > { %14086 = vmatprep.subr.mxu1 %v15635_v1 }
 0x9bc   : > { %14084 = vmatmul.mubr.f32.vlgmr.msra.gmra.mrb[10].mxu1 %v9468_v16 }
 0x9bd   : > { %14087 = vmatpush3.msra.mxu1 %v9480_v17  ;;  %14088 = vmatprep.mubr.msk.f32.mxu1 %vm15634_vm0, %v15635_v1  ;;  %v11693_v17 = vld [vmem:[#allocation13] sm:$0xff] }
 0x9be   : > { %14091 = vmatprep.subr.mxu1 %v15635_v1 }
 0x9c4   : > { %14089 = vmatmul.mubr.f32.vlgmr.msra.gmra.mrb[10].mxu1 %v9469_v18  ;;  %v11694_v18 = vld [vmem:[#allocation13 + $0x8] sm:$0xff] }
 0x9c5   : > { %14092 = vmatpush3.msra.mxu1 %v9403_v15  ;;  %14093 = vmatprep.mubr.msk.f32.mxu1 %vm15634_vm0, %v15635_v1 }
 0x9c6   : > { %14096 = vmatprep.subr.mxu1 %v15635_v1 }
 0x9cc   : > { %14094 = vmatmul.mubr.f32.vlgmr.msra.gmra.mrb[10].mxu1 %v9470_v20  ;;  %v11704_v20 = vand.u32 4294901760, %v11694_v18 }
 0x9cd   : > { %14097 = vmatpush3.msra.mxu1 %v9481_v19  ;;  %14098 = vmatprep.mubr.msk.f32.mxu1 %vm15634_vm0, %v15635_v1  ;;  %v11701_v19 = vand.u32 4294901760, %v11693_v17 }
 0x9ce   : > { %14101 = vmatprep.subr.mxu1 %v15635_v1  ;;  %v11787_v24 = vsub.f32 %v11694_v18, %v11704_v20 }
 0x9cf   : > { %v11780_v23 = vsub.f32 %v11693_v17, %v11701_v19 }
 0x9d1   : > { %v11781_v28 = vand.u32 4294901760, %v11780_v23 }
 0x9d4   : > { %14099 = vmatmul.mubr.f32.vlgmr.msra.gmra.mrb[10].mxu1 %v9468_v16 }
 0x9d5   : > { %14102 = vmatpush3.msra.mxu1 %v9403_v15  ;;  %14103 = vmatprep.mubr.msk.f32.mxu1 %vm15634_vm0, %v15635_v1 }
 0x9d6   : > { %14106 = vmatprep.subr.mxu1 %v15635_v1 }
 0x9dc   : > { %14104 = vmatmul.mubr.f32.vlgmr.msra.gmra.mrb[10].mxu1 %v9468_v16 }
 0x9dd   : > { %14107 = vmatpush3.msra.mxu1 %v9858_v29  ;;  %14108 = vmatprep.mubr.msk.f32.mxu1 %vm15634_vm0, %v15635_v1 }
 0x9de   : > { %14111 = vmatprep.subr.mxu1 %v15635_v1 }
 0x9e0   : > { %14109 = vmatmul.mubr.f32.vlgmr.msra.gmra.mrb[6].mxu1 %v9927_v36 }
 0x9e1   : > { %14112 = vmatpush3.msra.mxu1 %v9938_v37  ;;  %14113 = vmatprep.mubr.msk.f32.mxu1 %vm15634_vm0, %v15635_v1  ;;  %v11795_v37 = vand.u32 4294901760, %v11794_v56 }
 0x9e2   : > { %14116 = vmatprep.subr.mxu1 %v15635_v1 }
 0x9e3   : > { %v11796_v39 = vsub.f32 %v11794_v56, %v11795_v37 }
 0x9e8   : > { %14114 = vmatmul.mubr.f32.vlgmr.msra.gmra.mrb[6].mxu1 %v9923_v30 }
 0x9e9   : > { %14117 = vmatpush3.msra.mxu1 %v9935_v31  ;;  %14118 = vmatprep.mubr.msk.f32.mxu1 %vm15634_vm0, %v15635_v1  ;;  %v11782_v31 = vsub.f32 %v11780_v23, %v11781_v28 }
 0x9ea   : > { %14121 = vmatprep.subr.mxu1 %v15635_v1 }
 0x9eb   : > { %v11783_v5 = vand.u32 4294901760, %v11782_v31 }
 0x9f0   : > { %14119 = vmatmul.mubr.f32.vlgmr.msra.gmra.mrb[6].mxu1 %v9924_v32 }
 0x9f1   : > { %14122 = vmatpush3.msra.mxu1 %v9858_v29  ;;  %14123 = vmatprep.mubr.msk.f32.mxu1 %vm15634_vm0, %v15635_v1 }
 0x9f2   : > { %14126 = vmatprep.subr.mxu1 %v15635_v1 }
 0x9f8   : > { %14124 = vmatmul.mubr.f32.vlgmr.msra.gmra.mrb[6].mxu1 %v9925_v34  ;;  %v14593_v34 = vpack.c.bf16 %v11704_v20, %v11701_v19 }
 0x9f9   : > { %14127 = vmatpush3.msra.mxu1 %v9936_v33  ;;  %14128 = vmatprep.mubr.msk.f32.mxu1 %vm15634_vm0, %v15635_v1 }
 0x9fa   : > { %14131 = vmatprep.subr.mxu1 %v15635_v1 }
 0xa00   : > { %14129 = vmatmul.mubr.f32.vlgmr.msra.gmra.mrb[6].mxu1 %v9923_v30 }
 0xa01   : > { %14132 = vmatpush3.msra.mxu1 %v9858_v29  ;;  %14133 = vmatprep.mubr.msk.f32.mxu1 %vm15634_vm0, %v15635_v1  ;;  %v11788_v29 = vand.u32 4294901760, %v11787_v24 }
 0xa02   : > { %14136 = vmatprep.subr.mxu1 %v15635_v1 }
 0xa03   : > { %v11789_v32 = vsub.f32 %v11787_v24, %v11788_v29 }
 0xa05   : > { %v11790_v35 = vand.u32 4294901760, %v11789_v32 }
 0xa07   : > { %v14596_v38 = vpack.c.bf16 %v11790_v35, %v11783_v5 }
 0xa08   : > { %14134 = vmatmul.mubr.f32.vlgmr.msra.gmra.mrb[6].mxu1 %v9923_v30  ;;  %v11769_v30 = vsub.f32 %v11698_v22, %v11768_v25 }
 0xa09   : > { %14138 = vmatprep.mubr.msk.f32.mxu1 %vm15634_vm0, %v15635_v1  ;;  %14137 = vmatpush3.msra.mxu1 %v10310_v40 }
 0xa0a   : > { %14141 = vmatprep.subr.mxu1 %v15635_v1  ;;  %v11770_v33 = vand.u32 4294901760, %v11769_v30 }
 0xa0c   : > { %v11771_v36 = vsub.f32 %v11769_v30, %v11770_v33 }
 0xaaf   : > { %v9844_v42 = vpop.f32.mrb[10].mxu1 }
 0xab0   : > { %v10304_v21 = vsel %vm5328_vm6, %v9844_v42, 0  ;;  %v14105_v43 = vpop.f32.mrb[11].mxu1  ;;  %v14599_v42 = vpack.c.bf16 %v11787_v24, %v11780_v23 }
 0xab1   : > { %v10375_v45 = vand.u32 4294901760, %v10304_v21  ;;  %v11690_v43 = vld [vmem:[#allocation11] sm:$0xff] }
 0xab3   : > { %v10376_v46 = vsub.f32 %v10304_v21, %v10375_v45  ;;  %v14605_v21 = vpack.c.bf16 %v11788_v29, %v11781_v28 }
 0xab5   : > { %v10377_v48 = vand.u32 4294901760, %v10376_v46 }
 0xab7   : > { %v10378_v49 = vsub.f32 %v10376_v46, %v10377_v48 }
 0xab9   : > { %v10379_v51 = vand.u32 4294901760, %v10378_v49 }
 0xabb   : > { %14139 = vmatmul.mubr.f32.vlgmr.msra.gmra.mrb[6].mxu1 %v10379_v51 }
 0xabc   : > { %14142 = vmatpush3.msra.mxu1 %v10390_v50  ;;  %14143 = vmatprep.mubr.msk.f32.mxu1 %vm15634_vm0, %v15635_v1 }
 0xabd   : > { %14146 = vmatprep.subr.mxu1 %v15635_v1 }
 0xac3   : > { %14144 = vmatmul.mubr.f32.vlgmr.msra.gmra.mrb[6].mxu1 %v10375_v45 }
 0xac4   : > { %14147 = vmatpush3.msra.mxu1 %v10387_v41  ;;  %14148 = vmatprep.mubr.msk.f32.mxu1 %vm15634_vm0, %v15635_v1  ;;  %v11797_v41 = vand.u32 4294901760, %v11796_v39 }
 0xac5   : > { %14151 = vmatprep.subr.mxu1 %v15635_v1 }
 0xacb   : > { %14149 = vmatmul.mubr.f32.vlgmr.msra.gmra.mrb[6].mxu1 %v10376_v46 }
 0xacc   : > { %14152 = vmatpush3.msra.mxu1 %v10310_v40  ;;  %14153 = vmatprep.mubr.msk.f32.mxu1 %vm15634_vm0, %v15635_v1 }
 0xacd   : > { %14156 = vmatprep.subr.mxu1 %v15635_v1 }
 0xad3   : > { %14154 = vmatmul.mubr.f32.vlgmr.msra.gmra.mrb[6].mxu1 %v10377_v48 }
 0xad4   : > { %14157 = vmatpush3.msra.mxu1 %v10388_v44  ;;  %14158 = vmatprep.mubr.msk.f32.mxu1 %vm15634_vm0, %v15635_v1  ;;  %v11691_v44 = vld [vmem:[#allocation11 + $0x8] sm:$0xff] }
 0xad5   : > { %14161 = vmatprep.subr.mxu1 %v15635_v1  ;;  %v12179_v46 = vand.u32 4294901760, %v11691_v44 }
 0xad7   : > { %v12262_v49 = vsub.f32 %v11691_v44, %v12179_v46 }
 0xad9   : > { %v12263_v51 = vand.u32 4294901760, %v12262_v49 }
 0xadb   : > { %14159 = vmatmul.mubr.f32.vlgmr.msra.gmra.mrb[6].mxu1 %v10375_v45  ;;  %v12264_v55 = vsub.f32 %v12262_v49, %v12263_v51 }
 0xadc   : > { %14162 = vmatpush3.msra.mxu1 %v10310_v40  ;;  %14163 = vmatprep.mubr.msk.f32.mxu1 %vm15634_vm0, %v15635_v1  ;;  %v11772_v40 = vand.u32 4294901760, %v11771_v36 }
 0xae3   : > { %14164 = vmatmul.mubr.f32.vlgmr.msra.gmra.mrb[6].mxu1 %v10375_v45  ;;  %v12176_v45 = vand.u32 4294901760, %v11690_v43 }
 0xae5   : > { %v14611_v47 = vpack.c.bf16 %v12179_v46, %v12176_v45  ;;  %v12255_v48 = vsub.f32 %v11690_v43, %v12176_v45 }
 0xae7   : > { %v12256_v50 = vand.u32 4294901760, %v12255_v48  ;;  %v14617_v60 = vpack.c.bf16 %v12262_v49, %v12255_v48 }
 0xae9   : > { %v12257_v54 = vsub.f32 %v12255_v48, %v12256_v50  ;;  %v14623_v61 = vpack.c.bf16 %v12263_v51, %v12256_v50 }
 0xaeb   : > { %v12258_v57 = vand.u32 4294901760, %v12257_v54 }
 0xbb6   : > { %v10751_v9 = vpop.f32.mrb[6].mxu1 }
 0xbb7   : > { %v11226_v10 = vsel %vm3466_vm4, %v10751_v9, 0  ;;  %v14165_v11 = vpop.f32.mrb[7].mxu1 }
 0xbb8   : > { %v11298_v12 = vand.u32 4294901760, %v11226_v10 }
 0xbba   : > { %v11299_v13 = vsub.f32 %v11226_v10, %v11298_v12 }
 0xbbc   : > { %v11300_v14 = vand.u32 4294901760, %v11299_v13 }
 0xbbe   : > { %v11301_v15 = vsub.f32 %v11299_v13, %v11300_v14 }
 0xbc0   : > { %v11302_v16 = vand.u32 4294901760, %v11301_v15 }
 0xbc2   : > { %14213 = vmatmul.mubr.f32.vlgmr.msra.gmra.mrb[2].mxu0 %v11302_v16 }
 0xbc3   : > { %14579 = vmatpush3.bf16.msra.mxu0 %v14578_v6  ;;  %14219 = vmatprep.mubr.msk.f32.mxu0 %vm15634_vm0, %v15635_v1 }
 0xbc4   : > { %14580 = vmatprep.subr.bf16.mxu0 %v15633_v0 }
 0xbca   : > { %14220 = vmatmul.mubr.f32.vlgmr.msra.gmra.mrb[2].mxu0 %v11298_v12 }
 0xbcb   : > { %14582 = vmatpush3.bf16.msra.mxu0 %v14581_v7  ;;  %14226 = vmatprep.mubr.msk.f32.mxu0 %vm15634_vm0, %v15635_v1  ;;  %v12270_v7 = vand.u32 4294901760, %v12269_v3 }
 0xbcc   : > { %14583 = vmatprep.subr.bf16.mxu0 %v15633_v0 }
 0xbcd   : > { %v12271_v10 = vsub.f32 %v12269_v3, %v12270_v7 }
 0xbd2   : > { %14227 = vmatmul.mubr.f32.vlgmr.msra.gmra.mrb[2].mxu0 %v11299_v13 }
 0xbd3   : > { %14585 = vmatpush3.bf16.msra.mxu0 %v14575_v58  ;;  %14233 = vmatprep.mubr.msk.f32.mxu0 %vm15634_vm0, %v15635_v1 }
 0xbd4   : > { %14586 = vmatprep.subr.bf16.mxu0 %v15633_v0 }
 0xbda   : > { %14234 = vmatmul.mubr.f32.vlgmr.msra.gmra.mrb[2].mxu0 %v11300_v14 }
 0xbdb   : > { %14588 = vmatpush3.bf16.msra.mxu0 %v14587_v8  ;;  %14240 = vmatprep.mubr.msk.f32.mxu0 %vm15634_vm0, %v15635_v1 }
 0xbdc   : > { %14589 = vmatprep.subr.bf16.mxu0 %v15633_v0 }
 0xbe2   : > { %14241 = vmatmul.mubr.f32.vlgmr.msra.gmra.mrb[2].mxu0 %v11298_v12 }
 0xbe3   : > { %14591 = vmatpush3.bf16.msra.mxu0 %v14575_v58  ;;  %14247 = vmatprep.mubr.msk.f32.mxu0 %vm15634_vm0, %v15635_v1  ;;  %v12265_v58 = vand.u32 4294901760, %v12264_v55 }
 0xbe4   : > { %14592 = vmatprep.subr.bf16.mxu0 %v15633_v0 }
 0xbe5   : > { %v14614_v59 = vpack.c.bf16 %v12265_v58, %v12258_v57 }
 0xbea   : > { %14248 = vmatmul.mubr.f32.vlgmr.msra.gmra.mrb[2].mxu0 %v11298_v12  ;;  %v12272_v12 = vand.u32 4294901760, %v12271_v10 }
 0xbeb   : > { %14594 = vmatpush3.bf16.msra.mxu0 %v14593_v34  ;;  %14256 = vmatprep.mubr.msk.f32.mxu0 %vm15634_vm0, %v15635_v1 }
 0xbec   : > { %14254 = vmatprep.subr.mxu0 %v15635_v1 }
 0xbef   : > { %14255 = vmatpush3.msra.mxu0 %v11707_v27 }
 0xbf0   : > { %14257 = vmatmul.mubr.f32.vlgmr.msra.gmra.mrb[10].mxu0 %v11772_v40  ;;  %14595 = vmatprep.subr.bf16.mxu0 %v15633_v0 }
 0xbf1   : > { %14597 = vmatpush3.bf16.msra.mxu0 %v14596_v38  ;;  %14265 = vmatprep.mubr.msk.f32.mxu0 %vm15634_vm0, %v15635_v1 }
 0xbf2   : > { %14263 = vmatprep.subr.mxu0 %v15635_v1 }
 0xbf5   : > { %14264 = vmatpush3.msra.mxu0 %v11797_v41 }
 0xbf6   : > { %14598 = vmatprep.subr.bf16.mxu0 %v15633_v0 }
 0xbf8   : > { %14266 = vmatmul.mubr.f32.vlgmr.msra.gmra.mrb[10].mxu0 %v11768_v25 }
 0xbf9   : > { %14600 = vmatpush3.bf16.msra.mxu0 %v14599_v42  ;;  %14274 = vmatprep.mubr.msk.f32.mxu0 %vm15634_vm0, %v15635_v1 }
 0xbfa   : > { %14272 = vmatprep.subr.mxu0 %v15635_v1 }
 0xbfd   : > { %14273 = vmatpush3.msra.mxu0 %v11794_v56 }
 0xbfe   : > { %14601 = vmatprep.subr.bf16.mxu0 %v15633_v0 }
 0xc00   : > { %14275 = vmatmul.mubr.f32.vlgmr.msra.gmra.mrb[10].mxu0 %v11769_v30 }
 0xc01   : > { %14603 = vmatpush3.bf16.msra.mxu0 %v14593_v34  ;;  %14283 = vmatprep.mubr.msk.f32.mxu0 %vm15634_vm0, %v15635_v1 }
 0xc02   : > { %14281 = vmatprep.subr.mxu0 %v15635_v1 }
 0xc05   : > { %14282 = vmatpush3.msra.mxu0 %v11707_v27 }
 0xc06   : > { %14604 = vmatprep.subr.bf16.mxu0 %v15633_v0 }
 0xc08   : > { %14284 = vmatmul.mubr.f32.vlgmr.msra.gmra.mrb[10].mxu0 %v11770_v33 }
 0xc09   : > { %14606 = vmatpush3.bf16.msra.mxu0 %v14605_v21  ;;  %14292 = vmatprep.mubr.msk.f32.mxu0 %vm15634_vm0, %v15635_v1 }
 0xc0a   : > { %14290 = vmatprep.subr.mxu0 %v15635_v1 }
 0xc0d   : > { %14291 = vmatpush3.msra.mxu0 %v11795_v37 }
 0xc0e   : > { %14607 = vmatprep.subr.bf16.mxu0 %v15633_v0 }
 0xc10   : > { %14293 = vmatmul.mubr.f32.vlgmr.msra.gmra.mrb[10].mxu0 %v11768_v25 }
 0xc11   : > { %14609 = vmatpush3.bf16.msra.mxu0 %v14593_v34  ;;  %14301 = vmatprep.mubr.msk.f32.mxu0 %vm15634_vm0, %v15635_v1 }
 0xc12   : > { %14299 = vmatprep.subr.mxu0 %v15635_v1 }
 0xc15   : > { %14300 = vmatpush3.msra.mxu0 %v11707_v27 }
 0xc16   : > { %14610 = vmatprep.subr.bf16.mxu0 %v15633_v0 }
 0xc18   : > { %14302 = vmatmul.mubr.f32.vlgmr.msra.gmra.mrb[10].mxu0 %v11768_v25 }
 0xc19   : > { %14310 = vmatprep.mubr.msk.f32.mxu0 %vm15634_vm0, %v15635_v1  ;;  %14612 = vmatpush3.bf16.msra.mxu0 %v14611_v47 }
 0xc1a   : > { %14308 = vmatprep.subr.mxu0 %v15635_v1 }
 0xc1d   : > { %14309 = vmatpush3.msra.mxu0 %v12182_v53 }
 0xc1e   : > { %14613 = vmatprep.subr.bf16.mxu0 %v15633_v0 }
 0xcbd   : > { %v11686_v62 = vpop.f32.mrb[2].mxu0 }
 0xcbe   : > { %v12173_v63 = vsel %vm1561_vm2, %v11686_v62, 0  ;;  %v14249_v2 = vpop.f32.mrb[3].mxu0 }
 0xcbf   : > { %v12243_v4 = vand.u32 4294901760, %v12173_v63 }
 0xcc1   : > { %v12244_v6 = vsub.f32 %v12173_v63, %v12243_v4 }
 0xcc3   : > { %v12245_v8 = vand.u32 4294901760, %v12244_v6 }
 0xcc5   : > { %v12246_v9 = vsub.f32 %v12244_v6, %v12245_v8 }
 0xcc7   : > { %v12247_v11 = vand.u32 4294901760, %v12246_v9 }
 0xcc9   : > { %14311 = vmatmul.mubr.f32.vlgmr.msra.gmra.mrb[10].mxu0 %v12247_v11 }
 0xcca   : > { %14615 = vmatpush3.bf16.msra.mxu0 %v14614_v59  ;;  %14319 = vmatprep.mubr.msk.f32.mxu0 %vm15634_vm0, %v15635_v1 }
 0xccb   : > { %14317 = vmatprep.subr.mxu0 %v15635_v1 }
 0xcce   : > { %14318 = vmatpush3.msra.mxu0 %v12272_v12 }
 0xccf   : > { %14616 = vmatprep.subr.bf16.mxu0 %v15633_v0 }
 0xcd1   : > { %14320 = vmatmul.mubr.f32.vlgmr.msra.gmra.mrb[10].mxu0 %v12243_v4 }
 0xcd2   : > { %14618 = vmatpush3.bf16.msra.mxu0 %v14617_v60  ;;  %14328 = vmatprep.mubr.msk.f32.mxu0 %vm15634_vm0, %v15635_v1 }
 0xcd3   : > { %14326 = vmatprep.subr.mxu0 %v15635_v1 }
 0xcd6   : > { %14327 = vmatpush3.msra.mxu0 %v12269_v3 }
 0xcd7   : > { %14619 = vmatprep.subr.bf16.mxu0 %v15633_v0 }
 0xcd9   : > { %14329 = vmatmul.mubr.f32.vlgmr.msra.gmra.mrb[10].mxu0 %v12244_v6 }
 0xcda   : > { %14621 = vmatpush3.bf16.msra.mxu0 %v14611_v47  ;;  %14337 = vmatprep.mubr.msk.f32.mxu0 %vm15634_vm0, %v15635_v1 }
 0xcdb   : > { %14335 = vmatprep.subr.mxu0 %v15635_v1 }
 0xcde   : > { %14336 = vmatpush3.msra.mxu0 %v12182_v53 }
 0xcdf   : > { %14622 = vmatprep.subr.bf16.mxu0 %v15633_v0 }
 0xce1   : > { %14338 = vmatmul.mubr.f32.vlgmr.msra.gmra.mrb[10].mxu0 %v12245_v8 }
 0xce2   : > { %14624 = vmatpush3.bf16.msra.mxu0 %v14623_v61  ;;  %14346 = vmatprep.mubr.msk.f32.mxu0 %vm15634_vm0, %v15635_v1 }
 0xce3   : > { %14344 = vmatprep.subr.mxu0 %v15635_v1 }
 0xce6   : > { %14345 = vmatpush3.msra.mxu0 %v12270_v7 }
 0xce7   : > { %14625 = vmatprep.subr.bf16.mxu0 %v15633_v0 }
 0xce9   : > { %14347 = vmatmul.mubr.f32.vlgmr.msra.gmra.mrb[10].mxu0 %v12243_v4 }
 0xcea   : > { %14627 = vmatpush3.bf16.msra.mxu0 %v14611_v47  ;;  %14355 = vmatprep.mubr.msk.f32.mxu0 %vm15634_vm0, %v15635_v1 }
 0xceb   : > { %14353 = vmatprep.subr.mxu0 %v15635_v1 }
 0xcee   : > { %14354 = vmatpush3.msra.mxu0 %v12182_v53 }
 0xcf1   : > { %14356 = vmatmul.mubr.f32.vlgmr.msra.gmra.mrb[10].mxu0 %v12243_v4 }
 0xdc4   : > { %v12643_v0 = vpop.f32.mrb[10].mxu0 }
 0xdc5   : > { %12648 = vst.msk [vmem:[%s1026_s11] sm:$0x1] %vm12647_vm9, %v12643_v0  ;;  %v14357_v13 = vpop.f32.mrb[11].mxu0 }
 0xdc6   : > { %15533 = shalt.err (!%p15530_p9)
}
 0xdc7   : > { %s15534_s26 = scalar_lea.hbm %s17110_s5, 16  ;;  %s15538_s6 = scalar_lea.hbm %s17277_s2, 32 }
 0xdc8   : > { %p15535_p12 = scmp.ne.s32.totalorder %s17110_s5, %s15534_s26  ;;  %p15539_p0 = scmp.lt.u32.totalorder %s17110_s5, %s17277_s2 }
 0xdc9   : > { %p15540_p2 = scmp.lt.u32.totalorder %s15538_s6, %s15534_s26  ;;  %p15542_p4 = scmp.lt.u32.totalorder %s15534_s26, %s17110_s5 }
 0xdca   : > { %p15536_p1 = pnand %p15535_p12, %p17278_p10 }
 0xdcb   : > { %p15541_p3 = por %p15540_p2, %p15539_p0 }
 0xdcc   : > { %p15537_p13 = pneg %p15536_p1 }
 0xdcd   : > { %p15543_p11 = por %p15542_p4, %p15541_p3 }
 0xdcf   : > { %p15544_p8 = pnand %p15543_p11, %p15537_p13 }
 0xdd1   : > { %15547 = shalt.err (!%p15544_p8)
}
 0xdd2   : > { %14960 = dma.vmem_to_hbm [thread:$0]  (%p17278_p10), %s17112_s9, 16, %s17110_s5, %s12650_s25  }
 0xdd3 PF: > { %s12674_s23 = sand.u32 1, %s15602_s7   ;;  %p17279_p5 = scmp.ne.s32.totalorder %s17248_s18, 0 }
 0xdd4   : > { %p17280_p7 = scmp.ge.s32.totalorder %s15614_s30, 2  ;;  %s12675_s10 = scalar_lea.sflag [#allocation4], %s12674_s23 }
 0xdd6   : > { %p15010_p6 = pnand %p17280_p7, %p17279_p5 }
 0xdd8   : > { %15597 = dma.done.wait (!%p15010_p6), %s12675_s10, 16  }
 0xdd9   : > { %15599 = vsyncadd (!%p15010_p6), %s12675_s10, 4294967280  ;;  %p47_p9 = scmp.ge.s32.totalorder %s16134_s1, 4   ;;  %s17281_s7 = smov %s15606_s4 }
 0xdda   : > { %s17282_s4 = smov %s15610_s8  ;;  %s17283_s8 = smov %s16145_s3 }
 0xddb   : > { %s17284_s30 = smov %s16134_s1  ;;  %49 = sbr.rel (!%p47_p9) target bundleno = 37 (0x25), region = 229 }
 0xde2   :  { %12679 = vsyncpa [#allocation3], 1 }
 0xde3   :  { %12681 = vsyncpa [#allocation3 + $0x1], 1 }
 0xde4   :  { %12682 = vsyncpa [#allocation6], 1 }
 0xde5   :  { %12683 = vsyncpa [#allocation9], 1 }
 0xde6   :  { %12684 = vsyncpa [#allocation12], 1 }
 0xde7   :  { %12685 = vsyncpa [#allocation15], 1 }
 0xde8   :  { %12686 = vsyncpa [#allocation18], 1 }
 0xde9   :  { %12687 = vsyncpa [#allocation21], 1 }
 0xdea   :  { %12688 = vsyncpa [#allocation24], 1 }
 0xdeb   :  { %12689 = vsyncpa [#allocation4], 1 }
 0xdec   :  { %12691 = vsyncpa [#allocation4 + $0x1], 1 }

</bundles_post_ra>
